<compile_context>
chip_gen: v6e
topology: v6e:2x2x1
jax: 0.10.0
libtpu: 0.0.40
codegen_flags: <defaults>
</compile_context>

<pallas_src>
import jax
import jax.numpy as jnp
from jax.experimental import pallas as pl
from jax.experimental.pallas import tpu as pltpu

LANE = 128
SUBLANE = 8


def _round_up(x, m):
    return ((x + m - 1) // m) * m


# ----------------------------- fused Pallas kernel ---------------------------

def _make_kernel(*, Ho2, Wo2, Ho3, Wo3, Wo1h, s2, s3, k2, k3,
                 C1p, C2p, n3, n3p):
    """Builds the fused per-image CNN kernel with all sizes closed over."""

    def copy_taps(src_ref, dst_ref, ho, wo, k, s, wsrc_h, cp):
        # src rows are stored W-parity de-interleaved for stride s:
        #   row(oh_src, ow_src = s*q + r) = (oh_src*s + r)*wsrc_h + q
        # so every tap (ki, kj) is a contiguous wo-row window (no strided
        # reads, no gather matrices).  Columns of dst are tap-major blocks of
        # cp lanes -> wide-K patch layout for a single matmul.
        for oh in range(ho):
            for ki in range(k):
                for kj in range(k):
                    q, r = kj // s, kj % s
                    src = ((s * oh + ki) * s + r) * wsrc_h + q
                    t = ki * k + kj
                    dst_ref[pl.ds(oh * wo, wo), pl.ds(t * cp, cp)] = (
                        src_ref[pl.ds(src, wo), :])

    def kernel(p1_ref, w1_ref, b1_ref, w2_ref, b2_ref, w3_ref, b3_ref,
               out_ref, a1_s, p2_s, a2_s, p3_s):
        # ---- layer 1: one (n1p, K1p) @ (K1p, C1p) matmul; bias + ReLU fused.
        a1 = jnp.dot(p1_ref[...], w1_ref[...],
                     preferred_element_type=jnp.float32)
        a1_s[...] = jnp.maximum(a1 + b1_ref[...], 0.0)

        # ---- layer 2: in-kernel im2col (contiguous slices) + one wide-K matmul.
        copy_taps(a1_s, p2_s, Ho2, Wo2, k2, s2, Wo1h, C1p)
        a2 = jnp.dot(p2_s[...], w2_ref[...],
                     preferred_element_type=jnp.float32)
        a2_s[...] = jnp.maximum(a2 + b2_ref[...], 0.0)

        # ---- layer 3 (stride 1): same pattern.
        copy_taps(a2_s, p3_s, Ho3, Wo3, k3, s3, Wo2 // s3, C2p)
        if n3p > n3:
            # deterministic (and later discarded) padded output rows
            p3_s[pl.ds(n3, n3p - n3), :] = jnp.zeros(
                (n3p - n3, k3 * k3 * C2p), jnp.float32)
        a3 = jnp.dot(p3_s[...], w3_ref[...],
                     preferred_element_type=jnp.float32)
        out_ref[...] = jnp.maximum(a3 + b3_ref[...], 0.0)   # lane-dense store

    return kernel


# ------------------------------ host-side glue --------------------------------

def _im2col_l1(x, k1, s1, s2):
    """x: (B, 1, H, W) -> per-image layer-1 patches (B, Ho*Wo, C*k1*k1).

    Rows are W-parity de-interleaved for the NEXT layer's stride s2:
        row(oh, ow = s2*q + r) = (oh*s2 + r) * (Wo//s2) + q
    Columns are flattened (cin, ki, kj) to match w1.reshape(cout, -1)."""
    B, C, H, W = x.shape
    Ho = (H - k1) // s1 + 1
    Wo = (W - k1) // s1 + 1
    cols = []
    for i in range(k1):
        for j in range(k1):
            cols.append(x[:, :,
                          i:i + s1 * (Ho - 1) + 1:s1,
                          j:j + s1 * (Wo - 1) + 1:s1])
    p = jnp.stack(cols, axis=0)                    # (k1*k1, B, C, Ho, Wo)
    p = jnp.transpose(p, (1, 3, 4, 2, 0))          # (B, Ho, Wo, C, k1*k1)
    K = C * k1 * k1
    p = p.reshape(B, Ho, Wo, K)
    woh = Wo // s2
    p = p.reshape(B, Ho, woh, s2, K)
    p = jnp.transpose(p, (0, 1, 3, 2, 4)).reshape(B, Ho * s2 * woh, K)
    return p, Ho, Wo


def cnn_forward(params, state):
    """state: (B, 1, H, W) NCHW (like the PyTorch module) -> (B, hidden, Ho3, Wo3)."""
    w1, b1 = params["w1"], params["b1"]
    w2, b2 = params["w2"], params["b2"]
    w3, b3 = params["w3"], params["b3"]

    B, cin, H, W = state.shape
    c1, _, k1, _ = w1.shape            # 32, 1, 8, 8
    c2, _, k2, _ = w2.shape            # 64, 32, 4, 4
    c3, _, k3, _ = w3.shape            # hidden, 64, 3, 3
    s1, s2, s3 = 4, 2, 1               # strides fixed by the module

    Ho1 = (H - k1) // s1 + 1
    Wo1 = (W - k1) // s1 + 1
    Ho2 = (Ho1 - k2) // s2 + 1
    Wo2 = (Wo1 - k2) // s2 + 1
    Ho3 = (Ho2 - k3) // s3 + 1
    Wo3 = (Wo2 - k3) // s3 + 1

    # TODO(synk): generalize the in-kernel tap slicing to strides that do not
    # divide the producer's output width (would need a padded de-interleave).
    assert Wo1 % s2 == 0 and s3 == 1
    assert c1 <= LANE and c2 <= LANE and c3 <= LANE

    C1p, C2p, C3p = (_round_up(c, LANE) for c in (c1, c2, c3))
    K1 = cin * k1 * k1
    K1p = _round_up(K1, LANE)
    K2 = k2 * k2 * C1p
    K3 = k3 * k3 * C2p
    n1 = Ho1 * Wo1
    n1p = _round_up(n1, SUBLANE)
    n2 = Ho2 * Wo2
    n3 = Ho3 * Wo3
    n3p = _round_up(n3, SUBLANE)

    # Layer-1 patch extraction (single small XLA fusion; pad folded in here).
    p1, _, _ = _im2col_l1(state, k1, s1, s2)                    # (B, n1, K1)
    p1 = jnp.pad(p1, ((0, 0), (0, n1p - n1), (0, K1p - K1)))
    p1 = p1.reshape(B * n1p, K1p)

    # Zero-padded, pre-flattened (wide-K) weights and biases.  Padded input
    # lanes multiply zero activations; padded output lanes stay 0 through
    # bias + ReLU.
    w1p = jnp.pad(w1.reshape(c1, K1).T, ((0, K1p - K1), (0, C1p - c1)))
    w2p = jnp.pad(jnp.transpose(w2, (2, 3, 1, 0)),
                  ((0, 0), (0, 0), (0, C1p - c1), (0, C2p - c2))).reshape(K2, C2p)
    w3p = jnp.pad(jnp.transpose(w3, (2, 3, 1, 0)),
                  ((0, 0), (0, 0), (0, C2p - c2), (0, C3p - c3))).reshape(K3, C3p)
    b1p = jnp.pad(b1, (0, C1p - c1)).reshape(1, C1p)
    b2p = jnp.pad(b2, (0, C2p - c2)).reshape(1, C2p)
    b3p = jnp.pad(b3, (0, C3p - c3)).reshape(1, C3p)

    kernel = _make_kernel(Ho2=Ho2, Wo2=Wo2, Ho3=Ho3, Wo3=Wo3,
                          Wo1h=Wo1 // s2, s2=s2, s3=s3, k2=k2, k3=k3,
                          C1p=C1p, C2p=C2p, n3=n3, n3p=n3p)

    def const(shape):
        return pl.BlockSpec(shape, lambda b: (0,) * len(shape))

    out = pl.pallas_call(
        kernel,
        out_shape=jax.ShapeDtypeStruct((B * n3p, C3p), jnp.float32),
        grid=(B,),
        in_specs=[
            pl.BlockSpec((n1p, K1p), lambda b: (b, 0)),   # per-image patches
            const((K1p, C1p)), const((1, C1p)),           # VMEM-resident weights
            const((K2, C2p)), const((1, C2p)),
            const((K3, C3p)), const((1, C3p)),
        ],
        out_specs=pl.BlockSpec((n3p, C3p), lambda b: (b, 0)),
        scratch_shapes=[
            pltpu.VMEM((n1p, C1p), jnp.float32),          # a1
            pltpu.VMEM((n2, K2), jnp.float32),            # layer-2 patches
            pltpu.VMEM((n2, C2p), jnp.float32),           # a2
            pltpu.VMEM((n3p, K3), jnp.float32),           # layer-3 patches
        ],
        compiler_params=pltpu.CompilerParams(
            dimension_semantics=("parallel",)),
    )(p1, w1p, b1p, w2p, b2p, w3p, b3p)

    # Drop padding and convert channels-last rows back to NCHW once.
    y = out.reshape(B, n3p, C3p)[:, :n3, :c3].reshape(B, Ho3, Wo3, c3)
    return jnp.transpose(y, (0, 3, 1, 2))


# ------------------------------- CNN module ----------------------------------

def init_cnn_params(key, hidden_size):
    """Deterministic init matching nn.Conv2d shapes (uniform +-1/sqrt(fan_in))."""
    ks = jax.random.split(key, 6)

    def u(k, shape, fan_in):
        bound = 1.0 / float(fan_in) ** 0.5
        return jax.random.uniform(k, shape, jnp.float32, -bound, bound)

    return {
        "w1": u(ks[0], (32, 1, 8, 8), 1 * 8 * 8),
        "b1": u(ks[1], (32,), 1 * 8 * 8),
        "w2": u(ks[2], (64, 32, 4, 4), 32 * 4 * 4),
        "b2": u(ks[3], (64,), 32 * 4 * 4),
        "w3": u(ks[4], (hidden_size, 64, 3, 3), 64 * 3 * 3),
        "b3": u(ks[5], (hidden_size,), 64 * 3 * 3),
    }


# Pure-JAX reference for correctness checking.
def cnn_forward_ref(params, state):
    def conv(x, w, b, s):
        y = jax.lax.conv_general_dilated(
            x, w, window_strides=(s, s), padding="VALID",
            dimension_numbers=("NCHW", "OIHW", "NCHW"))
        return jax.nn.relu(y + b[None, :, None, None])

    out = conv(state, params["w1"], params["b1"], 4)
    out = conv(out, params["w2"], params["b2"], 2)
    out = conv(out, params["w3"], params["b3"], 1)
    return out


if __name__ == "__main__":
    key = jax.random.PRNGKey(0)
    k_params, k_x = jax.random.split(key)

    hidden_size = 32
    # NCHW input; spatial 44 -> conv1: 10x10, conv2: 4x4, conv3: 2x2.
    x = jax.random.normal(k_x, (2, 1, 44, 44), dtype=jnp.float32)
    params = init_cnn_params(k_params, hidden_size)

    out = jax.block_until_ready(jax.jit(cnn_forward)(params, x))

    ref = jax.block_until_ready(cnn_forward_ref(params, x))
    assert out.shape == (2, hidden_size, 2, 2), out.shape
    assert jnp.allclose(out, ref, atol=1e-4, rtol=1e-4), \
        float(jnp.max(jnp.abs(out - ref)))

    print("KERNEL_OK")
</pallas_src>

<mosaic_0001>
module attributes {stable_mosaic.version = 11 : i64} {
  func.func @kernel(%arg0: i32, %arg1: memref<104x128xf32, #tpu.memory_space<vmem>>, %arg2: memref<128x128xf32, #tpu.memory_space<vmem>>, %arg3: memref<1x128xf32, #tpu.memory_space<vmem>>, %arg4: memref<2048x128xf32, #tpu.memory_space<vmem>>, %arg5: memref<1x128xf32, #tpu.memory_space<vmem>>, %arg6: memref<1152x128xf32, #tpu.memory_space<vmem>>, %arg7: memref<1x128xf32, #tpu.memory_space<vmem>>, %arg8: memref<8x128xf32, #tpu.memory_space<vmem>>, %arg9: memref<104x128xf32, #tpu.memory_space<vmem>>, %arg10: memref<16x2048xf32, #tpu.memory_space<vmem>>, %arg11: memref<16x128xf32, #tpu.memory_space<vmem>>, %arg12: memref<8x1152xf32, #tpu.memory_space<vmem>>) attributes {dimension_semantics = [#tpu.dimension_semantics<parallel>], iteration_bounds = array<i64: 2>, scalar_prefetch = 0 : i64, scratch_operands = 4 : i64, tpu.core_type = #tpu.core_type<tc>, window_params = [{transform_indices = @transform_0, window_bounds = array<i64: 104, 128>}, {pipeline_mode = #tpu.pipeline_mode<synchronous>, transform_indices = @transform_1, window_bounds = array<i64: 128, 128>}, {pipeline_mode = #tpu.pipeline_mode<synchronous>, transform_indices = @transform_2, window_bounds = array<i64: 1, 128>}, {pipeline_mode = #tpu.pipeline_mode<synchronous>, transform_indices = @transform_3, window_bounds = array<i64: 2048, 128>}, {pipeline_mode = #tpu.pipeline_mode<synchronous>, transform_indices = @transform_4, window_bounds = array<i64: 1, 128>}, {pipeline_mode = #tpu.pipeline_mode<synchronous>, transform_indices = @transform_5, window_bounds = array<i64: 1152, 128>}, {pipeline_mode = #tpu.pipeline_mode<synchronous>, transform_indices = @transform_6, window_bounds = array<i64: 1, 128>}, {transform_indices = @transform_7, window_bounds = array<i64: 8, 128>}]} {
    %c0 = arith.constant 0 : index
    %c0_0 = arith.constant 0 : index
    %0 = vector.load %arg1[%c0, %c0_0] : memref<104x128xf32, #tpu.memory_space<vmem>>, vector<104x128xf32>
    %c0_1 = arith.constant 0 : index
    %c0_2 = arith.constant 0 : index
    %1 = vector.load %arg2[%c0_1, %c0_2] : memref<128x128xf32, #tpu.memory_space<vmem>>, vector<128x128xf32>
    %cst = arith.constant dense<0.000000e+00> : vector<104x128xf32>
    %2 = tpu.matmul %0, %1, %cst {dimension_numbers = #tpu.dot_dimension_numbers<[1], [0], [0], [1], [0, 0, 1, 1], [], []>} : vector<104x128xf32>, vector<128x128xf32>, vector<104x128xf32> -> vector<104x128xf32>
    %c0_3 = arith.constant 0 : index
    %c0_4 = arith.constant 0 : index
    %3 = vector.load %arg3[%c0_3, %c0_4] : memref<1x128xf32, #tpu.memory_space<vmem>>, vector<1x128xf32>
    %4 = vector.broadcast %3 : vector<1x128xf32> to vector<104x128xf32>
    %5 = arith.addf %2, %4 : vector<104x128xf32>
    %cst_5 = arith.constant 0.000000e+00 : f32
    %6 = vector.broadcast %cst_5 : f32 to vector<104x128xf32>
    %7 = arith.maximumf %5, %6 : vector<104x128xf32>
    %c0_6 = arith.constant 0 : index
    %c0_7 = arith.constant 0 : index
    %8 = vector.load %arg9[%c0_6, %c0_7] : memref<104x128xf32, #tpu.memory_space<vmem>>, vector<104x128xf32>
    tpu.vector_store %arg9[%c0_6, %c0_7], %7 {strides = array<i32>} : memref<104x128xf32, #tpu.memory_space<vmem>>, vector<104x128xf32>,
    %c0_8 = arith.constant 0 : index
    %c0_9 = arith.constant 0 : index
    %9 = vector.load %arg9[%c0_8, %c0_9] : memref<104x128xf32, #tpu.memory_space<vmem>>, vector<4x128xf32>
    %c0_10 = arith.constant 0 : index
    %c0_11 = arith.constant 0 : index
    %10 = vector.load %arg10[%c0_10, %c0_11] : memref<16x2048xf32, #tpu.memory_space<vmem>>, vector<4x128xf32>
    tpu.vector_store %arg10[%c0_10, %c0_11], %9 {strides = array<i32>} : memref<16x2048xf32, #tpu.memory_space<vmem>>, vector<4x128xf32>,
    %c5 = arith.constant 5 : index
    %c0_12 = arith.constant 0 : index
    %11 = vector.load %arg9[%c5, %c0_12] : memref<104x128xf32, #tpu.memory_space<vmem>>, vector<4x128xf32>
    %c0_13 = arith.constant 0 : index
    %c128 = arith.constant 128 : index
    %12 = vector.load %arg10[%c0_13, %c128] : memref<16x2048xf32, #tpu.memory_space<vmem>>, vector<4x128xf32>
    tpu.vector_store %arg10[%c0_13, %c128], %11 {strides = array<i32>} : memref<16x2048xf32, #tpu.memory_space<vmem>>, vector<4x128xf32>,
    %c1 = arith.constant 1 : index
    %c0_14 = arith.constant 0 : index
    %13 = vector.load %arg9[%c1, %c0_14] : memref<104x128xf32, #tpu.memory_space<vmem>>, vector<4x128xf32>
    %c0_15 = arith.constant 0 : index
    %c256 = arith.constant 256 : index
    %14 = vector.load %arg10[%c0_15, %c256] : memref<16x2048xf32, #tpu.memory_space<vmem>>, vector<4x128xf32>
    tpu.vector_store %arg10[%c0_15, %c256], %13 {strides = array<i32>} : memref<16x2048xf32, #tpu.memory_space<vmem>>, vector<4x128xf32>,
    %c6 = arith.constant 6 : index
    %c0_16 = arith.constant 0 : index
    %15 = vector.load %arg9[%c6, %c0_16] : memref<104x128xf32, #tpu.memory_space<vmem>>, vector<4x128xf32>
    %c0_17 = arith.constant 0 : index
    %c384 = arith.constant 384 : index
    %16 = vector.load %arg10[%c0_17, %c384] : memref<16x2048xf32, #tpu.memory_space<vmem>>, vector<4x128xf32>
    tpu.vector_store %arg10[%c0_17, %c384], %15 {strides = array<i32>} : memref<16x2048xf32, #tpu.memory_space<vmem>>, vector<4x128xf32>,
    %c10 = arith.constant 10 : index
    %c0_18 = arith.constant 0 : index
    %17 = vector.load %arg9[%c10, %c0_18] : memref<104x128xf32, #tpu.memory_space<vmem>>, vector<4x128xf32>
    %c0_19 = arith.constant 0 : index
    %c512 = arith.constant 512 : index
    %18 = vector.load %arg10[%c0_19, %c512] : memref<16x2048xf32, #tpu.memory_space<vmem>>, vector<4x128xf32>
    tpu.vector_store %arg10[%c0_19, %c512], %17 {strides = array<i32>} : memref<16x2048xf32, #tpu.memory_space<vmem>>, vector<4x128xf32>,
    %c15 = arith.constant 15 : index
    %c0_20 = arith.constant 0 : index
    %19 = vector.load %arg9[%c15, %c0_20] : memref<104x128xf32, #tpu.memory_space<vmem>>, vector<4x128xf32>
    %c0_21 = arith.constant 0 : index
    %c640 = arith.constant 640 : index
    %20 = vector.load %arg10[%c0_21, %c640] : memref<16x2048xf32, #tpu.memory_space<vmem>>, vector<4x128xf32>
    tpu.vector_store %arg10[%c0_21, %c640], %19 {strides = array<i32>} : memref<16x2048xf32, #tpu.memory_space<vmem>>, vector<4x128xf32>,
    %c11 = arith.constant 11 : index
    %c0_22 = arith.constant 0 : index
    %21 = vector.load %arg9[%c11, %c0_22] : memref<104x128xf32, #tpu.memory_space<vmem>>, vector<4x128xf32>
    %c0_23 = arith.constant 0 : index
    %c768 = arith.constant 768 : index
    %22 = vector.load %arg10[%c0_23, %c768] : memref<16x2048xf32, #tpu.memory_space<vmem>>, vector<4x128xf32>
    tpu.vector_store %arg10[%c0_23, %c768], %21 {strides = array<i32>} : memref<16x2048xf32, #tpu.memory_space<vmem>>, vector<4x128xf32>,
    %c16 = arith.constant 16 : index
    %c0_24 = arith.constant 0 : index
    %23 = vector.load %arg9[%c16, %c0_24] : memref<104x128xf32, #tpu.memory_space<vmem>>, vector<4x128xf32>
    %c0_25 = arith.constant 0 : index
    %c896 = arith.constant 896 : index
    %24 = vector.load %arg10[%c0_25, %c896] : memref<16x2048xf32, #tpu.memory_space<vmem>>, vector<4x128xf32>
    tpu.vector_store %arg10[%c0_25, %c896], %23 {strides = array<i32>} : memref<16x2048xf32, #tpu.memory_space<vmem>>, vector<4x128xf32>,
    %c20 = arith.constant 20 : index
    %c0_26 = arith.constant 0 : index
    %25 = vector.load %arg9[%c20, %c0_26] : memref<104x128xf32, #tpu.memory_space<vmem>>, vector<4x128xf32>
    %c0_27 = arith.constant 0 : index
    %c1024 = arith.constant 1024 : index
    %26 = vector.load %arg10[%c0_27, %c1024] : memref<16x2048xf32, #tpu.memory_space<vmem>>, vector<4x128xf32>
    tpu.vector_store %arg10[%c0_27, %c1024], %25 {strides = array<i32>} : memref<16x2048xf32, #tpu.memory_space<vmem>>, vector<4x128xf32>,
    %c25 = arith.constant 25 : index
    %c0_28 = arith.constant 0 : index
    %27 = vector.load %arg9[%c25, %c0_28] : memref<104x128xf32, #tpu.memory_space<vmem>>, vector<4x128xf32>
    %c0_29 = arith.constant 0 : index
    %c1152 = arith.constant 1152 : index
    %28 = vector.load %arg10[%c0_29, %c1152] : memref<16x2048xf32, #tpu.memory_space<vmem>>, vector<4x128xf32>
    tpu.vector_store %arg10[%c0_29, %c1152], %27 {strides = array<i32>} : memref<16x2048xf32, #tpu.memory_space<vmem>>, vector<4x128xf32>,
    %c21 = arith.constant 21 : index
    %c0_30 = arith.constant 0 : index
    %29 = vector.load %arg9[%c21, %c0_30] : memref<104x128xf32, #tpu.memory_space<vmem>>, vector<4x128xf32>
    %c0_31 = arith.constant 0 : index
    %c1280 = arith.constant 1280 : index
    %30 = vector.load %arg10[%c0_31, %c1280] : memref<16x2048xf32, #tpu.memory_space<vmem>>, vector<4x128xf32>
    tpu.vector_store %arg10[%c0_31, %c1280], %29 {strides = array<i32>} : memref<16x2048xf32, #tpu.memory_space<vmem>>, vector<4x128xf32>,
    %c26 = arith.constant 26 : index
    %c0_32 = arith.constant 0 : index
    %31 = vector.load %arg9[%c26, %c0_32] : memref<104x128xf32, #tpu.memory_space<vmem>>, vector<4x128xf32>
    %c0_33 = arith.constant 0 : index
    %c1408 = arith.constant 1408 : index
    %32 = vector.load %arg10[%c0_33, %c1408] : memref<16x2048xf32, #tpu.memory_space<vmem>>, vector<4x128xf32>
    tpu.vector_store %arg10[%c0_33, %c1408], %31 {strides = array<i32>} : memref<16x2048xf32, #tpu.memory_space<vmem>>, vector<4x128xf32>,
    %c30 = arith.constant 30 : index
    %c0_34 = arith.constant 0 : index
    %33 = vector.load %arg9[%c30, %c0_34] : memref<104x128xf32, #tpu.memory_space<vmem>>, vector<4x128xf32>
    %c0_35 = arith.constant 0 : index
    %c1536 = arith.constant 1536 : index
    %34 = vector.load %arg10[%c0_35, %c1536] : memref<16x2048xf32, #tpu.memory_space<vmem>>, vector<4x128xf32>
    tpu.vector_store %arg10[%c0_35, %c1536], %33 {strides = array<i32>} : memref<16x2048xf32, #tpu.memory_space<vmem>>, vector<4x128xf32>,
    %c35 = arith.constant 35 : index
    %c0_36 = arith.constant 0 : index
    %35 = vector.load %arg9[%c35, %c0_36] : memref<104x128xf32, #tpu.memory_space<vmem>>, vector<4x128xf32>
    %c0_37 = arith.constant 0 : index
    %c1664 = arith.constant 1664 : index
    %36 = vector.load %arg10[%c0_37, %c1664] : memref<16x2048xf32, #tpu.memory_space<vmem>>, vector<4x128xf32>
    tpu.vector_store %arg10[%c0_37, %c1664], %35 {strides = array<i32>} : memref<16x2048xf32, #tpu.memory_space<vmem>>, vector<4x128xf32>,
    %c31 = arith.constant 31 : index
    %c0_38 = arith.constant 0 : index
    %37 = vector.load %arg9[%c31, %c0_38] : memref<104x128xf32, #tpu.memory_space<vmem>>, vector<4x128xf32>
    %c0_39 = arith.constant 0 : index
    %c1792 = arith.constant 1792 : index
    %38 = vector.load %arg10[%c0_39, %c1792] : memref<16x2048xf32, #tpu.memory_space<vmem>>, vector<4x128xf32>
    tpu.vector_store %arg10[%c0_39, %c1792], %37 {strides = array<i32>} : memref<16x2048xf32, #tpu.memory_space<vmem>>, vector<4x128xf32>,
    %c36 = arith.constant 36 : index
    %c0_40 = arith.constant 0 : index
    %39 = vector.load %arg9[%c36, %c0_40] : memref<104x128xf32, #tpu.memory_space<vmem>>, vector<4x128xf32>
    %c0_41 = arith.constant 0 : index
    %c1920 = arith.constant 1920 : index
    %40 = vector.load %arg10[%c0_41, %c1920] : memref<16x2048xf32, #tpu.memory_space<vmem>>, vector<4x128xf32>
    tpu.vector_store %arg10[%c0_41, %c1920], %39 {strides = array<i32>} : memref<16x2048xf32, #tpu.memory_space<vmem>>, vector<4x128xf32>,
    %c20_42 = arith.constant 20 : index
    %c0_43 = arith.constant 0 : index
    %41 = vector.load %arg9[%c20_42, %c0_43] : memref<104x128xf32, #tpu.memory_space<vmem>>, vector<4x128xf32>
    %c4 = arith.constant 4 : index
    %c0_44 = arith.constant 0 : index
    %42 = vector.load %arg10[%c4, %c0_44] : memref<16x2048xf32, #tpu.memory_space<vmem>>, vector<4x128xf32>
    tpu.vector_store %arg10[%c4, %c0_44], %41 {strides = array<i32>} : memref<16x2048xf32, #tpu.memory_space<vmem>>, vector<4x128xf32>,
    %c25_45 = arith.constant 25 : index
    %c0_46 = arith.constant 0 : index
    %43 = vector.load %arg9[%c25_45, %c0_46] : memref<104x128xf32, #tpu.memory_space<vmem>>, vector<4x128xf32>
    %c4_47 = arith.constant 4 : index
    %c128_48 = arith.constant 128 : index
    %44 = vector.load %arg10[%c4_47, %c128_48] : memref<16x2048xf32, #tpu.memory_space<vmem>>, vector<4x128xf32>
    tpu.vector_store %arg10[%c4_47, %c128_48], %43 {strides = array<i32>} : memref<16x2048xf32, #tpu.memory_space<vmem>>, vector<4x128xf32>,
    %c21_49 = arith.constant 21 : index
    %c0_50 = arith.constant 0 : index
    %45 = vector.load %arg9[%c21_49, %c0_50] : memref<104x128xf32, #tpu.memory_space<vmem>>, vector<4x128xf32>
    %c4_51 = arith.constant 4 : index
    %c256_52 = arith.constant 256 : index
    %46 = vector.load %arg10[%c4_51, %c256_52] : memref<16x2048xf32, #tpu.memory_space<vmem>>, vector<4x128xf32>
    tpu.vector_store %arg10[%c4_51, %c256_52], %45 {strides = array<i32>} : memref<16x2048xf32, #tpu.memory_space<vmem>>, vector<4x128xf32>,
    %c26_53 = arith.constant 26 : index
    %c0_54 = arith.constant 0 : index
    %47 = vector.load %arg9[%c26_53, %c0_54] : memref<104x128xf32, #tpu.memory_space<vmem>>, vector<4x128xf32>
    %c4_55 = arith.constant 4 : index
    %c384_56 = arith.constant 384 : index
    %48 = vector.load %arg10[%c4_55, %c384_56] : memref<16x2048xf32, #tpu.memory_space<vmem>>, vector<4x128xf32>
    tpu.vector_store %arg10[%c4_55, %c384_56], %47 {strides = array<i32>} : memref<16x2048xf32, #tpu.memory_space<vmem>>, vector<4x128xf32>,
    %c30_57 = arith.constant 30 : index
    %c0_58 = arith.constant 0 : index
    %49 = vector.load %arg9[%c30_57, %c0_58] : memref<104x128xf32, #tpu.memory_space<vmem>>, vector<4x128xf32>
    %c4_59 = arith.constant 4 : index
    %c512_60 = arith.constant 512 : index
    %50 = vector.load %arg10[%c4_59, %c512_60] : memref<16x2048xf32, #tpu.memory_space<vmem>>, vector<4x128xf32>
    tpu.vector_store %arg10[%c4_59, %c512_60], %49 {strides = array<i32>} : memref<16x2048xf32, #tpu.memory_space<vmem>>, vector<4x128xf32>,
    %c35_61 = arith.constant 35 : index
    %c0_62 = arith.constant 0 : index
    %51 = vector.load %arg9[%c35_61, %c0_62] : memref<104x128xf32, #tpu.memory_space<vmem>>, vector<4x128xf32>
    %c4_63 = arith.constant 4 : index
    %c640_64 = arith.constant 640 : index
    %52 = vector.load %arg10[%c4_63, %c640_64] : memref<16x2048xf32, #tpu.memory_space<vmem>>, vector<4x128xf32>
    tpu.vector_store %arg10[%c4_63, %c640_64], %51 {strides = array<i32>} : memref<16x2048xf32, #tpu.memory_space<vmem>>, vector<4x128xf32>,
    %c31_65 = arith.constant 31 : index
    %c0_66 = arith.constant 0 : index
    %53 = vector.load %arg9[%c31_65, %c0_66] : memref<104x128xf32, #tpu.memory_space<vmem>>, vector<4x128xf32>
    %c4_67 = arith.constant 4 : index
    %c768_68 = arith.constant 768 : index
    %54 = vector.load %arg10[%c4_67, %c768_68] : memref<16x2048xf32, #tpu.memory_space<vmem>>, vector<4x128xf32>
    tpu.vector_store %arg10[%c4_67, %c768_68], %53 {strides = array<i32>} : memref<16x2048xf32, #tpu.memory_space<vmem>>, vector<4x128xf32>,
    %c36_69 = arith.constant 36 : index
    %c0_70 = arith.constant 0 : index
    %55 = vector.load %arg9[%c36_69, %c0_70] : memref<104x128xf32, #tpu.memory_space<vmem>>, vector<4x128xf32>
    %c4_71 = arith.constant 4 : index
    %c896_72 = arith.constant 896 : index
    %56 = vector.load %arg10[%c4_71, %c896_72] : memref<16x2048xf32, #tpu.memory_space<vmem>>, vector<4x128xf32>
    tpu.vector_store %arg10[%c4_71, %c896_72], %55 {strides = array<i32>} : memref<16x2048xf32, #tpu.memory_space<vmem>>, vector<4x128xf32>,
    %c40 = arith.constant 40 : index
    %c0_73 = arith.constant 0 : index
    %57 = vector.load %arg9[%c40, %c0_73] : memref<104x128xf32, #tpu.memory_space<vmem>>, vector<4x128xf32>
    %c4_74 = arith.constant 4 : index
    %c1024_75 = arith.constant 1024 : index
    %58 = vector.load %arg10[%c4_74, %c1024_75] : memref<16x2048xf32, #tpu.memory_space<vmem>>, vector<4x128xf32>
    tpu.vector_store %arg10[%c4_74, %c1024_75], %57 {strides = array<i32>} : memref<16x2048xf32, #tpu.memory_space<vmem>>, vector<4x128xf32>,
    %c45 = arith.constant 45 : index
    %c0_76 = arith.constant 0 : index
    %59 = vector.load %arg9[%c45, %c0_76] : memref<104x128xf32, #tpu.memory_space<vmem>>, vector<4x128xf32>
    %c4_77 = arith.constant 4 : index
    %c1152_78 = arith.constant 1152 : index
    %60 = vector.load %arg10[%c4_77, %c1152_78] : memref<16x2048xf32, #tpu.memory_space<vmem>>, vector<4x128xf32>
    tpu.vector_store %arg10[%c4_77, %c1152_78], %59 {strides = array<i32>} : memref<16x2048xf32, #tpu.memory_space<vmem>>, vector<4x128xf32>,
    %c41 = arith.constant 41 : index
    %c0_79 = arith.constant 0 : index
    %61 = vector.load %arg9[%c41, %c0_79] : memref<104x128xf32, #tpu.memory_space<vmem>>, vector<4x128xf32>
    %c4_80 = arith.constant 4 : index
    %c1280_81 = arith.constant 1280 : index
    %62 = vector.load %arg10[%c4_80, %c1280_81] : memref<16x2048xf32, #tpu.memory_space<vmem>>, vector<4x128xf32>
    tpu.vector_store %arg10[%c4_80, %c1280_81], %61 {strides = array<i32>} : memref<16x2048xf32, #tpu.memory_space<vmem>>, vector<4x128xf32>,
    %c46 = arith.constant 46 : index
    %c0_82 = arith.constant 0 : index
    %63 = vector.load %arg9[%c46, %c0_82] : memref<104x128xf32, #tpu.memory_space<vmem>>, vector<4x128xf32>
    %c4_83 = arith.constant 4 : index
    %c1408_84 = arith.constant 1408 : index
    %64 = vector.load %arg10[%c4_83, %c1408_84] : memref<16x2048xf32, #tpu.memory_space<vmem>>, vector<4x128xf32>
    tpu.vector_store %arg10[%c4_83, %c1408_84], %63 {strides = array<i32>} : memref<16x2048xf32, #tpu.memory_space<vmem>>, vector<4x128xf32>,
    %c50 = arith.constant 50 : index
    %c0_85 = arith.constant 0 : index
    %65 = vector.load %arg9[%c50, %c0_85] : memref<104x128xf32, #tpu.memory_space<vmem>>, vector<4x128xf32>
    %c4_86 = arith.constant 4 : index
    %c1536_87 = arith.constant 1536 : index
    %66 = vector.load %arg10[%c4_86, %c1536_87] : memref<16x2048xf32, #tpu.memory_space<vmem>>, vector<4x128xf32>
    tpu.vector_store %arg10[%c4_86, %c1536_87], %65 {strides = array<i32>} : memref<16x2048xf32, #tpu.memory_space<vmem>>, vector<4x128xf32>,
    %c55 = arith.constant 55 : index
    %c0_88 = arith.constant 0 : index
    %67 = vector.load %arg9[%c55, %c0_88] : memref<104x128xf32, #tpu.memory_space<vmem>>, vector<4x128xf32>
    %c4_89 = arith.constant 4 : index
    %c1664_90 = arith.constant 1664 : index
    %68 = vector.load %arg10[%c4_89, %c1664_90] : memref<16x2048xf32, #tpu.memory_space<vmem>>, vector<4x128xf32>
    tpu.vector_store %arg10[%c4_89, %c1664_90], %67 {strides = array<i32>} : memref<16x2048xf32, #tpu.memory_space<vmem>>, vector<4x128xf32>,
    %c51 = arith.constant 51 : index
    %c0_91 = arith.constant 0 : index
    %69 = vector.load %arg9[%c51, %c0_91] : memref<104x128xf32, #tpu.memory_space<vmem>>, vector<4x128xf32>
    %c4_92 = arith.constant 4 : index
    %c1792_93 = arith.constant 1792 : index
    %70 = vector.load %arg10[%c4_92, %c1792_93] : memref<16x2048xf32, #tpu.memory_space<vmem>>, vector<4x128xf32>
    tpu.vector_store %arg10[%c4_92, %c1792_93], %69 {strides = array<i32>} : memref<16x2048xf32, #tpu.memory_space<vmem>>, vector<4x128xf32>,
    %c56 = arith.constant 56 : index
    %c0_94 = arith.constant 0 : index
    %71 = vector.load %arg9[%c56, %c0_94] : memref<104x128xf32, #tpu.memory_space<vmem>>, vector<4x128xf32>
    %c4_95 = arith.constant 4 : index
    %c1920_96 = arith.constant 1920 : index
    %72 = vector.load %arg10[%c4_95, %c1920_96] : memref<16x2048xf32, #tpu.memory_space<vmem>>, vector<4x128xf32>
    tpu.vector_store %arg10[%c4_95, %c1920_96], %71 {strides = array<i32>} : memref<16x2048xf32, #tpu.memory_space<vmem>>, vector<4x128xf32>,
    %c40_97 = arith.constant 40 : index
    %c0_98 = arith.constant 0 : index
    %73 = vector.load %arg9[%c40_97, %c0_98] : memref<104x128xf32, #tpu.memory_space<vmem>>, vector<4x128xf32>
    %c8 = arith.constant 8 : index
    %c0_99 = arith.constant 0 : index
    %74 = vector.load %arg10[%c8, %c0_99] : memref<16x2048xf32, #tpu.memory_space<vmem>>, vector<4x128xf32>
    tpu.vector_store %arg10[%c8, %c0_99], %73 {strides = array<i32>} : memref<16x2048xf32, #tpu.memory_space<vmem>>, vector<4x128xf32>,
    %c45_100 = arith.constant 45 : index
    %c0_101 = arith.constant 0 : index
    %75 = vector.load %arg9[%c45_100, %c0_101] : memref<104x128xf32, #tpu.memory_space<vmem>>, vector<4x128xf32>
    %c8_102 = arith.constant 8 : index
    %c128_103 = arith.constant 128 : index
    %76 = vector.load %arg10[%c8_102, %c128_103] : memref<16x2048xf32, #tpu.memory_space<vmem>>, vector<4x128xf32>
    tpu.vector_store %arg10[%c8_102, %c128_103], %75 {strides = array<i32>} : memref<16x2048xf32, #tpu.memory_space<vmem>>, vector<4x128xf32>,
    %c41_104 = arith.constant 41 : index
    %c0_105 = arith.constant 0 : index
    %77 = vector.load %arg9[%c41_104, %c0_105] : memref<104x128xf32, #tpu.memory_space<vmem>>, vector<4x128xf32>
    %c8_106 = arith.constant 8 : index
    %c256_107 = arith.constant 256 : index
    %78 = vector.load %arg10[%c8_106, %c256_107] : memref<16x2048xf32, #tpu.memory_space<vmem>>, vector<4x128xf32>
    tpu.vector_store %arg10[%c8_106, %c256_107], %77 {strides = array<i32>} : memref<16x2048xf32, #tpu.memory_space<vmem>>, vector<4x128xf32>,
    %c46_108 = arith.constant 46 : index
    %c0_109 = arith.constant 0 : index
    %79 = vector.load %arg9[%c46_108, %c0_109] : memref<104x128xf32, #tpu.memory_space<vmem>>, vector<4x128xf32>
    %c8_110 = arith.constant 8 : index
    %c384_111 = arith.constant 384 : index
    %80 = vector.load %arg10[%c8_110, %c384_111] : memref<16x2048xf32, #tpu.memory_space<vmem>>, vector<4x128xf32>
    tpu.vector_store %arg10[%c8_110, %c384_111], %79 {strides = array<i32>} : memref<16x2048xf32, #tpu.memory_space<vmem>>, vector<4x128xf32>,
    %c50_112 = arith.constant 50 : index
    %c0_113 = arith.constant 0 : index
    %81 = vector.load %arg9[%c50_112, %c0_113] : memref<104x128xf32, #tpu.memory_space<vmem>>, vector<4x128xf32>
    %c8_114 = arith.constant 8 : index
    %c512_115 = arith.constant 512 : index
    %82 = vector.load %arg10[%c8_114, %c512_115] : memref<16x2048xf32, #tpu.memory_space<vmem>>, vector<4x128xf32>
    tpu.vector_store %arg10[%c8_114, %c512_115], %81 {strides = array<i32>} : memref<16x2048xf32, #tpu.memory_space<vmem>>, vector<4x128xf32>,
    %c55_116 = arith.constant 55 : index
    %c0_117 = arith.constant 0 : index
    %83 = vector.load %arg9[%c55_116, %c0_117] : memref<104x128xf32, #tpu.memory_space<vmem>>, vector<4x128xf32>
    %c8_118 = arith.constant 8 : index
    %c640_119 = arith.constant 640 : index
    %84 = vector.load %arg10[%c8_118, %c640_119] : memref<16x2048xf32, #tpu.memory_space<vmem>>, vector<4x128xf32>
    tpu.vector_store %arg10[%c8_118, %c640_119], %83 {strides = array<i32>} : memref<16x2048xf32, #tpu.memory_space<vmem>>, vector<4x128xf32>,
    %c51_120 = arith.constant 51 : index
    %c0_121 = arith.constant 0 : index
    %85 = vector.load %arg9[%c51_120, %c0_121] : memref<104x128xf32, #tpu.memory_space<vmem>>, vector<4x128xf32>
    %c8_122 = arith.constant 8 : index
    %c768_123 = arith.constant 768 : index
    %86 = vector.load %arg10[%c8_122, %c768_123] : memref<16x2048xf32, #tpu.memory_space<vmem>>, vector<4x128xf32>
    tpu.vector_store %arg10[%c8_122, %c768_123], %85 {strides = array<i32>} : memref<16x2048xf32, #tpu.memory_space<vmem>>, vector<4x128xf32>,
    %c56_124 = arith.constant 56 : index
    %c0_125 = arith.constant 0 : index
    %87 = vector.load %arg9[%c56_124, %c0_125] : memref<104x128xf32, #tpu.memory_space<vmem>>, vector<4x128xf32>
    %c8_126 = arith.constant 8 : index
    %c896_127 = arith.constant 896 : index
    %88 = vector.load %arg10[%c8_126, %c896_127] : memref<16x2048xf32, #tpu.memory_space<vmem>>, vector<4x128xf32>
    tpu.vector_store %arg10[%c8_126, %c896_127], %87 {strides = array<i32>} : memref<16x2048xf32, #tpu.memory_space<vmem>>, vector<4x128xf32>,
    %c60 = arith.constant 60 : index
    %c0_128 = arith.constant 0 : index
    %89 = vector.load %arg9[%c60, %c0_128] : memref<104x128xf32, #tpu.memory_space<vmem>>, vector<4x128xf32>
    %c8_129 = arith.constant 8 : index
    %c1024_130 = arith.constant 1024 : index
    %90 = vector.load %arg10[%c8_129, %c1024_130] : memref<16x2048xf32, #tpu.memory_space<vmem>>, vector<4x128xf32>
    tpu.vector_store %arg10[%c8_129, %c1024_130], %89 {strides = array<i32>} : memref<16x2048xf32, #tpu.memory_space<vmem>>, vector<4x128xf32>,
    %c65 = arith.constant 65 : index
    %c0_131 = arith.constant 0 : index
    %91 = vector.load %arg9[%c65, %c0_131] : memref<104x128xf32, #tpu.memory_space<vmem>>, vector<4x128xf32>
    %c8_132 = arith.constant 8 : index
    %c1152_133 = arith.constant 1152 : index
    %92 = vector.load %arg10[%c8_132, %c1152_133] : memref<16x2048xf32, #tpu.memory_space<vmem>>, vector<4x128xf32>
    tpu.vector_store %arg10[%c8_132, %c1152_133], %91 {strides = array<i32>} : memref<16x2048xf32, #tpu.memory_space<vmem>>, vector<4x128xf32>,
    %c61 = arith.constant 61 : index
    %c0_134 = arith.constant 0 : index
    %93 = vector.load %arg9[%c61, %c0_134] : memref<104x128xf32, #tpu.memory_space<vmem>>, vector<4x128xf32>
    %c8_135 = arith.constant 8 : index
    %c1280_136 = arith.constant 1280 : index
    %94 = vector.load %arg10[%c8_135, %c1280_136] : memref<16x2048xf32, #tpu.memory_space<vmem>>, vector<4x128xf32>
    tpu.vector_store %arg10[%c8_135, %c1280_136], %93 {strides = array<i32>} : memref<16x2048xf32, #tpu.memory_space<vmem>>, vector<4x128xf32>,
    %c66 = arith.constant 66 : index
    %c0_137 = arith.constant 0 : index
    %95 = vector.load %arg9[%c66, %c0_137] : memref<104x128xf32, #tpu.memory_space<vmem>>, vector<4x128xf32>
    %c8_138 = arith.constant 8 : index
    %c1408_139 = arith.constant 1408 : index
    %96 = vector.load %arg10[%c8_138, %c1408_139] : memref<16x2048xf32, #tpu.memory_space<vmem>>, vector<4x128xf32>
    tpu.vector_store %arg10[%c8_138, %c1408_139], %95 {strides = array<i32>} : memref<16x2048xf32, #tpu.memory_space<vmem>>, vector<4x128xf32>,
    %c70 = arith.constant 70 : index
    %c0_140 = arith.constant 0 : index
    %97 = vector.load %arg9[%c70, %c0_140] : memref<104x128xf32, #tpu.memory_space<vmem>>, vector<4x128xf32>
    %c8_141 = arith.constant 8 : index
    %c1536_142 = arith.constant 1536 : index
    %98 = vector.load %arg10[%c8_141, %c1536_142] : memref<16x2048xf32, #tpu.memory_space<vmem>>, vector<4x128xf32>
    tpu.vector_store %arg10[%c8_141, %c1536_142], %97 {strides = array<i32>} : memref<16x2048xf32, #tpu.memory_space<vmem>>, vector<4x128xf32>,
    %c75 = arith.constant 75 : index
    %c0_143 = arith.constant 0 : index
    %99 = vector.load %arg9[%c75, %c0_143] : memref<104x128xf32, #tpu.memory_space<vmem>>, vector<4x128xf32>
    %c8_144 = arith.constant 8 : index
    %c1664_145 = arith.constant 1664 : index
    %100 = vector.load %arg10[%c8_144, %c1664_145] : memref<16x2048xf32, #tpu.memory_space<vmem>>, vector<4x128xf32>
    tpu.vector_store %arg10[%c8_144, %c1664_145], %99 {strides = array<i32>} : memref<16x2048xf32, #tpu.memory_space<vmem>>, vector<4x128xf32>,
    %c71 = arith.constant 71 : index
    %c0_146 = arith.constant 0 : index
    %101 = vector.load %arg9[%c71, %c0_146] : memref<104x128xf32, #tpu.memory_space<vmem>>, vector<4x128xf32>
    %c8_147 = arith.constant 8 : index
    %c1792_148 = arith.constant 1792 : index
    %102 = vector.load %arg10[%c8_147, %c1792_148] : memref<16x2048xf32, #tpu.memory_space<vmem>>, vector<4x128xf32>
    tpu.vector_store %arg10[%c8_147, %c1792_148], %101 {strides = array<i32>} : memref<16x2048xf32, #tpu.memory_space<vmem>>, vector<4x128xf32>,
    %c76 = arith.constant 76 : index
    %c0_149 = arith.constant 0 : index
    %103 = vector.load %arg9[%c76, %c0_149] : memref<104x128xf32, #tpu.memory_space<vmem>>, vector<4x128xf32>
    %c8_150 = arith.constant 8 : index
    %c1920_151 = arith.constant 1920 : index
    %104 = vector.load %arg10[%c8_150, %c1920_151] : memref<16x2048xf32, #tpu.memory_space<vmem>>, vector<4x128xf32>
    tpu.vector_store %arg10[%c8_150, %c1920_151], %103 {strides = array<i32>} : memref<16x2048xf32, #tpu.memory_space<vmem>>, vector<4x128xf32>,
    %c60_152 = arith.constant 60 : index
    %c0_153 = arith.constant 0 : index
    %105 = vector.load %arg9[%c60_152, %c0_153] : memref<104x128xf32, #tpu.memory_space<vmem>>, vector<4x128xf32>
    %c12 = arith.constant 12 : index
    %c0_154 = arith.constant 0 : index
    %106 = vector.load %arg10[%c12, %c0_154] : memref<16x2048xf32, #tpu.memory_space<vmem>>, vector<4x128xf32>
    tpu.vector_store %arg10[%c12, %c0_154], %105 {strides = array<i32>} : memref<16x2048xf32, #tpu.memory_space<vmem>>, vector<4x128xf32>,
    %c65_155 = arith.constant 65 : index
    %c0_156 = arith.constant 0 : index
    %107 = vector.load %arg9[%c65_155, %c0_156] : memref<104x128xf32, #tpu.memory_space<vmem>>, vector<4x128xf32>
    %c12_157 = arith.constant 12 : index
    %c128_158 = arith.constant 128 : index
    %108 = vector.load %arg10[%c12_157, %c128_158] : memref<16x2048xf32, #tpu.memory_space<vmem>>, vector<4x128xf32>
    tpu.vector_store %arg10[%c12_157, %c128_158], %107 {strides = array<i32>} : memref<16x2048xf32, #tpu.memory_space<vmem>>, vector<4x128xf32>,
    %c61_159 = arith.constant 61 : index
    %c0_160 = arith.constant 0 : index
    %109 = vector.load %arg9[%c61_159, %c0_160] : memref<104x128xf32, #tpu.memory_space<vmem>>, vector<4x128xf32>
    %c12_161 = arith.constant 12 : index
    %c256_162 = arith.constant 256 : index
    %110 = vector.load %arg10[%c12_161, %c256_162] : memref<16x2048xf32, #tpu.memory_space<vmem>>, vector<4x128xf32>
    tpu.vector_store %arg10[%c12_161, %c256_162], %109 {strides = array<i32>} : memref<16x2048xf32, #tpu.memory_space<vmem>>, vector<4x128xf32>,
    %c66_163 = arith.constant 66 : index
    %c0_164 = arith.constant 0 : index
    %111 = vector.load %arg9[%c66_163, %c0_164] : memref<104x128xf32, #tpu.memory_space<vmem>>, vector<4x128xf32>
    %c12_165 = arith.constant 12 : index
    %c384_166 = arith.constant 384 : index
    %112 = vector.load %arg10[%c12_165, %c384_166] : memref<16x2048xf32, #tpu.memory_space<vmem>>, vector<4x128xf32>
    tpu.vector_store %arg10[%c12_165, %c384_166], %111 {strides = array<i32>} : memref<16x2048xf32, #tpu.memory_space<vmem>>, vector<4x128xf32>,
    %c70_167 = arith.constant 70 : index
    %c0_168 = arith.constant 0 : index
    %113 = vector.load %arg9[%c70_167, %c0_168] : memref<104x128xf32, #tpu.memory_space<vmem>>, vector<4x128xf32>
    %c12_169 = arith.constant 12 : index
    %c512_170 = arith.constant 512 : index
    %114 = vector.load %arg10[%c12_169, %c512_170] : memref<16x2048xf32, #tpu.memory_space<vmem>>, vector<4x128xf32>
    tpu.vector_store %arg10[%c12_169, %c512_170], %113 {strides = array<i32>} : memref<16x2048xf32, #tpu.memory_space<vmem>>, vector<4x128xf32>,
    %c75_171 = arith.constant 75 : index
    %c0_172 = arith.constant 0 : index
    %115 = vector.load %arg9[%c75_171, %c0_172] : memref<104x128xf32, #tpu.memory_space<vmem>>, vector<4x128xf32>
    %c12_173 = arith.constant 12 : index
    %c640_174 = arith.constant 640 : index
    %116 = vector.load %arg10[%c12_173, %c640_174] : memref<16x2048xf32, #tpu.memory_space<vmem>>, vector<4x128xf32>
    tpu.vector_store %arg10[%c12_173, %c640_174], %115 {strides = array<i32>} : memref<16x2048xf32, #tpu.memory_space<vmem>>, vector<4x128xf32>,
    %c71_175 = arith.constant 71 : index
    %c0_176 = arith.constant 0 : index
    %117 = vector.load %arg9[%c71_175, %c0_176] : memref<104x128xf32, #tpu.memory_space<vmem>>, vector<4x128xf32>
    %c12_177 = arith.constant 12 : index
    %c768_178 = arith.constant 768 : index
    %118 = vector.load %arg10[%c12_177, %c768_178] : memref<16x2048xf32, #tpu.memory_space<vmem>>, vector<4x128xf32>
    tpu.vector_store %arg10[%c12_177, %c768_178], %117 {strides = array<i32>} : memref<16x2048xf32, #tpu.memory_space<vmem>>, vector<4x128xf32>,
    %c76_179 = arith.constant 76 : index
    %c0_180 = arith.constant 0 : index
    %119 = vector.load %arg9[%c76_179, %c0_180] : memref<104x128xf32, #tpu.memory_space<vmem>>, vector<4x128xf32>
    %c12_181 = arith.constant 12 : index
    %c896_182 = arith.constant 896 : index
    %120 = vector.load %arg10[%c12_181, %c896_182] : memref<16x2048xf32, #tpu.memory_space<vmem>>, vector<4x128xf32>
    tpu.vector_store %arg10[%c12_181, %c896_182], %119 {strides = array<i32>} : memref<16x2048xf32, #tpu.memory_space<vmem>>, vector<4x128xf32>,
    %c80 = arith.constant 80 : index
    %c0_183 = arith.constant 0 : index
    %121 = vector.load %arg9[%c80, %c0_183] : memref<104x128xf32, #tpu.memory_space<vmem>>, vector<4x128xf32>
    %c12_184 = arith.constant 12 : index
    %c1024_185 = arith.constant 1024 : index
    %122 = vector.load %arg10[%c12_184, %c1024_185] : memref<16x2048xf32, #tpu.memory_space<vmem>>, vector<4x128xf32>
    tpu.vector_store %arg10[%c12_184, %c1024_185], %121 {strides = array<i32>} : memref<16x2048xf32, #tpu.memory_space<vmem>>, vector<4x128xf32>,
    %c85 = arith.constant 85 : index
    %c0_186 = arith.constant 0 : index
    %123 = vector.load %arg9[%c85, %c0_186] : memref<104x128xf32, #tpu.memory_space<vmem>>, vector<4x128xf32>
    %c12_187 = arith.constant 12 : index
    %c1152_188 = arith.constant 1152 : index
    %124 = vector.load %arg10[%c12_187, %c1152_188] : memref<16x2048xf32, #tpu.memory_space<vmem>>, vector<4x128xf32>
    tpu.vector_store %arg10[%c12_187, %c1152_188], %123 {strides = array<i32>} : memref<16x2048xf32, #tpu.memory_space<vmem>>, vector<4x128xf32>,
    %c81 = arith.constant 81 : index
    %c0_189 = arith.constant 0 : index
    %125 = vector.load %arg9[%c81, %c0_189] : memref<104x128xf32, #tpu.memory_space<vmem>>, vector<4x128xf32>
    %c12_190 = arith.constant 12 : index
    %c1280_191 = arith.constant 1280 : index
    %126 = vector.load %arg10[%c12_190, %c1280_191] : memref<16x2048xf32, #tpu.memory_space<vmem>>, vector<4x128xf32>
    tpu.vector_store %arg10[%c12_190, %c1280_191], %125 {strides = array<i32>} : memref<16x2048xf32, #tpu.memory_space<vmem>>, vector<4x128xf32>,
    %c86 = arith.constant 86 : index
    %c0_192 = arith.constant 0 : index
    %127 = vector.load %arg9[%c86, %c0_192] : memref<104x128xf32, #tpu.memory_space<vmem>>, vector<4x128xf32>
    %c12_193 = arith.constant 12 : index
    %c1408_194 = arith.constant 1408 : index
    %128 = vector.load %arg10[%c12_193, %c1408_194] : memref<16x2048xf32, #tpu.memory_space<vmem>>, vector<4x128xf32>
    tpu.vector_store %arg10[%c12_193, %c1408_194], %127 {strides = array<i32>} : memref<16x2048xf32, #tpu.memory_space<vmem>>, vector<4x128xf32>,
    %c90 = arith.constant 90 : index
    %c0_195 = arith.constant 0 : index
    %129 = vector.load %arg9[%c90, %c0_195] : memref<104x128xf32, #tpu.memory_space<vmem>>, vector<4x128xf32>
    %c12_196 = arith.constant 12 : index
    %c1536_197 = arith.constant 1536 : index
    %130 = vector.load %arg10[%c12_196, %c1536_197] : memref<16x2048xf32, #tpu.memory_space<vmem>>, vector<4x128xf32>
    tpu.vector_store %arg10[%c12_196, %c1536_197], %129 {strides = array<i32>} : memref<16x2048xf32, #tpu.memory_space<vmem>>, vector<4x128xf32>,
    %c95 = arith.constant 95 : index
    %c0_198 = arith.constant 0 : index
    %131 = vector.load %arg9[%c95, %c0_198] : memref<104x128xf32, #tpu.memory_space<vmem>>, vector<4x128xf32>
    %c12_199 = arith.constant 12 : index
    %c1664_200 = arith.constant 1664 : index
    %132 = vector.load %arg10[%c12_199, %c1664_200] : memref<16x2048xf32, #tpu.memory_space<vmem>>, vector<4x128xf32>
    tpu.vector_store %arg10[%c12_199, %c1664_200], %131 {strides = array<i32>} : memref<16x2048xf32, #tpu.memory_space<vmem>>, vector<4x128xf32>,
    %c91 = arith.constant 91 : index
    %c0_201 = arith.constant 0 : index
    %133 = vector.load %arg9[%c91, %c0_201] : memref<104x128xf32, #tpu.memory_space<vmem>>, vector<4x128xf32>
    %c12_202 = arith.constant 12 : index
    %c1792_203 = arith.constant 1792 : index
    %134 = vector.load %arg10[%c12_202, %c1792_203] : memref<16x2048xf32, #tpu.memory_space<vmem>>, vector<4x128xf32>
    tpu.vector_store %arg10[%c12_202, %c1792_203], %133 {strides = array<i32>} : memref<16x2048xf32, #tpu.memory_space<vmem>>, vector<4x128xf32>,
    %c96 = arith.constant 96 : index
    %c0_204 = arith.constant 0 : index
    %135 = vector.load %arg9[%c96, %c0_204] : memref<104x128xf32, #tpu.memory_space<vmem>>, vector<4x128xf32>
    %c12_205 = arith.constant 12 : index
    %c1920_206 = arith.constant 1920 : index
    %136 = vector.load %arg10[%c12_205, %c1920_206] : memref<16x2048xf32, #tpu.memory_space<vmem>>, vector<4x128xf32>
    tpu.vector_store %arg10[%c12_205, %c1920_206], %135 {strides = array<i32>} : memref<16x2048xf32, #tpu.memory_space<vmem>>, vector<4x128xf32>,
    %c0_207 = arith.constant 0 : index
    %c0_208 = arith.constant 0 : index
    %137 = vector.load %arg10[%c0_207, %c0_208] : memref<16x2048xf32, #tpu.memory_space<vmem>>, vector<16x2048xf32>
    %c0_209 = arith.constant 0 : index
    %c0_210 = arith.constant 0 : index
    %138 = vector.load %arg4[%c0_209, %c0_210] : memref<2048x128xf32, #tpu.memory_space<vmem>>, vector<2048x128xf32>
    %cst_211 = arith.constant dense<0.000000e+00> : vector<16x128xf32>
    %139 = tpu.matmul %137, %138, %cst_211 {dimension_numbers = #tpu.dot_dimension_numbers<[1], [0], [0], [1], [0, 0, 1, 1], [], []>} : vector<16x2048xf32>, vector<2048x128xf32>, vector<16x128xf32> -> vector<16x128xf32>
    %c0_212 = arith.constant 0 : index
    %c0_213 = arith.constant 0 : index
    %140 = vector.load %arg5[%c0_212, %c0_213] : memref<1x128xf32, #tpu.memory_space<vmem>>, vector<1x128xf32>
    %141 = vector.broadcast %140 : vector<1x128xf32> to vector<16x128xf32>
    %142 = arith.addf %139, %141 : vector<16x128xf32>
    %cst_214 = arith.constant 0.000000e+00 : f32
    %143 = vector.broadcast %cst_214 : f32 to vector<16x128xf32>
    %144 = arith.maximumf %142, %143 : vector<16x128xf32>
    %c0_215 = arith.constant 0 : index
    %c0_216 = arith.constant 0 : index
    %145 = vector.load %arg11[%c0_215, %c0_216] : memref<16x128xf32, #tpu.memory_space<vmem>>, vector<16x128xf32>
    tpu.vector_store %arg11[%c0_215, %c0_216], %144 {strides = array<i32>} : memref<16x128xf32, #tpu.memory_space<vmem>>, vector<16x128xf32>,
    %c0_217 = arith.constant 0 : index
    %c0_218 = arith.constant 0 : index
    %146 = vector.load %arg11[%c0_217, %c0_218] : memref<16x128xf32, #tpu.memory_space<vmem>>, vector<2x128xf32>
    %c0_219 = arith.constant 0 : index
    %c0_220 = arith.constant 0 : index
    %147 = vector.load %arg12[%c0_219, %c0_220] : memref<8x1152xf32, #tpu.memory_space<vmem>>, vector<2x128xf32>
    tpu.vector_store %arg12[%c0_219, %c0_220], %146 {strides = array<i32>} : memref<8x1152xf32, #tpu.memory_space<vmem>>, vector<2x128xf32>,
    %c1_221 = arith.constant 1 : index
    %c0_222 = arith.constant 0 : index
    %148 = vector.load %arg11[%c1_221, %c0_222] : memref<16x128xf32, #tpu.memory_space<vmem>>, vector<2x128xf32>
    %c0_223 = arith.constant 0 : index
    %c128_224 = arith.constant 128 : index
    %149 = vector.load %arg12[%c0_223, %c128_224] : memref<8x1152xf32, #tpu.memory_space<vmem>>, vector<2x128xf32>
    tpu.vector_store %arg12[%c0_223, %c128_224], %148 {strides = array<i32>} : memref<8x1152xf32, #tpu.memory_space<vmem>>, vector<2x128xf32>,
    %c2 = arith.constant 2 : index
    %c0_225 = arith.constant 0 : index
    %150 = vector.load %arg11[%c2, %c0_225] : memref<16x128xf32, #tpu.memory_space<vmem>>, vector<2x128xf32>
    %c0_226 = arith.constant 0 : index
    %c256_227 = arith.constant 256 : index
    %151 = vector.load %arg12[%c0_226, %c256_227] : memref<8x1152xf32, #tpu.memory_space<vmem>>, vector<2x128xf32>
    tpu.vector_store %arg12[%c0_226, %c256_227], %150 {strides = array<i32>} : memref<8x1152xf32, #tpu.memory_space<vmem>>, vector<2x128xf32>,
    %c4_228 = arith.constant 4 : index
    %c0_229 = arith.constant 0 : index
    %152 = vector.load %arg11[%c4_228, %c0_229] : memref<16x128xf32, #tpu.memory_space<vmem>>, vector<2x128xf32>
    %c0_230 = arith.constant 0 : index
    %c384_231 = arith.constant 384 : index
    %153 = vector.load %arg12[%c0_230, %c384_231] : memref<8x1152xf32, #tpu.memory_space<vmem>>, vector<2x128xf32>
    tpu.vector_store %arg12[%c0_230, %c384_231], %152 {strides = array<i32>} : memref<8x1152xf32, #tpu.memory_space<vmem>>, vector<2x128xf32>,
    %c5_232 = arith.constant 5 : index
    %c0_233 = arith.constant 0 : index
    %154 = vector.load %arg11[%c5_232, %c0_233] : memref<16x128xf32, #tpu.memory_space<vmem>>, vector<2x128xf32>
    %c0_234 = arith.constant 0 : index
    %c512_235 = arith.constant 512 : index
    %155 = vector.load %arg12[%c0_234, %c512_235] : memref<8x1152xf32, #tpu.memory_space<vmem>>, vector<2x128xf32>
    tpu.vector_store %arg12[%c0_234, %c512_235], %154 {strides = array<i32>} : memref<8x1152xf32, #tpu.memory_space<vmem>>, vector<2x128xf32>,
    %c6_236 = arith.constant 6 : index
    %c0_237 = arith.constant 0 : index
    %156 = vector.load %arg11[%c6_236, %c0_237] : memref<16x128xf32, #tpu.memory_space<vmem>>, vector<2x128xf32>
    %c0_238 = arith.constant 0 : index
    %c640_239 = arith.constant 640 : index
    %157 = vector.load %arg12[%c0_238, %c640_239] : memref<8x1152xf32, #tpu.memory_space<vmem>>, vector<2x128xf32>
    tpu.vector_store %arg12[%c0_238, %c640_239], %156 {strides = array<i32>} : memref<8x1152xf32, #tpu.memory_space<vmem>>, vector<2x128xf32>,
    %c8_240 = arith.constant 8 : index
    %c0_241 = arith.constant 0 : index
    %158 = vector.load %arg11[%c8_240, %c0_241] : memref<16x128xf32, #tpu.memory_space<vmem>>, vector<2x128xf32>
    %c0_242 = arith.constant 0 : index
    %c768_243 = arith.constant 768 : index
    %159 = vector.load %arg12[%c0_242, %c768_243] : memref<8x1152xf32, #tpu.memory_space<vmem>>, vector<2x128xf32>
    tpu.vector_store %arg12[%c0_242, %c768_243], %158 {strides = array<i32>} : memref<8x1152xf32, #tpu.memory_space<vmem>>, vector<2x128xf32>,
    %c9 = arith.constant 9 : index
    %c0_244 = arith.constant 0 : index
    %160 = vector.load %arg11[%c9, %c0_244] : memref<16x128xf32, #tpu.memory_space<vmem>>, vector<2x128xf32>
    %c0_245 = arith.constant 0 : index
    %c896_246 = arith.constant 896 : index
    %161 = vector.load %arg12[%c0_245, %c896_246] : memref<8x1152xf32, #tpu.memory_space<vmem>>, vector<2x128xf32>
    tpu.vector_store %arg12[%c0_245, %c896_246], %160 {strides = array<i32>} : memref<8x1152xf32, #tpu.memory_space<vmem>>, vector<2x128xf32>,
    %c10_247 = arith.constant 10 : index
    %c0_248 = arith.constant 0 : index
    %162 = vector.load %arg11[%c10_247, %c0_248] : memref<16x128xf32, #tpu.memory_space<vmem>>, vector<2x128xf32>
    %c0_249 = arith.constant 0 : index
    %c1024_250 = arith.constant 1024 : index
    %163 = vector.load %arg12[%c0_249, %c1024_250] : memref<8x1152xf32, #tpu.memory_space<vmem>>, vector<2x128xf32>
    tpu.vector_store %arg12[%c0_249, %c1024_250], %162 {strides = array<i32>} : memref<8x1152xf32, #tpu.memory_space<vmem>>, vector<2x128xf32>,
    %c4_251 = arith.constant 4 : index
    %c0_252 = arith.constant 0 : index
    %164 = vector.load %arg11[%c4_251, %c0_252] : memref<16x128xf32, #tpu.memory_space<vmem>>, vector<2x128xf32>
    %c2_253 = arith.constant 2 : index
    %c0_254 = arith.constant 0 : index
    %165 = vector.load %arg12[%c2_253, %c0_254] : memref<8x1152xf32, #tpu.memory_space<vmem>>, vector<2x128xf32>
    tpu.vector_store %arg12[%c2_253, %c0_254], %164 {strides = array<i32>} : memref<8x1152xf32, #tpu.memory_space<vmem>>, vector<2x128xf32>,
    %c5_255 = arith.constant 5 : index
    %c0_256 = arith.constant 0 : index
    %166 = vector.load %arg11[%c5_255, %c0_256] : memref<16x128xf32, #tpu.memory_space<vmem>>, vector<2x128xf32>
    %c2_257 = arith.constant 2 : index
    %c128_258 = arith.constant 128 : index
    %167 = vector.load %arg12[%c2_257, %c128_258] : memref<8x1152xf32, #tpu.memory_space<vmem>>, vector<2x128xf32>
    tpu.vector_store %arg12[%c2_257, %c128_258], %166 {strides = array<i32>} : memref<8x1152xf32, #tpu.memory_space<vmem>>, vector<2x128xf32>,
    %c6_259 = arith.constant 6 : index
    %c0_260 = arith.constant 0 : index
    %168 = vector.load %arg11[%c6_259, %c0_260] : memref<16x128xf32, #tpu.memory_space<vmem>>, vector<2x128xf32>
    %c2_261 = arith.constant 2 : index
    %c256_262 = arith.constant 256 : index
    %169 = vector.load %arg12[%c2_261, %c256_262] : memref<8x1152xf32, #tpu.memory_space<vmem>>, vector<2x128xf32>
    tpu.vector_store %arg12[%c2_261, %c256_262], %168 {strides = array<i32>} : memref<8x1152xf32, #tpu.memory_space<vmem>>, vector<2x128xf32>,
    %c8_263 = arith.constant 8 : index
    %c0_264 = arith.constant 0 : index
    %170 = vector.load %arg11[%c8_263, %c0_264] : memref<16x128xf32, #tpu.memory_space<vmem>>, vector<2x128xf32>
    %c2_265 = arith.constant 2 : index
    %c384_266 = arith.constant 384 : index
    %171 = vector.load %arg12[%c2_265, %c384_266] : memref<8x1152xf32, #tpu.memory_space<vmem>>, vector<2x128xf32>
    tpu.vector_store %arg12[%c2_265, %c384_266], %170 {strides = array<i32>} : memref<8x1152xf32, #tpu.memory_space<vmem>>, vector<2x128xf32>,
    %c9_267 = arith.constant 9 : index
    %c0_268 = arith.constant 0 : index
    %172 = vector.load %arg11[%c9_267, %c0_268] : memref<16x128xf32, #tpu.memory_space<vmem>>, vector<2x128xf32>
    %c2_269 = arith.constant 2 : index
    %c512_270 = arith.constant 512 : index
    %173 = vector.load %arg12[%c2_269, %c512_270] : memref<8x1152xf32, #tpu.memory_space<vmem>>, vector<2x128xf32>
    tpu.vector_store %arg12[%c2_269, %c512_270], %172 {strides = array<i32>} : memref<8x1152xf32, #tpu.memory_space<vmem>>, vector<2x128xf32>,
    %c10_271 = arith.constant 10 : index
    %c0_272 = arith.constant 0 : index
    %174 = vector.load %arg11[%c10_271, %c0_272] : memref<16x128xf32, #tpu.memory_space<vmem>>, vector<2x128xf32>
    %c2_273 = arith.constant 2 : index
    %c640_274 = arith.constant 640 : index
    %175 = vector.load %arg12[%c2_273, %c640_274] : memref<8x1152xf32, #tpu.memory_space<vmem>>, vector<2x128xf32>
    tpu.vector_store %arg12[%c2_273, %c640_274], %174 {strides = array<i32>} : memref<8x1152xf32, #tpu.memory_space<vmem>>, vector<2x128xf32>,
    %c12_275 = arith.constant 12 : index
    %c0_276 = arith.constant 0 : index
    %176 = vector.load %arg11[%c12_275, %c0_276] : memref<16x128xf32, #tpu.memory_space<vmem>>, vector<2x128xf32>
    %c2_277 = arith.constant 2 : index
    %c768_278 = arith.constant 768 : index
    %177 = vector.load %arg12[%c2_277, %c768_278] : memref<8x1152xf32, #tpu.memory_space<vmem>>, vector<2x128xf32>
    tpu.vector_store %arg12[%c2_277, %c768_278], %176 {strides = array<i32>} : memref<8x1152xf32, #tpu.memory_space<vmem>>, vector<2x128xf32>,
    %c13 = arith.constant 13 : index
    %c0_279 = arith.constant 0 : index
    %178 = vector.load %arg11[%c13, %c0_279] : memref<16x128xf32, #tpu.memory_space<vmem>>, vector<2x128xf32>
    %c2_280 = arith.constant 2 : index
    %c896_281 = arith.constant 896 : index
    %179 = vector.load %arg12[%c2_280, %c896_281] : memref<8x1152xf32, #tpu.memory_space<vmem>>, vector<2x128xf32>
    tpu.vector_store %arg12[%c2_280, %c896_281], %178 {strides = array<i32>} : memref<8x1152xf32, #tpu.memory_space<vmem>>, vector<2x128xf32>,
    %c14 = arith.constant 14 : index
    %c0_282 = arith.constant 0 : index
    %180 = vector.load %arg11[%c14, %c0_282] : memref<16x128xf32, #tpu.memory_space<vmem>>, vector<2x128xf32>
    %c2_283 = arith.constant 2 : index
    %c1024_284 = arith.constant 1024 : index
    %181 = vector.load %arg12[%c2_283, %c1024_284] : memref<8x1152xf32, #tpu.memory_space<vmem>>, vector<2x128xf32>
    tpu.vector_store %arg12[%c2_283, %c1024_284], %180 {strides = array<i32>} : memref<8x1152xf32, #tpu.memory_space<vmem>>, vector<2x128xf32>,
    %cst_285 = arith.constant 0.000000e+00 : f32
    %182 = vector.broadcast %cst_285 : f32 to vector<4x1152xf32>
    %c4_286 = arith.constant 4 : index
    %c0_287 = arith.constant 0 : index
    %183 = vector.load %arg12[%c4_286, %c0_287] : memref<8x1152xf32, #tpu.memory_space<vmem>>, vector<4x1152xf32>
    tpu.vector_store %arg12[%c4_286, %c0_287], %182 {strides = array<i32>} : memref<8x1152xf32, #tpu.memory_space<vmem>>, vector<4x1152xf32>,
    %c0_288 = arith.constant 0 : index
    %c0_289 = arith.constant 0 : index
    %184 = vector.load %arg12[%c0_288, %c0_289] : memref<8x1152xf32, #tpu.memory_space<vmem>>, vector<8x1152xf32>
    %c0_290 = arith.constant 0 : index
    %c0_291 = arith.constant 0 : index
    %185 = vector.load %arg6[%c0_290, %c0_291] : memref<1152x128xf32, #tpu.memory_space<vmem>>, vector<1152x128xf32>
    %cst_292 = arith.constant dense<0.000000e+00> : vector<8x128xf32>
    %186 = tpu.matmul %184, %185, %cst_292 {dimension_numbers = #tpu.dot_dimension_numbers<[1], [0], [0], [1], [0, 0, 1, 1], [], []>} : vector<8x1152xf32>, vector<1152x128xf32>, vector<8x128xf32> -> vector<8x128xf32>
    %c0_293 = arith.constant 0 : index
    %c0_294 = arith.constant 0 : index
    %187 = vector.load %arg7[%c0_293, %c0_294] : memref<1x128xf32, #tpu.memory_space<vmem>>, vector<1x128xf32>
    %188 = vector.broadcast %187 : vector<1x128xf32> to vector<8x128xf32>
    %189 = arith.addf %186, %188 : vector<8x128xf32>
    %cst_295 = arith.constant 0.000000e+00 : f32
    %190 = vector.broadcast %cst_295 : f32 to vector<8x128xf32>
    %191 = arith.maximumf %189, %190 : vector<8x128xf32>
    %c0_296 = arith.constant 0 : index
    %c0_297 = arith.constant 0 : index
    %192 = vector.load %arg8[%c0_296, %c0_297] : memref<8x128xf32, #tpu.memory_space<vmem>>, vector<8x128xf32>
    tpu.vector_store %arg8[%c0_296, %c0_297], %191 {strides = array<i32>} : memref<8x128xf32, #tpu.memory_space<vmem>>, vector<8x128xf32>,
    return
  }
  func.func @transform_0(%arg0: i32) -> (i32, i32) {
    %c0_i32 = arith.constant 0 : i32
    %c0_i32_0 = arith.constant 0 : i32
    return %arg0, %c0_i32 : i32, i32
  }
  func.func @transform_1(%arg0: i32) -> (i32, i32) {
    %c0_i32 = arith.constant 0 : i32
    %c0_i32_0 = arith.constant 0 : i32
    %c0_i32_1 = arith.constant 0 : i32
    return %c0_i32, %c0_i32_0 : i32, i32
  }
  func.func @transform_2(%arg0: i32) -> (i32, i32) {
    %c0_i32 = arith.constant 0 : i32
    %c0_i32_0 = arith.constant 0 : i32
    %c0_i32_1 = arith.constant 0 : i32
    return %c0_i32, %c0_i32_0 : i32, i32
  }
  func.func @transform_3(%arg0: i32) -> (i32, i32) {
    %c0_i32 = arith.constant 0 : i32
    %c0_i32_0 = arith.constant 0 : i32
    %c0_i32_1 = arith.constant 0 : i32
    return %c0_i32, %c0_i32_0 : i32, i32
  }
  func.func @transform_4(%arg0: i32) -> (i32, i32) {
    %c0_i32 = arith.constant 0 : i32
    %c0_i32_0 = arith.constant 0 : i32
    %c0_i32_1 = arith.constant 0 : i32
    return %c0_i32, %c0_i32_0 : i32, i32
  }
  func.func @transform_5(%arg0: i32) -> (i32, i32) {
    %c0_i32 = arith.constant 0 : i32
    %c0_i32_0 = arith.constant 0 : i32
    %c0_i32_1 = arith.constant 0 : i32
    return %c0_i32, %c0_i32_0 : i32, i32
  }
  func.func @transform_6(%arg0: i32) -> (i32, i32) {
    %c0_i32 = arith.constant 0 : i32
    %c0_i32_0 = arith.constant 0 : i32
    %c0_i32_1 = arith.constant 0 : i32
    return %c0_i32, %c0_i32_0 : i32, i32
  }
  func.func @transform_7(%arg0: i32) -> (i32, i32) {
    %c0_i32 = arith.constant 0 : i32
    %c0_i32_0 = arith.constant 0 : i32
    return %arg0, %c0_i32 : i32, i32
  }
}

</mosaic_0001>

<bundles_post_ra>
// kernel: cnn_forward.1
= control target key start
LH: loop header
LB: loop body
LE: loop exit
PB: predicated region body
PF: predicated region fallthrough
CT: control target
= control target key end

     0   :  { %s2899_s24 = smov 0   ;;  %s4277_s0 = inlined_call_operand.vmem [shape: f32[208,128], index: 0, kind: input, shape index: {}]   ;;  %s4278_s1 = inlined_call_operand.vmem [shape: f32[128,128], index: 1, kind: input, shape index: {}]   ;;  %s4279_s2 = inlined_call_operand.vmem [shape: f32[1,128], index: 2, kind: input, shape index: {}]   ;;  %s4280_s3 = inlined_call_operand.vmem [shape: f32[2048,128], index: 3, kind: input, shape index: {}]   ;;  %s4281_s4 = inlined_call_operand.vmem [shape: f32[1,128], index: 4, kind: input, shape index: {}]   ;;  %s4282_s5 = inlined_call_operand.vmem [shape: f32[1152,128], index: 5, kind: input, shape index: {}]   ;;  %s4283_s6 = inlined_call_operand.vmem [shape: f32[1,128], index: 6, kind: input, shape index: {}]   ;;  %s4284_s7 = inlined_call_operand.vmem [shape: f32[16,128], index: 7, kind: output, shape index: {}]  }
   0x1 LB: > { %s2905_s25 = sadd.s32 4294967295, %s2855_s24   ;;  %p2235_p0 = scmp.ge.s32.totalorder %s2855_s24, 1  ;;  %s2855_s24 = sphi %s2899_s24, %s17_s24  }
   0x2   : > { %p238_p1 = scmp.lt.s32.totalorder %s2855_s24, 3 }
   0x4   : > { %p239_p2 = pnand %p2235_p0, %p238_p1 }
   0x5   : > { %s269_s17 = smul.u32 (!%p239_p2), 13, %s2905_s25  ;;  %p275_p4 = scmp.lt.s32.totalorder (!%p239_p2), %s2905_s25, 1 }
   0x6   : > { %242 = sbr.rel (%p239_p2) target bundleno = 915 (0x393), region = 48 }
   0x7   : > { %p270_p3 = scmp.lt.s32.totalorder (!%p239_p2), %s269_s17, 25 }
   0xb   : > { %v307_v0 = vld [vmem:[%s4278_s1 + $0x78] sm:$0xff]  ;;  %v2857_v1 = vmov 0.0   ;;  %v306_v2 = vld [vmem:[%s4278_s1 + $0x70] sm:$0xff]  ;;  %vm2858_vm0 = vmmov 0   ;;  %v305_v3 = vld [vmem:[%s4278_s1 + $0x68] sm:$0xff]  ;;  %s4286_s17 = smov (!%p270_p3, %s269_s17), 25 }
   0xc   : > { %2733 = vmatprep.subr.mxu0 %v2857_v1  ;;  %1657 = vst [vmem:[#allocation5] sm:$0xf0] %v2857_v1  ;;  %1658 = vst [vmem:[#allocation5 + $0x8] sm:$0xf0] %v2857_v1  ;;  %2765 = vmatprep.mubr.msk.f32.mxu0 %vm2858_vm0, %v2857_v1  ;;  %v304_v4 = vld [vmem:[%s4278_s1 + $0x60] sm:$0xff]  ;;  %v303_v5 = vld [vmem:[%s4278_s1 + $0x58] sm:$0xff] }
   0xd   : > { %1659 = vst [vmem:[#allocation5 + $0x28] sm:$0xf0] %v2857_v1  ;;  %1660 = vst [vmem:[#allocation5 + $0x38] sm:$0xf0] %v2857_v1  ;;  %2734 = vmatpush3.msra.mxu0 %v307_v0  ;;  %v302_v6 = vld [vmem:[%s4278_s1 + $0x50] sm:$0xff]  ;;  %v301_v7 = vld [vmem:[%s4278_s1 + $0x48] sm:$0xff] }
   0xe   : > { %1661 = vst [vmem:[#allocation5 + $0x30] sm:$0xf0] %v2857_v1  ;;  %1662 = vst [vmem:[#allocation5 + $0x20] sm:$0xf0] %v2857_v1  ;;  %2735 = vmatprep.subr.mxu0 %v2857_v1  ;;  %v300_v8 = vld [vmem:[%s4278_s1 + $0x40] sm:$0xff]  ;;  %v299_v9 = vld [vmem:[%s4278_s1 + $0x38] sm:$0xff] }
   0xf   : > { %1663 = vst [vmem:[#allocation5 + $0x10] sm:$0xf0] %v2857_v1  ;;  %1664 = vst [vmem:[#allocation5 + $0x18] sm:$0xf0] %v2857_v1  ;;  %2736 = vmatpush3.msra.mxu0 %v306_v2  ;;  %v298_v10 = vld [vmem:[%s4278_s1 + $0x30] sm:$0xff]  ;;  %v297_v11 = vld [vmem:[%s4278_s1 + $0x28] sm:$0xff] }
  0x10   : > { %1665 = vst [vmem:[#allocation5 + $0x40] sm:$0xf0] %v2857_v1  ;;  %2737 = vmatprep.subr.mxu0 %v2857_v1  ;;  %v296_v12 = vld [vmem:[%s4278_s1 + $0x20] sm:$0xff]  ;;  %v295_v13 = vld [vmem:[%s4278_s1 + $0x18] sm:$0xff]  ;;  %s2236_s9 = sshll.u32 %s4286_s17, 3  ;;  %v294_v14 = vld [vmem:[%s4278_s1 + $0x10] sm:$0xff] }
  0x11   : > { %2738 = vmatpush3.msra.mxu0 %v305_v3  ;;  %v293_v15 = vld [vmem:[%s4278_s1 + $0x8] sm:$0xff]  ;;  %s2983_s16 = scalar_lea.vmem %s4277_s0, %s2236_s9  ;;  %v292_v16 = vld [vmem:[%s4278_s1] sm:$0xff]  ;;  %v758_v30 = vld [vmem:[%s4280_s3 + $0xf8] sm:$0xff]  ;;  %s4288_s25 = smov (!%p275_p4, %s2905_s25), 1 }
  0x12   : > { %2739 = vmatprep.subr.mxu0 %v2857_v1  ;;  %v279_v17 = vld [vmem:[%s2983_s16] sm:$0xff]  ;;  %v280_v18 = vld [vmem:[%s2983_s16 + $0x8] sm:$0xff]  ;;  %v281_v19 = vld [vmem:[%s2983_s16 + $0x10] sm:$0xff]  ;;  %2272 = vmatprep.subr.mxu1 %v758_v30  ;;  %s2237_s29 = sshll.u32 %s4288_s25, 3 }
  0x13   : > { %2740 = vmatpush3.msra.mxu0 %v304_v4  ;;  %v282_v20 = vld [vmem:[%s2983_s16 + $0x18] sm:$0xff]  ;;  %v283_v21 = vld [vmem:[%s2983_s16 + $0x20] sm:$0xff]  ;;  %v284_v22 = vld [vmem:[%s2983_s16 + $0x28] sm:$0xff]  ;;  %s278_s9 = scalar_lea.vmem %s4284_s7, %s2237_s29 }
  0x14   : > { %2741 = vmatprep.subr.mxu0 %v2857_v1  ;;  %v285_v23 = vld [vmem:[%s2983_s16 + $0x30] sm:$0xff]  ;;  %v286_v24 = vld [vmem:[%s2983_s16 + $0x38] sm:$0xff]  ;;  %v287_v25 = vld [vmem:[%s2983_s16 + $0x40] sm:$0xff] }
  0x15   : > { %2742 = vmatpush3.msra.mxu0 %v303_v5  ;;  %v288_v26 = vld [vmem:[%s2983_s16 + $0x48] sm:$0xff]  ;;  %v289_v27 = vld [vmem:[%s2983_s16 + $0x50] sm:$0xff]  ;;  %v290_v28 = vld [vmem:[%s2983_s16 + $0x58] sm:$0xff] }
  0x16   : > { %2743 = vmatprep.subr.mxu0 %v2857_v1  ;;  %v291_v29 = vld [vmem:[%s2983_s16 + $0x60] sm:$0xff]  ;;  %v742_v31 = vld [vmem:[%s4280_s3 + $0x78] sm:$0xff]  ;;  %v757_v32 = vld [vmem:[%s4280_s3 + $0xf0] sm:$0xff] }
  0x17   : > { %2744 = vmatpush3.msra.mxu0 %v302_v6  ;;  %2273 = vmatpush3.msra.mxu1 %v742_v31  ;;  %v741_v33 = vld [vmem:[%s4280_s3 + $0x70] sm:$0xff]  ;;  %v756_v34 = vld [vmem:[%s4280_s3 + $0xe8] sm:$0xff]  ;;  %v822_v35 = vld [vmem:[%s4280_s3 + $0x2f8] sm:$0xff] }
  0x18   : > { %2745 = vmatprep.subr.mxu0 %v2857_v1  ;;  %2274 = vmatprep.subr.mxu1 %v757_v32  ;;  %v740_v36 = vld [vmem:[%s4280_s3 + $0x68] sm:$0xff]  ;;  %v806_v37 = vld [vmem:[%s4280_s3 + $0x278] sm:$0xff]  ;;  %v755_v38 = vld [vmem:[%s4280_s3 + $0xe0] sm:$0xff] }
  0x19   : > { %2746 = vmatpush3.msra.mxu0 %v301_v7  ;;  %2275 = vmatpush3.msra.mxu1 %v741_v33  ;;  %v821_v39 = vld [vmem:[%s4280_s3 + $0x2f0] sm:$0xff]  ;;  %v739_v40 = vld [vmem:[%s4280_s3 + $0x60] sm:$0xff]  ;;  %v754_v42 = vld [vmem:[%s4280_s3 + $0xd8] sm:$0xff] }
  0x1a   : > { %2747 = vmatprep.subr.mxu0 %v2857_v1  ;;  %2276 = vmatprep.subr.mxu1 %v756_v34  ;;  %v805_v41 = vld [vmem:[%s4280_s3 + $0x270] sm:$0xff]  ;;  %v820_v43 = vld [vmem:[%s4280_s3 + $0x2e8] sm:$0xff]  ;;  %v738_v44 = vld [vmem:[%s4280_s3 + $0x58] sm:$0xff] }
  0x1b   : > { %2748 = vmatpush3.msra.mxu0 %v300_v8  ;;  %2277 = vmatpush3.msra.mxu1 %v740_v36  ;;  %v804_v45 = vld [vmem:[%s4280_s3 + $0x268] sm:$0xff]  ;;  %v753_v46 = vld [vmem:[%s4280_s3 + $0xd0] sm:$0xff]  ;;  %v819_v47 = vld [vmem:[%s4280_s3 + $0x2e0] sm:$0xff] }
  0x1c   : > { %2749 = vmatprep.subr.mxu0 %v2857_v1  ;;  %2278 = vmatprep.subr.mxu1 %v755_v38  ;;  %v737_v48 = vld [vmem:[%s4280_s3 + $0x50] sm:$0xff]  ;;  %v803_v49 = vld [vmem:[%s4280_s3 + $0x260] sm:$0xff]  ;;  %v752_v50 = vld [vmem:[%s4280_s3 + $0xc8] sm:$0xff] }
  0x1d   : > { %2750 = vmatpush3.msra.mxu0 %v299_v9  ;;  %2279 = vmatpush3.msra.mxu1 %v739_v40  ;;  %v818_v51 = vld [vmem:[%s4280_s3 + $0x2d8] sm:$0xff]  ;;  %v736_v52 = vld [vmem:[%s4280_s3 + $0x48] sm:$0xff]  ;;  %v751_v54 = vld [vmem:[%s4280_s3 + $0xc0] sm:$0xff] }
  0x1e   : > { %2751 = vmatprep.subr.mxu0 %v2857_v1  ;;  %2280 = vmatprep.subr.mxu1 %v754_v42  ;;  %v802_v53 = vld [vmem:[%s4280_s3 + $0x258] sm:$0xff]  ;;  %v817_v55 = vld [vmem:[%s4280_s3 + $0x2d0] sm:$0xff]  ;;  %v735_v56 = vld [vmem:[%s4280_s3 + $0x40] sm:$0xff] }
  0x1f   : > { %2752 = vmatpush3.msra.mxu0 %v298_v10  ;;  %2281 = vmatpush3.msra.mxu1 %v738_v44  ;;  %v801_v57 = vld [vmem:[%s4280_s3 + $0x250] sm:$0xff]  ;;  %v750_v58 = vld [vmem:[%s4280_s3 + $0xb8] sm:$0xff]  ;;  %v816_v59 = vld [vmem:[%s4280_s3 + $0x2c8] sm:$0xff] }
  0x20   : > { %2753 = vmatprep.subr.mxu0 %v2857_v1  ;;  %2282 = vmatprep.subr.mxu1 %v753_v46  ;;  %v734_v60 = vld [vmem:[%s4280_s3 + $0x38] sm:$0xff]  ;;  %v800_v61 = vld [vmem:[%s4280_s3 + $0x248] sm:$0xff]  ;;  %v749_v62 = vld [vmem:[%s4280_s3 + $0xb0] sm:$0xff] }
  0x21   : > { %2754 = vmatpush3.msra.mxu0 %v297_v11  ;;  %2283 = vmatpush3.msra.mxu1 %v737_v48  ;;  %v815_v63 = vld [vmem:[%s4280_s3 + $0x2c0] sm:$0xff]  ;;  %v733_v0 = vld [vmem:[%s4280_s3 + $0x30] sm:$0xff]  ;;  %v748_v3 = vld [vmem:[%s4280_s3 + $0xa8] sm:$0xff] }
  0x22   : > { %2755 = vmatprep.subr.mxu0 %v2857_v1  ;;  %2284 = vmatprep.subr.mxu1 %v752_v50  ;;  %v799_v2 = vld [vmem:[%s4280_s3 + $0x240] sm:$0xff]  ;;  %v814_v4 = vld [vmem:[%s4280_s3 + $0x2b8] sm:$0xff]  ;;  %v732_v5 = vld [vmem:[%s4280_s3 + $0x28] sm:$0xff] }
  0x23   : > { %2756 = vmatpush3.msra.mxu0 %v296_v12  ;;  %2285 = vmatpush3.msra.mxu1 %v736_v52  ;;  %v798_v6 = vld [vmem:[%s4280_s3 + $0x238] sm:$0xff]  ;;  %v747_v7 = vld [vmem:[%s4280_s3 + $0xa0] sm:$0xff]  ;;  %v813_v8 = vld [vmem:[%s4280_s3 + $0x2b0] sm:$0xff] }
  0x24   : > { %2757 = vmatprep.subr.mxu0 %v2857_v1  ;;  %2286 = vmatprep.subr.mxu1 %v751_v54  ;;  %v731_v9 = vld [vmem:[%s4280_s3 + $0x20] sm:$0xff]  ;;  %v797_v10 = vld [vmem:[%s4280_s3 + $0x230] sm:$0xff]  ;;  %v746_v11 = vld [vmem:[%s4280_s3 + $0x98] sm:$0xff] }
  0x25   : > { %2758 = vmatpush3.msra.mxu0 %v295_v13  ;;  %2287 = vmatpush3.msra.mxu1 %v735_v56  ;;  %v812_v12 = vld [vmem:[%s4280_s3 + $0x2a8] sm:$0xff]  ;;  %v730_v13 = vld [vmem:[%s4280_s3 + $0x18] sm:$0xff]  ;;  %v807_v30 = vld [vmem:[%s4280_s3 + $0x280] sm:$0xff] }
  0x26   : > { %2759 = vmatprep.subr.mxu0 %v2857_v1  ;;  %2288 = vmatprep.subr.mxu1 %v750_v58  ;;  %v791_v31 = vld [vmem:[%s4280_s3 + $0x200] sm:$0xff]  ;;  %v886_v32 = vld [vmem:[%s4280_s3 + $0x4f8] sm:$0xff] }
  0x27   : > { %2760 = vmatpush3.msra.mxu0 %v294_v14  ;;  %2289 = vmatpush3.msra.mxu1 %v734_v60  ;;  %v796_v14 = vld [vmem:[%s4280_s3 + $0x228] sm:$0xff]  ;;  %v3228_v33 = vld [vmem:[%s4279_s2] ss:$0 sm:$0xff] }
  0x28   : > { %2761 = vmatprep.subr.mxu0 %v2857_v1  ;;  %2290 = vmatprep.subr.mxu1 %v749_v62 }
  0x29   : > { %2762 = vmatpush3.msra.mxu0 %v293_v15  ;;  %2291 = vmatpush3.msra.mxu1 %v733_v0  ;;  %v745_v15 = vld [vmem:[%s4280_s3 + $0x90] sm:$0xff] }
  0x2a   : > { %2763 = vmatprep.subr.mxu0 %v2857_v1  ;;  %2292 = vmatprep.subr.mxu1 %v748_v3 }
  0x2b   : > { %2764 = vmatpush3.msra.mxu0 %v292_v16  ;;  %2293 = vmatpush3.msra.mxu1 %v732_v5  ;;  %v811_v16 = vld [vmem:[%s4280_s3 + $0x2a0] sm:$0xff] }
  0x2c   : > { %2766 = vmatmul.mubr.f32.vlgmr.msra.gmra.mxu0 %v279_v17  ;;  %2348 = vmatprep.subr.mxu0 %v822_v35  ;;  %v729_v17 = vld [vmem:[%s4280_s3 + $0x10] sm:$0xff] }
  0x2d   : > { %2768 = vmatprep.mubr.msk.f32.mxu0 %vm2858_vm0, %v2857_v1  ;;  %2349 = vmatpush3.msra.mxu0 %v806_v37 }
  0x2e   : > { %2350 = vmatprep.subr.mxu0 %v821_v39  ;;  %2294 = vmatprep.subr.mxu1 %v747_v7 }
  0x2f   : > { %2351 = vmatpush3.msra.mxu0 %v805_v41  ;;  %2295 = vmatpush3.msra.mxu1 %v731_v9 }
  0x30   : > { %2769 = vmatmul.mubr.f32.gmra.mxu0 %v280_v18  ;;  %2352 = vmatprep.subr.mxu0 %v820_v43  ;;  %v795_v18 = vld [vmem:[%s4280_s3 + $0x220] sm:$0xff] }
  0x31   : > { %2771 = vmatprep.mubr.msk.f32.mxu0 %vm2858_vm0, %v2857_v1  ;;  %2353 = vmatpush3.msra.mxu0 %v804_v45 }
  0x32   : > { %2354 = vmatprep.subr.mxu0 %v819_v47  ;;  %2296 = vmatprep.subr.mxu1 %v746_v11 }
  0x33   : > { %2355 = vmatpush3.msra.mxu0 %v803_v49  ;;  %2297 = vmatpush3.msra.mxu1 %v730_v13 }
  0x34   : > { %2772 = vmatmul.mubr.f32.gmra.mxu0 %v281_v19  ;;  %2356 = vmatprep.subr.mxu0 %v818_v51  ;;  %v744_v19 = vld [vmem:[%s4280_s3 + $0x88] sm:$0xff] }
  0x35   : > { %2774 = vmatprep.mubr.msk.f32.mxu0 %vm2858_vm0, %v2857_v1  ;;  %2357 = vmatpush3.msra.mxu0 %v802_v53 }
  0x36   : > { %2358 = vmatprep.subr.mxu0 %v817_v55  ;;  %2298 = vmatprep.subr.mxu1 %v745_v15 }
  0x37   : > { %2359 = vmatpush3.msra.mxu0 %v801_v57  ;;  %2299 = vmatpush3.msra.mxu1 %v729_v17 }
  0x38   : > { %2775 = vmatmul.mubr.f32.gmra.mxu0 %v282_v20  ;;  %2360 = vmatprep.subr.mxu0 %v816_v59  ;;  %v810_v20 = vld [vmem:[%s4280_s3 + $0x298] sm:$0xff] }
  0x39   : > { %2777 = vmatprep.mubr.msk.f32.mxu0 %vm2858_vm0, %v2857_v1  ;;  %2361 = vmatpush3.msra.mxu0 %v800_v61 }
  0x3a   : > { %2362 = vmatprep.subr.mxu0 %v815_v63  ;;  %2300 = vmatprep.subr.mxu1 %v744_v19 }
  0x3b   : > { %2363 = vmatpush3.msra.mxu0 %v799_v2 }
  0x3c   : > { %2778 = vmatmul.mubr.f32.gmra.mxu0 %v283_v21  ;;  %2364 = vmatprep.subr.mxu0 %v814_v4  ;;  %v728_v21 = vld [vmem:[%s4280_s3 + $0x8] sm:$0xff] }
  0x3d   : > { %2780 = vmatprep.mubr.msk.f32.mxu0 %vm2858_vm0, %v2857_v1  ;;  %2365 = vmatpush3.msra.mxu0 %v798_v6 }
  0x3e   : > { %2366 = vmatprep.subr.mxu0 %v813_v8  ;;  %2301 = vmatpush3.msra.mxu1 %v728_v21 }
  0x3f   : > { %2367 = vmatpush3.msra.mxu0 %v797_v10 }
  0x40   : > { %2781 = vmatmul.mubr.f32.gmra.mxu0 %v284_v22  ;;  %2368 = vmatprep.subr.mxu0 %v812_v12  ;;  %v794_v22 = vld [vmem:[%s4280_s3 + $0x218] sm:$0xff] }
  0x41   : > { %2783 = vmatprep.mubr.msk.f32.mxu0 %vm2858_vm0, %v2857_v1  ;;  %2369 = vmatpush3.msra.mxu0 %v796_v14 }
  0x42   : > { %2370 = vmatprep.subr.mxu0 %v811_v16 }
  0x43   : > { %2371 = vmatpush3.msra.mxu0 %v795_v18 }
  0x44   : > { %2784 = vmatmul.mubr.f32.gmra.mxu0 %v285_v23  ;;  %2372 = vmatprep.subr.mxu0 %v810_v20  ;;  %v743_v23 = vld [vmem:[%s4280_s3 + $0x80] sm:$0xff] }
  0x45   : > { %2786 = vmatprep.mubr.msk.f32.mxu0 %vm2858_vm0, %v2857_v1  ;;  %2373 = vmatpush3.msra.mxu0 %v794_v22 }
  0x46   : > { %2302 = vmatprep.subr.mxu1 %v743_v23 }
  0x48   : > { %2787 = vmatmul.mubr.f32.gmra.mxu0 %v286_v24  ;;  %v809_v24 = vld [vmem:[%s4280_s3 + $0x290] sm:$0xff] }
  0x49   : > { %2789 = vmatprep.mubr.msk.f32.mxu0 %vm2858_vm0, %v2857_v1  ;;  %2374 = vmatprep.subr.mxu0 %v809_v24 }
  0x4c   : > { %2790 = vmatmul.mubr.f32.gmra.mxu0 %v287_v25  ;;  %v727_v25 = vld [vmem:[%s4280_s3] sm:$0xff] }
  0x4d   : > { %2792 = vmatprep.mubr.msk.f32.mxu0 %vm2858_vm0, %v2857_v1  ;;  %2303 = vmatpush3.msra.mxu1 %v727_v25 }
  0x50   : > { %2793 = vmatmul.mubr.f32.gmra.mxu0 %v288_v26  ;;  %v793_v26 = vld [vmem:[%s4280_s3 + $0x210] sm:$0xff] }
  0x51   : > { %2795 = vmatprep.mubr.msk.f32.mxu0 %vm2858_vm0, %v2857_v1  ;;  %2375 = vmatpush3.msra.mxu0 %v793_v26 }
  0x54   : > { %2796 = vmatmul.mubr.f32.gmra.mxu0 %v289_v27  ;;  %v790_v27 = vld [vmem:[%s4280_s3 + $0x1f8] sm:$0xff] }
  0x55   : > { %2798 = vmatprep.mubr.msk.f32.mxu0 %vm2858_vm0, %v2857_v1  ;;  %2310 = vmatprep.subr.mxu1 %v790_v27 }
  0x58   : > { %2799 = vmatmul.mubr.f32.gmra.mxu0 %v290_v28  ;;  %v808_v28 = vld [vmem:[%s4280_s3 + $0x288] sm:$0xff] }
  0x59   : > { %2801 = vmatprep.mubr.msk.f32.mxu0 %vm2858_vm0, %v2857_v1  ;;  %2376 = vmatprep.subr.mxu0 %v808_v28 }
  0x5c   : > { %2802 = vmatmul.mubr.f32.gmra.mxu0 %v291_v29  ;;  %v792_v29 = vld [vmem:[%s4280_s3 + $0x208] sm:$0xff] }
  0x5d   : > { %2377 = vmatpush3.msra.mxu0 %v792_v29 }
  0x5e   : > { %2378 = vmatprep.subr.mxu0 %v807_v30 }
  0x5f   : > { %2379 = vmatpush3.msra.mxu0 %v791_v31 }
  0x60   : > { %2424 = vmatprep.subr.mxu0 %v886_v32 }
  0xec   : > { %v381_v34 = vpop.f32.mrf.mxu0 }
  0xed   : > { %v382_v35 = vadd.f32 %v3228_v33, %v381_v34 }
  0xee   : > { %v2767_v36 = vpop.f32.mrf.mxu0 }
  0xef   : > { %v445_v37 = vmax.f32 %v382_v35, 0.0 }
  0xf0   : > { %v386_v38 = vpop.f32.mrf.mxu0 }
  0xf1   : > { %458 = vst [vmem:[#allocation2] sm:$0xff] %v445_v37  ;;  %v387_v39 = vadd.f32 %v3228_v33, %v386_v38 }
  0xf2   : > { %v2770_v40 = vpop.f32.mrf.mxu0 }
  0xf3   : > { %v446_v41 = vmax.f32 %v387_v39, 0.0 }
  0xf4   : > { %v391_v42 = vpop.f32.mrf.mxu0 }
  0xf5   : > { %459 = vst [vmem:[#allocation2 + $0x8] sm:$0xff] %v446_v41  ;;  %v392_v43 = vadd.f32 %v3228_v33, %v391_v42 }
  0xf6   : > { %v2773_v44 = vpop.f32.mrf.mxu0 }
  0xf7   : > { %v447_v45 = vmax.f32 %v392_v43, 0.0 }
  0xf8   : > { %v471_v46 = vld [vmem:[#allocation2] sm:$0xf]  ;;  %v396_v48 = vpop.f32.mrf.mxu0 }
  0xf9   : > { %v475_v47 = vld [vmem:[#allocation2 + $0x1] sm:$0xf]  ;;  %472 = vst [vmem:[#allocation3 + $0xb0] sm:$0xf] %v471_v46  ;;  %460 = vst [vmem:[#allocation2 + $0x10] sm:$0xff] %v447_v45  ;;  %v397_v49 = vadd.f32 %v3228_v33, %v396_v48  ;;  %v774_v45 = vld [vmem:[%s4280_s3 + $0x178] sm:$0xff] }
  0xfa   : > { %476 = vst [vmem:[#allocation3 + $0xd8] sm:$0xf] %v475_v47  ;;  %v2776_v50 = vpop.f32.mrf.mxu0  ;;  %v789_v46 = vld [vmem:[%s4280_s3 + $0x1f0] sm:$0xff] }
  0xfb   : > { %v448_v51 = vmax.f32 %v397_v49, 0.0  ;;  %v773_v50 = vld [vmem:[%s4280_s3 + $0x170] sm:$0xff] }
  0xfc   : > { %v477_v52 = vld [vmem:[#allocation2 + $0x6] sm:$0xf]  ;;  %v479_v53 = vld [vmem:[#allocation2 + $0xa] sm:$0xf]  ;;  %v401_v55 = vpop.f32.mrf.mxu0 }
  0xfd   : > { %v483_v54 = vld [vmem:[#allocation2 + $0xb] sm:$0xf]  ;;  %480 = vst [vmem:[#allocation3 + $0x50] sm:$0xf] %v479_v53  ;;  %478 = vst [vmem:[#allocation3 + $0x18] sm:$0xf] %v477_v52  ;;  %v402_v56 = vadd.f32 %v3228_v33, %v401_v55 }
  0xfe   : > { %484 = vst [vmem:[#allocation3 + $0x30] sm:$0xf] %v483_v54  ;;  %461 = vst [vmem:[#allocation2 + $0x18] sm:$0xff] %v448_v51  ;;  %v473_v57 = vld [vmem:[#allocation2 + $0x5] sm:$0xf]  ;;  %v2779_v58 = vpop.f32.mrf.mxu0 }
  0xff   : > { %474 = vst [vmem:[#allocation3] sm:$0xf] %v473_v57  ;;  %v449_v59 = vmax.f32 %v402_v56, 0.0  ;;  %v788_v55 = vld [vmem:[%s4280_s3 + $0x1e8] sm:$0xff] }
 0x100   : > { %v481_v60 = vld [vmem:[#allocation2 + $0xf] sm:$0xf]  ;;  %v487_v62 = vld [vmem:[#allocation2 + $0x14] sm:$0xf]  ;;  %v406_v63 = vpop.f32.mrf.mxu0 }
 0x101   : > { %v485_v61 = vld [vmem:[#allocation2 + $0x10] sm:$0xf]  ;;  %488 = vst [vmem:[#allocation3 + $0x80] sm:$0xf] %v487_v62  ;;  %v503_v0 = vld [vmem:[#allocation2 + $0x14] sm:$0xf]  ;;  %v407_v2 = vadd.f32 %v3228_v33, %v406_v63 }
 0x102   : > { %482 = vst [vmem:[#allocation3 + $0x68] sm:$0xf] %v481_v60  ;;  %486 = vst [vmem:[#allocation3 + $0x48] sm:$0xf] %v485_v61  ;;  %v505_v3 = vrot.slane %v503_v0, 4  ;;  %v2782_v4 = vpop.f32.mrf.mxu0  ;;  %v772_v61 = vld [vmem:[%s4280_s3 + $0x168] sm:$0xff] }
 0x103   : > { %462 = vst [vmem:[#allocation2 + $0x20] sm:$0xff] %v449_v59  ;;  %v450_v5 = vmax.f32 %v407_v2, 0.0 }
 0x104   : > { %507 = vst [vmem:[#allocation3 + $0xb0] sm:$0xf0] %v505_v3  ;;  %v411_v9 = vpop.f32.mrf.mxu0  ;;  %v787_v3 = vld [vmem:[%s4280_s3 + $0x1e0] sm:$0xff] }
 0x105   : > { %v489_v6 = vld [vmem:[#allocation2 + $0x19] sm:$0xf]  ;;  %v491_v7 = vld [vmem:[#allocation2 + $0x15] sm:$0xf]  ;;  %463 = vst [vmem:[#allocation2 + $0x28] sm:$0xff] %v450_v5  ;;  %v412_v12 = vadd.f32 %v3228_v33, %v411_v9  ;;  %v771_v9 = vld [vmem:[%s4280_s3 + $0x160] sm:$0xff] }
 0x106   : > { %v493_v8 = vld [vmem:[#allocation2 + $0x1a] sm:$0xf]  ;;  %492 = vst [vmem:[#allocation3 + $0xe8] sm:$0xf] %v491_v7  ;;  %v513_v10 = vld [vmem:[#allocation2 + $0x15] sm:$0xf]  ;;  %v2785_v16 = vpop.f32.mrf.mxu0 }
 0x107   : > { %v518_v11 = vld [vmem:[#allocation2 + $0x1a] sm:$0xf]  ;;  %490 = vst [vmem:[#allocation3 + $0x88] sm:$0xf] %v489_v6  ;;  %494 = vst [vmem:[#allocation3 + $0xb8] sm:$0xf] %v493_v8 }
 0x108   : > { %v508_v13 = vld [vmem:[#allocation2 + $0x19] sm:$0xf]  ;;  %v515_v14 = vrot.slane %v513_v10, 4  ;;  %v520_v15 = vrot.slane %v518_v11, 4  ;;  %v451_v18 = vmax.f32 %v412_v12, 0.0  ;;  %v416_v22 = vpop.f32.mrf.mxu0 }
 0x109   : > { %v510_v17 = vrot.slane %v508_v13, 4  ;;  %v417_v26 = vadd.f32 %v3228_v33, %v416_v22  ;;  %v870_v8 = vld [vmem:[%s4280_s3 + $0x478] sm:$0xff] }
 0x10a   : > { %517 = vst [vmem:[#allocation3 + $0xd8] sm:$0xf0] %v515_v14  ;;  %522 = vst [vmem:[#allocation3 + $0x18] sm:$0xf0] %v520_v15  ;;  %v495_v19 = vld [vmem:[#allocation2 + $0x1e] sm:$0xf]  ;;  %v2788_v31 = vpop.f32.mrf.mxu0 }
 0x10b   : > { %v497_v20 = vld [vmem:[#allocation2 + $0x23] sm:$0xf]  ;;  %v499_v21 = vld [vmem:[#allocation2 + $0x1f] sm:$0xf]  ;;  %512 = vst [vmem:[#allocation3] sm:$0xf0] %v510_v17 }
 0x10c   : > { %496 = vst [vmem:[#allocation3 + $0x60] sm:$0xf] %v495_v19  ;;  %500 = vst [vmem:[#allocation3 + $0x8] sm:$0xf] %v499_v21  ;;  %v501_v23 = vld [vmem:[#allocation2 + $0x24] sm:$0xf]  ;;  %v421_v39 = vpop.f32.mrf.mxu0 }
 0x10d   : > { %v523_v24 = vld [vmem:[#allocation2 + $0x1e] sm:$0xf]  ;;  %v528_v25 = vld [vmem:[#allocation2 + $0x23] sm:$0xf]  ;;  %498 = vst [vmem:[#allocation3 + $0xf0] sm:$0xf] %v497_v20  ;;  %v422_v43 = vadd.f32 %v3228_v33, %v421_v39 }
 0x10e   : > { %464 = vst [vmem:[#allocation2 + $0x30] sm:$0xff] %v451_v18  ;;  %v525_v27 = vrot.slane %v523_v24, 4  ;;  %v530_v28 = vrot.slane %v528_v25, 4  ;;  %v533_v29 = vld [vmem:[#allocation2 + $0x1f] sm:$0xf]  ;;  %v452_v35 = vmax.f32 %v417_v26, 0.0  ;;  %v2791_v44 = vpop.f32.mrf.mxu0 }
 0x10f   : > { %v538_v30 = vld [vmem:[#allocation2 + $0x24] sm:$0xf]  ;;  %502 = vst [vmem:[#allocation3 + $0x78] sm:$0xf] %v501_v23  ;;  %v535_v32 = vrot.slane %v533_v29, 4  ;;  %v453_v47 = vmax.f32 %v422_v43, 0.0 }
 0x110   : > { %v540_v34 = vrot.slane %v538_v30, 4  ;;  %527 = vst [vmem:[#allocation3 + $0x50] sm:$0xf0] %v525_v27  ;;  %532 = vst [vmem:[#allocation3 + $0x68] sm:$0xf0] %v530_v28  ;;  %v695_v49 = vld [vmem:[#allocation3 + $0xb0] sm:$0xff]  ;;  %v426_v54 = vpop.f32.mrf.mxu0 }
 0x111   : > { %v543_v36 = vld [vmem:[#allocation2 + $0x28] sm:$0xf]  ;;  %537 = vst [vmem:[#allocation3 + $0x30] sm:$0xf0] %v535_v32  ;;  %465 = vst [vmem:[#allocation2 + $0x38] sm:$0xff] %v452_v35  ;;  %v427_v60 = vadd.f32 %v3228_v33, %v426_v54  ;;  %v885_v14 = vld [vmem:[%s4280_s3 + $0x4f0] sm:$0xff] }
 0x112   : > { %v553_v37 = vld [vmem:[#allocation2 + $0x29] sm:$0xf]  ;;  %542 = vst [vmem:[#allocation3 + $0x48] sm:$0xf0] %v540_v34  ;;  %v545_v40 = vrot.slane %v543_v36, 4  ;;  %466 = vst [vmem:[#allocation2 + $0x40] sm:$0xff] %v453_v47  ;;  %v2794_v2 = vpop.f32.mrf.mxu0 }
 0x113   : > { %v583_v38 = vld [vmem:[#allocation2 + $0x28] sm:$0xf]  ;;  %v555_v41 = vrot.slane %v553_v37, 4  ;;  %v454_v6 = vmax.f32 %v427_v60, 0.0  ;;  %v786_v15 = vld [vmem:[%s4280_s3 + $0x1d8] sm:$0xff]  ;;  %v869_v21 = vld [vmem:[%s4280_s3 + $0x470] sm:$0xff] }
 0x114   : > { %v587_v42 = vld [vmem:[#allocation2 + $0x29] sm:$0xf]  ;;  %584 = vst [vmem:[#allocation3 + $0x38] sm:$0xf] %v583_v38  ;;  %547 = vst [vmem:[#allocation3 + $0x80] sm:$0xf0] %v545_v40  ;;  %v431_v13 = vpop.f32.mrf.mxu0 }
 0x115   : > { %588 = vst [vmem:[#allocation3 + $0x40] sm:$0xf] %v587_v42  ;;  %557 = vst [vmem:[#allocation3 + $0xe8] sm:$0xf0] %v555_v41  ;;  %v696_v48 = vld [vmem:[#allocation3] sm:$0xff]  ;;  %v432_v20 = vadd.f32 %v3228_v33, %v431_v13  ;;  %v770_v26 = vld [vmem:[%s4280_s3 + $0x158] sm:$0xff] }
 0x116   : > { %v548_v51 = vld [vmem:[#allocation2 + $0x2d] sm:$0xf]  ;;  %v563_v53 = vld [vmem:[#allocation2 + $0x32] sm:$0xf]  ;;  %1054 = vmatprep.mubr.f32.mxu1 %v696_v48  ;;  %467 = vst [vmem:[#allocation2 + $0x48] sm:$0xff] %v454_v6  ;;  %v2797_v24 = vpop.f32.mrf.mxu0  ;;  %v883_v37 = vld [vmem:[%s4280_s3 + $0x4e0] sm:$0xff] }
 0x117   : > { %v558_v52 = vld [vmem:[#allocation2 + $0x2e] sm:$0xf]  ;;  %v550_v56 = vrot.slane %v548_v51, 4  ;;  %v565_v58 = vrot.slane %v563_v53, 4  ;;  %v573_v59 = vld [vmem:[#allocation2 + $0x33] sm:$0xf]  ;;  %1055 = vmatmul.mubr.f32.vlgmr.msra.gmra.mxu1 %v695_v49 }
 0x118   : > { %v560_v57 = vrot.slane %v558_v52, 4  ;;  %v575_v62 = vrot.slane %v573_v59, 4  ;;  %v585_v63 = vld [vmem:[#allocation2 + $0x2d] sm:$0xf]  ;;  %2311 = vmatpush3.msra.mxu1 %v774_v45  ;;  %v591_v4 = vld [vmem:[#allocation2 + $0x32] sm:$0xf]  ;;  %v436_v36 = vpop.f32.mrf.mxu0 }
 0x119   : > { %v589_v0 = vld [vmem:[#allocation2 + $0x2e] sm:$0xf]  ;;  %567 = vst [vmem:[#allocation3 + $0x60] sm:$0xf0] %v565_v58  ;;  %v595_v5 = vld [vmem:[#allocation2 + $0x33] sm:$0xf]  ;;  %2312 = vmatprep.subr.mxu1 %v789_v46  ;;  %v437_v41 = vadd.f32 %v3228_v33, %v436_v36 }
 0x11a   : > { %552 = vst [vmem:[#allocation3 + $0x88] sm:$0xf0] %v550_v56  ;;  %562 = vst [vmem:[#allocation3 + $0xb8] sm:$0xf0] %v560_v57  ;;  %v700_v7 = vld [vmem:[#allocation3 + $0x68] sm:$0xff]  ;;  %2313 = vmatpush3.msra.mxu1 %v773_v50  ;;  %v699_v23 = vld [vmem:[#allocation3 + $0x50] sm:$0xff]  ;;  %v2800_v49 = vpop.f32.mrf.mxu0 }
 0x11b   : > { %586 = vst [vmem:[#allocation3 + $0x58] sm:$0xf] %v585_v63  ;;  %590 = vst [vmem:[#allocation3 + $0xc8] sm:$0xf] %v589_v0  ;;  %v568_v10 = vld [vmem:[#allocation2 + $0x37] sm:$0xf]  ;;  %1204 = vmatprep.mubr.f32.mxu0 %v700_v7  ;;  %2314 = vmatprep.subr.mxu1 %v788_v55 }
 0x11c   : > { %577 = vst [vmem:[#allocation3 + $0x8] sm:$0xf0] %v575_v62  ;;  %592 = vst [vmem:[#allocation3 + $0xe0] sm:$0xf] %v591_v4  ;;  %v578_v11 = vld [vmem:[#allocation2 + $0x38] sm:$0xf]  ;;  %2315 = vmatpush3.msra.mxu1 %v772_v61  ;;  %1205 = vmatmul.mubr.f32.vlgmr.msra.gmra.mxu0 %v699_v23  ;;  %v441_v59 = vpop.f32.mrf.mxu0 }
 0x11d   : > { %596 = vst [vmem:[#allocation3 + $0x70] sm:$0xf] %v595_v5  ;;  %v593_v12 = vld [vmem:[#allocation2 + $0x37] sm:$0xf]  ;;  %v570_v16 = vrot.slane %v568_v10, 4  ;;  %v580_v17 = vrot.slane %v578_v11, 4  ;;  %2316 = vmatprep.subr.mxu1 %v787_v3  ;;  %2425 = vmatpush3.msra.mxu0 %v870_v8  ;;  %v442_v63 = vadd.f32 %v3228_v33, %v441_v59 }
 0x11e   : > { %v597_v18 = vld [vmem:[#allocation2 + $0x38] sm:$0xf]  ;;  %v599_v19 = vld [vmem:[#allocation2 + $0x3c] sm:$0xf]  ;;  %594 = vst [vmem:[#allocation3 + $0x90] sm:$0xf] %v593_v12  ;;  %2317 = vmatpush3.msra.mxu1 %v771_v9  ;;  %2426 = vmatprep.subr.mxu0 %v885_v14  ;;  %v2803_v5 = vpop.f32.mrf.mxu0 }
 0x11f   : > { %v615_v22 = vld [vmem:[#allocation2 + $0x3c] sm:$0xf]  ;;  %598 = vst [vmem:[#allocation3 + $0xc0] sm:$0xf] %v597_v18  ;;  %600 = vst [vmem:[#allocation3 + $0xa8] sm:$0xf] %v599_v19  ;;  %2318 = vmatprep.subr.mxu1 %v786_v15  ;;  %2427 = vmatpush3.msra.mxu0 %v869_v21 }
 0x120   : > { %v884_v25 = vld [vmem:[%s4280_s3 + $0x4e8] sm:$0xff]  ;;  %v617_v27 = vrot.slane %v615_v22, 4  ;;  %572 = vst [vmem:[#allocation3 + $0xf0] sm:$0xf0] %v570_v16  ;;  %582 = vst [vmem:[#allocation3 + $0x78] sm:$0xf0] %v580_v17  ;;  %2319 = vmatpush3.msra.mxu1 %v770_v26 }
 0x121   : > { %v455_v28 = vmax.f32 %v432_v20, 0.0  ;;  %v868_v29 = vld [vmem:[%s4280_s3 + $0x468] sm:$0xff]  ;;  %v785_v30 = vld [vmem:[%s4280_s3 + $0x1d0] sm:$0xff]  ;;  %v601_v32 = vld [vmem:[#allocation2 + $0x41] sm:$0xf]  ;;  %2428 = vmatprep.subr.mxu0 %v884_v25  ;;  %v456_v50 = vmax.f32 %v437_v41, 0.0 }
 0x122   : > { %v769_v31 = vld [vmem:[%s4280_s3 + $0x150] sm:$0xff]  ;;  %v603_v34 = vld [vmem:[#allocation2 + $0x3d] sm:$0xf]  ;;  %v605_v35 = vld [vmem:[#allocation2 + $0x42] sm:$0xf]  ;;  %2320 = vmatprep.subr.mxu1 %v785_v30  ;;  %2429 = vmatpush3.msra.mxu0 %v868_v29  ;;  %v457_v10 = vmax.f32 %v442_v63, 0.0 }
 0x123   : > { %619 = vst [vmem:[#allocation3 + $0x38] sm:$0xf0] %v617_v27  ;;  %v620_v38 = vld [vmem:[#allocation2 + $0x41] sm:$0xf]  ;;  %v625_v39 = vld [vmem:[#allocation2 + $0x3d] sm:$0xf]  ;;  %2321 = vmatpush3.msra.mxu1 %v769_v31  ;;  %2430 = vmatprep.subr.mxu0 %v883_v37 }
 0x124   : > { %v630_v40 = vld [vmem:[#allocation2 + $0x42] sm:$0xf]  ;;  %602 = vst [vmem:[#allocation3 + $0xd0] sm:$0xf] %v601_v32  ;;  %604 = vst [vmem:[#allocation3 + $0x10] sm:$0xf] %v603_v34 }
 0x125   : > { %606 = vst [vmem:[#allocation3 + $0x28] sm:$0xf] %v605_v35  ;;  %468 = vst [vmem:[#allocation2 + $0x50] sm:$0xff] %v455_v28  ;;  %v867_v42 = vld [vmem:[%s4280_s3 + $0x460] sm:$0xff]  ;;  %v622_v43 = vrot.slane %v620_v38, 4  ;;  %v627_v44 = vrot.slane %v625_v39, 4 }
 0x126   : > { %v632_v45 = vrot.slane %v630_v40, 4  ;;  %v784_v46 = vld [vmem:[%s4280_s3 + $0x1c8] sm:$0xff]  ;;  %v882_v47 = vld [vmem:[%s4280_s3 + $0x4d8] sm:$0xff]  ;;  %v783_v52 = vld [vmem:[%s4280_s3 + $0x1c0] sm:$0xff]  ;;  %469 = vst [vmem:[#allocation2 + $0x58] sm:$0xff] %v456_v50  ;;  %2431 = vmatpush3.msra.mxu0 %v867_v42 }
 0x127   : > { %v768_v48 = vld [vmem:[%s4280_s3 + $0x148] sm:$0xff]  ;;  %v866_v51 = vld [vmem:[%s4280_s3 + $0x458] sm:$0xff]  ;;  %v767_v53 = vld [vmem:[%s4280_s3 + $0x140] sm:$0xff]  ;;  %624 = vst [vmem:[#allocation3 + $0x58] sm:$0xf0] %v622_v43  ;;  %2322 = vmatprep.subr.mxu1 %v784_v46  ;;  %2432 = vmatprep.subr.mxu0 %v882_v47 }
 0x128   : > { %629 = vst [vmem:[#allocation3 + $0x40] sm:$0xf0] %v627_v44  ;;  %634 = vst [vmem:[#allocation3 + $0xc8] sm:$0xf0] %v632_v45  ;;  %v607_v54 = vld [vmem:[#allocation2 + $0x46] sm:$0xf]  ;;  %2323 = vmatpush3.msra.mxu1 %v768_v48  ;;  %2433 = vmatpush3.msra.mxu0 %v866_v51 }
 0x129   : > { %v609_v55 = vld [vmem:[#allocation2 + $0x4b] sm:$0xf]  ;;  %v611_v56 = vld [vmem:[#allocation2 + $0x47] sm:$0xf]  ;;  %v881_v57 = vld [vmem:[%s4280_s3 + $0x4d0] sm:$0xff]  ;;  %2324 = vmatprep.subr.mxu1 %v783_v52  ;;  %470 = vst [vmem:[#allocation2 + $0x60] sm:$0xff] %v457_v10 }
 0x12a   : > { %v782_v58 = vld [vmem:[%s4280_s3 + $0x1b8] sm:$0xff]  ;;  %v613_v60 = vld [vmem:[#allocation2 + $0x4c] sm:$0xf]  ;;  %v635_v61 = vld [vmem:[#allocation2 + $0x46] sm:$0xf]  ;;  %2325 = vmatpush3.msra.mxu1 %v767_v53  ;;  %2434 = vmatprep.subr.mxu0 %v881_v57 }
 0x12b   : > { %v640_v62 = vld [vmem:[#allocation2 + $0x4b] sm:$0xf]  ;;  %608 = vst [vmem:[#allocation3 + $0xa0] sm:$0xf] %v607_v54  ;;  %610 = vst [vmem:[#allocation3 + $0xf8] sm:$0xf] %v609_v55  ;;  %2326 = vmatprep.subr.mxu1 %v782_v58 }
 0x12c   : > { %612 = vst [vmem:[#allocation3 + $0x20] sm:$0xf] %v611_v56  ;;  %v637_v0 = vrot.slane %v635_v61, 4  ;;  %v642_v2 = vrot.slane %v640_v62, 4  ;;  %v645_v3 = vld [vmem:[#allocation2 + $0x47] sm:$0xf] }
 0x12d   : > { %v650_v4 = vld [vmem:[#allocation2 + $0x4c] sm:$0xf]  ;;  %614 = vst [vmem:[#allocation3 + $0x98] sm:$0xf] %v613_v60  ;;  %v647_v6 = vrot.slane %v645_v3, 4  ;;  %v865_v8 = vld [vmem:[%s4280_s3 + $0x450] sm:$0xff] }
 0x12e   : > { %v652_v7 = vrot.slane %v650_v4, 4  ;;  %v880_v33 = vld [vmem:[%s4280_s3 + $0x4c8] sm:$0xff]  ;;  %v766_v9 = vld [vmem:[%s4280_s3 + $0x138] sm:$0xff]  ;;  %639 = vst [vmem:[#allocation3 + $0xe0] sm:$0xf0] %v637_v0  ;;  %v781_v13 = vld [vmem:[%s4280_s3 + $0x1b0] sm:$0xff]  ;;  %2435 = vmatpush3.msra.mxu0 %v865_v8 }
 0x12f   : > { %644 = vst [vmem:[#allocation3 + $0x90] sm:$0xf0] %v642_v2  ;;  %v655_v11 = vld [vmem:[#allocation2 + $0x50] sm:$0xf]  ;;  %649 = vst [vmem:[#allocation3 + $0x70] sm:$0xf0] %v647_v6  ;;  %2327 = vmatpush3.msra.mxu1 %v766_v9  ;;  %2436 = vmatprep.subr.mxu0 %v880_v33 }
 0x130   : > { %v665_v12 = vld [vmem:[#allocation2 + $0x51] sm:$0xf]  ;;  %654 = vst [vmem:[#allocation3 + $0xc0] sm:$0xf0] %v652_v7  ;;  %v657_v14 = vrot.slane %v655_v11, 4  ;;  %v864_v16 = vld [vmem:[%s4280_s3 + $0x448] sm:$0xff]  ;;  %2328 = vmatprep.subr.mxu1 %v781_v13 }
 0x131   : > { %v667_v15 = vrot.slane %v665_v12, 4  ;;  %v765_v17 = vld [vmem:[%s4280_s3 + $0x130] sm:$0xff]  ;;  %v879_v18 = vld [vmem:[%s4280_s3 + $0x4c0] sm:$0xff]  ;;  %v780_v20 = vld [vmem:[%s4280_s3 + $0x1a8] sm:$0xff]  ;;  %2437 = vmatpush3.msra.mxu0 %v864_v16 }
 0x132   : > { %v863_v19 = vld [vmem:[%s4280_s3 + $0x440] sm:$0xff]  ;;  %659 = vst [vmem:[#allocation3 + $0xa8] sm:$0xf0] %v657_v14  ;;  %v878_v22 = vld [vmem:[%s4280_s3 + $0x4b8] sm:$0xff]  ;;  %v764_v23 = vld [vmem:[%s4280_s3 + $0x128] sm:$0xff]  ;;  %2329 = vmatpush3.msra.mxu1 %v765_v17  ;;  %2438 = vmatprep.subr.mxu0 %v879_v18 }
 0x133   : > { %669 = vst [vmem:[#allocation3 + $0x10] sm:$0xf0] %v667_v15  ;;  %v712_v21 = vld [vmem:[#allocation3 + $0x58] sm:$0xff]  ;;  %v660_v24 = vld [vmem:[#allocation2 + $0x55] sm:$0xf]  ;;  %2439 = vmatpush3.msra.mxu0 %v863_v19  ;;  %2330 = vmatprep.subr.mxu1 %v780_v20  ;;  %v876_v44 = vld [vmem:[%s4280_s3 + $0x4a8] sm:$0xff] }
 0x134   : > { %v670_v25 = vld [vmem:[#allocation2 + $0x56] sm:$0xf]  ;;  %v675_v26 = vld [vmem:[#allocation2 + $0x5a] sm:$0xf]  ;;  %v662_v27 = vrot.slane %v660_v24, 4  ;;  %1059 = vmatprep.mubr.f32.mxu1 %v712_v21  ;;  %v711_v34 = vld [vmem:[#allocation3 + $0x38] sm:$0xff]  ;;  %2440 = vmatprep.subr.mxu0 %v878_v22 }
 0x135   : > { %v672_v28 = vrot.slane %v670_v25, 4  ;;  %v677_v29 = vrot.slane %v675_v26, 4  ;;  %v685_v30 = vld [vmem:[#allocation2 + $0x5b] sm:$0xf]  ;;  %v779_v35 = vld [vmem:[%s4280_s3 + $0x1a0] sm:$0xff]  ;;  %v877_v36 = vld [vmem:[%s4280_s3 + $0x4b0] sm:$0xff]  ;;  %1060 = vmatmul.mubr.f32.gmra.mxu1 %v711_v34 }
 0x136   : > { %v862_v31 = vld [vmem:[%s4280_s3 + $0x438] sm:$0xff]  ;;  %v687_v32 = vrot.slane %v685_v30, 4  ;;  %664 = vst [vmem:[#allocation3 + $0xd0] sm:$0xf0] %v662_v27  ;;  %v763_v37 = vld [vmem:[%s4280_s3 + $0x120] sm:$0xff]  ;;  %v861_v38 = vld [vmem:[%s4280_s3 + $0x430] sm:$0xff]  ;;  %2331 = vmatpush3.msra.mxu1 %v764_v23 }
 0x137   : > { %674 = vst [vmem:[#allocation3 + $0x28] sm:$0xf0] %v672_v28  ;;  %679 = vst [vmem:[#allocation3 + $0xa0] sm:$0xf0] %v677_v29  ;;  %v778_v39 = vld [vmem:[%s4280_s3 + $0x198] sm:$0xff]  ;;  %2441 = vmatpush3.msra.mxu0 %v862_v31  ;;  %v698_v40 = vld [vmem:[#allocation3 + $0x18] sm:$0xff]  ;;  %2332 = vmatprep.subr.mxu1 %v779_v35 }
 0x138   : > { %689 = vst [vmem:[#allocation3 + $0x20] sm:$0xf0] %v687_v32  ;;  %v680_v41 = vld [vmem:[#allocation2 + $0x5f] sm:$0xf]  ;;  %1129 = vmatprep.mubr.f32.mxu1 %v698_v40  ;;  %2442 = vmatprep.subr.mxu0 %v877_v36  ;;  %v715_v48 = vld [vmem:[#allocation3 + $0xe0] sm:$0xff]  ;;  %v777_v50 = vld [vmem:[%s4280_s3 + $0x190] sm:$0xff] }
 0x139   : > { %v690_v42 = vld [vmem:[#allocation2 + $0x60] sm:$0xf]  ;;  %v716_v43 = vld [vmem:[#allocation3 + $0x90] sm:$0xff]  ;;  %v682_v45 = vrot.slane %v680_v41, 4  ;;  %2333 = vmatpush3.msra.mxu1 %v763_v37  ;;  %2443 = vmatpush3.msra.mxu0 %v861_v38  ;;  %v860_v49 = vld [vmem:[%s4280_s3 + $0x428] sm:$0xff] }
 0x13a   : > { %v692_v46 = vrot.slane %v690_v42, 4  ;;  %v762_v47 = vld [vmem:[%s4280_s3 + $0x118] sm:$0xff]  ;;  %2334 = vmatprep.subr.mxu1 %v778_v39  ;;  %1209 = vmatprep.mubr.f32.mxu0 %v716_v43  ;;  %v875_v51 = vld [vmem:[%s4280_s3 + $0x4a0] sm:$0xff]  ;;  %v761_v52 = vld [vmem:[%s4280_s3 + $0x110] sm:$0xff] }
 0x13b   : > { %684 = vst [vmem:[#allocation3 + $0xf8] sm:$0xf0] %v682_v45  ;;  %2444 = vmatprep.subr.mxu0 %v876_v44  ;;  %2335 = vmatpush3.msra.mxu1 %v762_v47  ;;  %v859_v53 = vld [vmem:[%s4280_s3 + $0x420] sm:$0xff]  ;;  %v704_v54 = vld [vmem:[#allocation3 + $0x88] sm:$0xff]  ;;  %v776_v55 = vld [vmem:[%s4280_s3 + $0x188] sm:$0xff] }
 0x13c   : > { %694 = vst [vmem:[#allocation3 + $0x98] sm:$0xf0] %v692_v46  ;;  %1210 = vmatmul.mubr.f32.gmra.mxu0 %v715_v48  ;;  %2336 = vmatprep.subr.mxu1 %v777_v50  ;;  %v874_v56 = vld [vmem:[%s4280_s3 + $0x498] sm:$0xff]  ;;  %v760_v57 = vld [vmem:[%s4280_s3 + $0x108] sm:$0xff]  ;;  %v775_v59 = vld [vmem:[%s4280_s3 + $0x180] sm:$0xff] }
 0x13d   : > { %2445 = vmatpush3.msra.mxu0 %v860_v49  ;;  %1354 = vmatprep.mubr.f32.mxu0 %v704_v54  ;;  %v858_v58 = vld [vmem:[%s4280_s3 + $0x418] sm:$0xff]  ;;  %v873_v60 = vld [vmem:[%s4280_s3 + $0x490] sm:$0xff]  ;;  %v759_v61 = vld [vmem:[%s4280_s3 + $0x100] sm:$0xff] }
 0x13e   : > { %2446 = vmatprep.subr.mxu0 %v875_v51  ;;  %2337 = vmatpush3.msra.mxu1 %v761_v52  ;;  %v857_v62 = vld [vmem:[%s4280_s3 + $0x410] sm:$0xff]  ;;  %v854_v63 = vld [vmem:[%s4280_s3 + $0x3f8] sm:$0xff]  ;;  %v872_v0 = vld [vmem:[%s4280_s3 + $0x488] sm:$0xff] }
 0x13f   : > { %2447 = vmatpush3.msra.mxu0 %v859_v53  ;;  %2338 = vmatprep.subr.mxu1 %v776_v55  ;;  %v697_v2 = vld [vmem:[#allocation3 + $0xd8] sm:$0xff]  ;;  %v838_v3 = vld [vmem:[%s4280_s3 + $0x378] sm:$0xff]  ;;  %v856_v4 = vld [vmem:[%s4280_s3 + $0x408] sm:$0xff] }
 0x140   : > { %2448 = vmatprep.subr.mxu0 %v874_v56  ;;  %2339 = vmatpush3.msra.mxu1 %v760_v57  ;;  %v714_v5 = vld [vmem:[#allocation3 + $0xc8] sm:$0xff]  ;;  %v871_v7 = vld [vmem:[%s4280_s3 + $0x480] sm:$0xff]  ;;  %v852_v9 = vld [vmem:[%s4280_s3 + $0x3e8] sm:$0xff] }
 0x141   : > { %2449 = vmatpush3.msra.mxu0 %v858_v58  ;;  %2340 = vmatprep.subr.mxu1 %v775_v59  ;;  %v853_v6 = vld [vmem:[%s4280_s3 + $0x3f0] sm:$0xff]  ;;  %v855_v33 = vld [vmem:[%s4280_s3 + $0x400] sm:$0xff]  ;;  %v950_v10 = vld [vmem:[%s4280_s3 + $0x6f8] sm:$0xff] }
 0x142   : > { %2450 = vmatprep.subr.mxu0 %v873_v60  ;;  %2341 = vmatpush3.msra.mxu1 %v759_v61  ;;  %v837_v8 = vld [vmem:[%s4280_s3 + $0x370] sm:$0xff]  ;;  %v713_v11 = vld [vmem:[#allocation3 + $0x40] sm:$0xff]  ;;  %v934_v14 = vld [vmem:[%s4280_s3 + $0x678] sm:$0xff] }
 0x143   : > { %2451 = vmatpush3.msra.mxu0 %v857_v62  ;;  %1130 = vmatmul.mubr.f32.vlgmr.msra.gmra.mxu1 %v697_v2  ;;  %v836_v12 = vld [vmem:[%s4280_s3 + $0x368] sm:$0xff]  ;;  %v702_v15 = vld [vmem:[#allocation3 + $0x48] sm:$0xff]  ;;  %v851_v16 = vld [vmem:[%s4280_s3 + $0x3e0] sm:$0xff] }
 0x144   : > { %2386 = vmatprep.subr.mxu1 %v854_v63  ;;  %2452 = vmatprep.subr.mxu0 %v872_v0  ;;  %v703_v13 = vld [vmem:[#allocation3 + $0x80] sm:$0xff]  ;;  %v949_v17 = vld [vmem:[%s4280_s3 + $0x6f0] sm:$0xff]  ;;  %v720_v18 = vld [vmem:[#allocation3 + $0xd0] sm:$0xff] }
 0x145   : > { %1134 = vmatprep.mubr.f32.mxu1 %v714_v5  ;;  %2387 = vmatpush3.msra.mxu1 %v838_v3  ;;  %v835_v19 = vld [vmem:[%s4280_s3 + $0x360] sm:$0xff]  ;;  %v933_v20 = vld [vmem:[%s4280_s3 + $0x670] sm:$0xff]  ;;  %v850_v21 = vld [vmem:[%s4280_s3 + $0x3d8] sm:$0xff] }
 0x146   : > { %2453 = vmatpush3.msra.mxu0 %v856_v4  ;;  %2388 = vmatprep.subr.mxu1 %v853_v6  ;;  %v948_v22 = vld [vmem:[%s4280_s3 + $0x6e8] sm:$0xff]  ;;  %v834_v23 = vld [vmem:[%s4280_s3 + $0x358] sm:$0xff]  ;;  %v719_v24 = vld [vmem:[#allocation3 + $0xa8] sm:$0xff] }
 0x147   : > { %2454 = vmatprep.subr.mxu0 %v871_v7  ;;  %2389 = vmatpush3.msra.mxu1 %v837_v8  ;;  %v932_v25 = vld [vmem:[%s4280_s3 + $0x668] sm:$0xff]  ;;  %v849_v26 = vld [vmem:[%s4280_s3 + $0x3d0] sm:$0xff]  ;;  %v947_v27 = vld [vmem:[%s4280_s3 + $0x6e0] sm:$0xff] }
 0x148   : > { %2455 = vmatpush3.msra.mxu0 %v855_v33  ;;  %1135 = vmatmul.mubr.f32.gmra.mxu1 %v713_v11  ;;  %v708_v28 = vld [vmem:[#allocation3 + $0xf0] sm:$0xff]  ;;  %v833_v29 = vld [vmem:[%s4280_s3 + $0x350] sm:$0xff]  ;;  %v931_v30 = vld [vmem:[%s4280_s3 + $0x660] sm:$0xff] }
 0x149   : > { %2390 = vmatprep.subr.mxu1 %v852_v9  ;;  %1355 = vmatmul.mubr.f32.vlgmr.msra.gmra.mxu0 %v703_v13  ;;  %v848_v31 = vld [vmem:[%s4280_s3 + $0x3c8] sm:$0xff]  ;;  %v946_v32 = vld [vmem:[%s4280_s3 + $0x6d8] sm:$0xff]  ;;  %v847_v36 = vld [vmem:[%s4280_s3 + $0x3c0] sm:$0xff] }
 0x14a   : > { %2500 = vmatprep.subr.mxu0 %v950_v10  ;;  %2391 = vmatpush3.msra.mxu1 %v836_v12  ;;  %v832_v34 = vld [vmem:[%s4280_s3 + $0x348] sm:$0xff]  ;;  %v930_v35 = vld [vmem:[%s4280_s3 + $0x658] sm:$0xff]  ;;  %v945_v37 = vld [vmem:[%s4280_s3 + $0x6d0] sm:$0xff] }
 0x14b   : > { %1279 = vmatprep.mubr.f32.mxu1 %v702_v15  ;;  %1359 = vmatprep.mubr.f32.mxu0 %v720_v18  ;;  %v831_v38 = vld [vmem:[%s4280_s3 + $0x340] sm:$0xff]  ;;  %v929_v39 = vld [vmem:[%s4280_s3 + $0x650] sm:$0xff]  ;;  %v846_v40 = vld [vmem:[%s4280_s3 + $0x3b8] sm:$0xff] }
 0x14c   : > { %2501 = vmatpush3.msra.mxu0 %v934_v14  ;;  %2392 = vmatprep.subr.mxu1 %v851_v16  ;;  %v944_v41 = vld [vmem:[%s4280_s3 + $0x6c8] sm:$0xff]  ;;  %v830_v42 = vld [vmem:[%s4280_s3 + $0x338] sm:$0xff]  ;;  %v845_v44 = vld [vmem:[%s4280_s3 + $0x3b0] sm:$0xff] }
 0x14d   : > { %2502 = vmatprep.subr.mxu0 %v949_v17  ;;  %2393 = vmatpush3.msra.mxu1 %v835_v19  ;;  %v928_v43 = vld [vmem:[%s4280_s3 + $0x648] sm:$0xff]  ;;  %v943_v45 = vld [vmem:[%s4280_s3 + $0x6c0] sm:$0xff]  ;;  %v829_v46 = vld [vmem:[%s4280_s3 + $0x330] sm:$0xff] }
 0x14e   : > { %2503 = vmatpush3.msra.mxu0 %v933_v20  ;;  %2394 = vmatprep.subr.mxu1 %v850_v21  ;;  %v927_v47 = vld [vmem:[%s4280_s3 + $0x640] sm:$0xff]  ;;  %v844_v48 = vld [vmem:[%s4280_s3 + $0x3a8] sm:$0xff]  ;;  %v942_v49 = vld [vmem:[%s4280_s3 + $0x6b8] sm:$0xff] }
 0x14f   : > { %1360 = vmatmul.mubr.f32.gmra.mxu0 %v719_v24  ;;  %2504 = vmatprep.subr.mxu0 %v948_v22  ;;  %v828_v50 = vld [vmem:[%s4280_s3 + $0x328] sm:$0xff]  ;;  %v926_v51 = vld [vmem:[%s4280_s3 + $0x638] sm:$0xff]  ;;  %v843_v52 = vld [vmem:[%s4280_s3 + $0x3a0] sm:$0xff] }
 0x150   : > { %2395 = vmatpush3.msra.mxu1 %v834_v23  ;;  %2505 = vmatpush3.msra.mxu0 %v932_v25  ;;  %v941_v53 = vld [vmem:[%s4280_s3 + $0x6b0] sm:$0xff]  ;;  %v827_v54 = vld [vmem:[%s4280_s3 + $0x320] sm:$0xff]  ;;  %v842_v56 = vld [vmem:[%s4280_s3 + $0x398] sm:$0xff] }
 0x151   : > { %1504 = vmatprep.mubr.f32.mxu0 %v708_v28  ;;  %2396 = vmatprep.subr.mxu1 %v849_v26  ;;  %v925_v55 = vld [vmem:[%s4280_s3 + $0x630] sm:$0xff]  ;;  %v940_v57 = vld [vmem:[%s4280_s3 + $0x6a8] sm:$0xff]  ;;  %v826_v58 = vld [vmem:[%s4280_s3 + $0x318] sm:$0xff] }
 0x152   : > { %2506 = vmatprep.subr.mxu0 %v947_v27  ;;  %2397 = vmatpush3.msra.mxu1 %v833_v29  ;;  %v924_v59 = vld [vmem:[%s4280_s3 + $0x628] sm:$0xff]  ;;  %v841_v60 = vld [vmem:[%s4280_s3 + $0x390] sm:$0xff]  ;;  %v939_v61 = vld [vmem:[%s4280_s3 + $0x6a0] sm:$0xff] }
 0x153   : > { %2507 = vmatpush3.msra.mxu0 %v931_v30  ;;  %2398 = vmatprep.subr.mxu1 %v848_v31  ;;  %v825_v62 = vld [vmem:[%s4280_s3 + $0x310] sm:$0xff]  ;;  %v923_v63 = vld [vmem:[%s4280_s3 + $0x620] sm:$0xff]  ;;  %v840_v0 = vld [vmem:[%s4280_s3 + $0x388] sm:$0xff] }
 0x154   : > { %2508 = vmatprep.subr.mxu0 %v946_v32  ;;  %2399 = vmatpush3.msra.mxu1 %v832_v34  ;;  %v938_v2 = vld [vmem:[%s4280_s3 + $0x698] sm:$0xff]  ;;  %v824_v3 = vld [vmem:[%s4280_s3 + $0x308] sm:$0xff]  ;;  %v839_v5 = vld [vmem:[%s4280_s3 + $0x380] sm:$0xff] }
 0x155   : > { %2509 = vmatpush3.msra.mxu0 %v930_v35  ;;  %2400 = vmatprep.subr.mxu1 %v847_v36  ;;  %v922_v4 = vld [vmem:[%s4280_s3 + $0x618] sm:$0xff]  ;;  %v937_v6 = vld [vmem:[%s4280_s3 + $0x690] sm:$0xff]  ;;  %v823_v7 = vld [vmem:[%s4280_s3 + $0x300] sm:$0xff] }
 0x156   : > { %2510 = vmatprep.subr.mxu0 %v945_v37  ;;  %2401 = vmatpush3.msra.mxu1 %v831_v38  ;;  %v921_v8 = vld [vmem:[%s4280_s3 + $0x610] sm:$0xff]  ;;  %v918_v33 = vld [vmem:[%s4280_s3 + $0x5f8] sm:$0xff]  ;;  %v936_v9 = vld [vmem:[%s4280_s3 + $0x688] sm:$0xff] }
 0x157   : > { %2511 = vmatpush3.msra.mxu0 %v929_v39  ;;  %2402 = vmatprep.subr.mxu1 %v846_v40  ;;  %v701_v10 = vld [vmem:[#allocation3 + $0x30] sm:$0xff]  ;;  %v920_v12 = vld [vmem:[%s4280_s3 + $0x608] sm:$0xff]  ;;  %v917_v14 = vld [vmem:[%s4280_s3 + $0x5f0] sm:$0xff] }
 0x158   : > { %2512 = vmatprep.subr.mxu0 %v944_v41  ;;  %2403 = vmatpush3.msra.mxu1 %v830_v42  ;;  %v902_v11 = vld [vmem:[%s4280_s3 + $0x578] sm:$0xff]  ;;  %v718_v13 = vld [vmem:[#allocation3 + $0xc0] sm:$0xff]  ;;  %v935_v15 = vld [vmem:[%s4280_s3 + $0x680] sm:$0xff] }
 0x159   : > { %2513 = vmatpush3.msra.mxu0 %v928_v43  ;;  %2404 = vmatprep.subr.mxu1 %v845_v44  ;;  %v901_v16 = vld [vmem:[%s4280_s3 + $0x570] sm:$0xff]  ;;  %v919_v17 = vld [vmem:[%s4280_s3 + $0x600] sm:$0xff]  ;;  %v916_v18 = vld [vmem:[%s4280_s3 + $0x5e8] sm:$0xff] }
 0x15a   : > { %2514 = vmatprep.subr.mxu0 %v943_v45  ;;  %2405 = vmatpush3.msra.mxu1 %v829_v46  ;;  %v900_v19 = vld [vmem:[%s4280_s3 + $0x568] sm:$0xff]  ;;  %v717_v20 = vld [vmem:[#allocation3 + $0x70] sm:$0xff]  ;;  %v915_v21 = vld [vmem:[%s4280_s3 + $0x5e0] sm:$0xff] }
 0x15b   : > { %2515 = vmatpush3.msra.mxu0 %v927_v47  ;;  %2406 = vmatprep.subr.mxu1 %v844_v48  ;;  %v707_v22 = vld [vmem:[#allocation3 + $0x60] sm:$0xff]  ;;  %v899_v23 = vld [vmem:[%s4280_s3 + $0x560] sm:$0xff]  ;;  %v914_v26 = vld [vmem:[%s4280_s3 + $0x5d8] sm:$0xff] }
 0x15c   : > { %2516 = vmatprep.subr.mxu0 %v942_v49  ;;  %2407 = vmatpush3.msra.mxu1 %v828_v50  ;;  %v724_v24 = vld [vmem:[#allocation3 + $0xf8] sm:$0xff]  ;;  %v898_v27 = vld [vmem:[%s4280_s3 + $0x558] sm:$0xff]  ;;  %v913_v28 = vld [vmem:[%s4280_s3 + $0x5d0] sm:$0xff] }
 0x15d   : > { %2517 = vmatpush3.msra.mxu0 %v926_v51  ;;  %2408 = vmatprep.subr.mxu1 %v843_v52  ;;  %v706_v25 = vld [vmem:[#allocation3 + $0xb8] sm:$0xff]  ;;  %v723_v29 = vld [vmem:[#allocation3 + $0xa0] sm:$0xff]  ;;  %v897_v30 = vld [vmem:[%s4280_s3 + $0x550] sm:$0xff] }
 0x15e   : > { %2518 = vmatprep.subr.mxu0 %v941_v53  ;;  %2409 = vmatpush3.msra.mxu1 %v827_v54  ;;  %v912_v31 = vld [vmem:[%s4280_s3 + $0x5c8] sm:$0xff]  ;;  %v911_v34 = vld [vmem:[%s4280_s3 + $0x5c0] sm:$0xff]  ;;  %v910_v36 = vld [vmem:[%s4280_s3 + $0x5b8] sm:$0xff] }
 0x15f   : > { %2519 = vmatpush3.msra.mxu0 %v925_v55  ;;  %2410 = vmatprep.subr.mxu1 %v842_v56  ;;  %v896_v32 = vld [vmem:[%s4280_s3 + $0x548] sm:$0xff]  ;;  %v895_v35 = vld [vmem:[%s4280_s3 + $0x540] sm:$0xff]  ;;  %v894_v37 = vld [vmem:[%s4280_s3 + $0x538] sm:$0xff] }
 0x160   : > { %2520 = vmatprep.subr.mxu0 %v940_v57  ;;  %2411 = vmatpush3.msra.mxu1 %v826_v58  ;;  %v909_v38 = vld [vmem:[%s4280_s3 + $0x5b0] sm:$0xff]  ;;  %v908_v40 = vld [vmem:[%s4280_s3 + $0x5a8] sm:$0xff]  ;;  %v907_v42 = vld [vmem:[%s4280_s3 + $0x5a0] sm:$0xff] }
 0x161   : > { %2521 = vmatpush3.msra.mxu0 %v924_v59  ;;  %2412 = vmatprep.subr.mxu1 %v841_v60  ;;  %v893_v39 = vld [vmem:[%s4280_s3 + $0x530] sm:$0xff]  ;;  %v892_v41 = vld [vmem:[%s4280_s3 + $0x528] sm:$0xff]  ;;  %v891_v43 = vld [vmem:[%s4280_s3 + $0x520] sm:$0xff] }
 0x162   : > { %2522 = vmatprep.subr.mxu0 %v939_v61  ;;  %2413 = vmatpush3.msra.mxu1 %v825_v62  ;;  %v906_v44 = vld [vmem:[%s4280_s3 + $0x598] sm:$0xff]  ;;  %v905_v46 = vld [vmem:[%s4280_s3 + $0x590] sm:$0xff]  ;;  %v904_v48 = vld [vmem:[%s4280_s3 + $0x588] sm:$0xff] }
 0x163   : > { %2523 = vmatpush3.msra.mxu0 %v923_v63  ;;  %2414 = vmatprep.subr.mxu1 %v840_v0  ;;  %v890_v45 = vld [vmem:[%s4280_s3 + $0x518] sm:$0xff]  ;;  %v889_v47 = vld [vmem:[%s4280_s3 + $0x510] sm:$0xff]  ;;  %v888_v49 = vld [vmem:[%s4280_s3 + $0x508] sm:$0xff] }
 0x164   : > { %2524 = vmatprep.subr.mxu0 %v938_v2  ;;  %2415 = vmatpush3.msra.mxu1 %v824_v3  ;;  %v903_v50 = vld [vmem:[%s4280_s3 + $0x580] sm:$0xff]  ;;  %v982_v52 = vld [vmem:[%s4280_s3 + $0x7f8] sm:$0xff]  ;;  %v705_v54 = vld [vmem:[#allocation3 + $0xe8] sm:$0xff] }
 0x165   : > { %2525 = vmatpush3.msra.mxu0 %v922_v4  ;;  %2416 = vmatprep.subr.mxu1 %v839_v5  ;;  %v887_v51 = vld [vmem:[%s4280_s3 + $0x500] sm:$0xff]  ;;  %v966_v53 = vld [vmem:[%s4280_s3 + $0x778] sm:$0xff]  ;;  %v981_v55 = vld [vmem:[%s4280_s3 + $0x7f0] sm:$0xff] }
 0x166   : > { %2526 = vmatprep.subr.mxu0 %v937_v6  ;;  %2417 = vmatpush3.msra.mxu1 %v823_v7  ;;  %v722_v56 = vld [vmem:[#allocation3 + $0x28] sm:$0xff]  ;;  %v980_v58 = vld [vmem:[%s4280_s3 + $0x7e8] sm:$0xff]  ;;  %v721_v60 = vld [vmem:[#allocation3 + $0x10] sm:$0xff] }
 0x167   : > { %2527 = vmatpush3.msra.mxu0 %v921_v8  ;;  %1280 = vmatmul.mubr.f32.vlgmr.msra.gmra.mxu1 %v701_v10  ;;  %v965_v57 = vld [vmem:[%s4280_s3 + $0x770] sm:$0xff]  ;;  %v964_v59 = vld [vmem:[%s4280_s3 + $0x768] sm:$0xff]  ;;  %v979_v61 = vld [vmem:[%s4280_s3 + $0x7e0] sm:$0xff] }
 0x168   : > { %2462 = vmatprep.subr.mxu1 %v918_v33  ;;  %2528 = vmatprep.subr.mxu0 %v936_v9  ;;  %v710_v62 = vld [vmem:[#allocation3 + $0x78] sm:$0xff]  ;;  %v978_v0 = vld [vmem:[%s4280_s3 + $0x7d8] sm:$0xff]  ;;  %v977_v3 = vld [vmem:[%s4280_s3 + $0x7d0] sm:$0xff] }
 0x169   : > { %1284 = vmatprep.mubr.f32.mxu1 %v718_v13  ;;  %2463 = vmatpush3.msra.mxu1 %v902_v11  ;;  %v963_v63 = vld [vmem:[%s4280_s3 + $0x760] sm:$0xff]  ;;  %v962_v2 = vld [vmem:[%s4280_s3 + $0x758] sm:$0xff]  ;;  %v961_v4 = vld [vmem:[%s4280_s3 + $0x750] sm:$0xff] }
 0x16a   : > { %2529 = vmatpush3.msra.mxu0 %v920_v12  ;;  %2464 = vmatprep.subr.mxu1 %v917_v14  ;;  %v976_v5 = vld [vmem:[%s4280_s3 + $0x7c8] sm:$0xff]  ;;  %v975_v7 = vld [vmem:[%s4280_s3 + $0x7c0] sm:$0xff]  ;;  %v974_v33 = vld [vmem:[%s4280_s3 + $0x7b8] sm:$0xff] }
 0x16b   : > { %2530 = vmatprep.subr.mxu0 %v935_v15  ;;  %2465 = vmatpush3.msra.mxu1 %v901_v16  ;;  %v960_v6 = vld [vmem:[%s4280_s3 + $0x748] sm:$0xff]  ;;  %v959_v8 = vld [vmem:[%s4280_s3 + $0x740] sm:$0xff]  ;;  %v958_v9 = vld [vmem:[%s4280_s3 + $0x738] sm:$0xff] }
 0x16c   : > { %2531 = vmatpush3.msra.mxu0 %v919_v17  ;;  %1285 = vmatmul.mubr.f32.gmra.mxu1 %v717_v20  ;;  %v973_v10 = vld [vmem:[%s4280_s3 + $0x7b0] sm:$0xff]  ;;  %v972_v12 = vld [vmem:[%s4280_s3 + $0x7a8] sm:$0xff]  ;;  %v971_v14 = vld [vmem:[%s4280_s3 + $0x7a0] sm:$0xff] }
 0x16d   : > { %2466 = vmatprep.subr.mxu1 %v916_v18  ;;  %1505 = vmatmul.mubr.f32.vlgmr.msra.gmra.mxu0 %v707_v22  ;;  %v957_v11 = vld [vmem:[%s4280_s3 + $0x730] sm:$0xff]  ;;  %v956_v13 = vld [vmem:[%s4280_s3 + $0x728] sm:$0xff]  ;;  %v955_v15 = vld [vmem:[%s4280_s3 + $0x720] sm:$0xff] }
 0x16e   : > { %2467 = vmatpush3.msra.mxu1 %v900_v19  ;;  %1429 = vmatprep.mubr.f32.mxu1 %v706_v25  ;;  %v970_v16 = vld [vmem:[%s4280_s3 + $0x798] sm:$0xff]  ;;  %v969_v18 = vld [vmem:[%s4280_s3 + $0x790] sm:$0xff]  ;;  %v968_v20 = vld [vmem:[%s4280_s3 + $0x788] sm:$0xff] }
 0x16f   : > { %2468 = vmatprep.subr.mxu1 %v915_v21  ;;  %1509 = vmatprep.mubr.f32.mxu0 %v724_v24  ;;  %v954_v17 = vld [vmem:[%s4280_s3 + $0x718] sm:$0xff]  ;;  %v953_v19 = vld [vmem:[%s4280_s3 + $0x710] sm:$0xff]  ;;  %v952_v21 = vld [vmem:[%s4280_s3 + $0x708] sm:$0xff] }
 0x170   : > { %2469 = vmatpush3.msra.mxu1 %v899_v23  ;;  %v967_v22 = vld [vmem:[%s4280_s3 + $0x780] sm:$0xff]  ;;  %v709_v24 = vld [vmem:[#allocation3 + $0x8] sm:$0xff] }
 0x171   : > { %2470 = vmatprep.subr.mxu1 %v914_v26  ;;  %1510 = vmatmul.mubr.f32.gmra.mxu0 %v723_v29  ;;  %v951_v23 = vld [vmem:[%s4280_s3 + $0x700] sm:$0xff]  ;;  %v725_v26 = vld [vmem:[#allocation3 + $0x20] sm:$0xff]  ;;  %v1705_v29 = vld [vmem:[%s4282_s5 + $0xf0] sm:$0xff] }
 0x172   : > { %2471 = vmatpush3.msra.mxu1 %v898_v27  ;;  %v726_v25 = vld [vmem:[#allocation3 + $0x98] sm:$0xff]  ;;  %v1706_v27 = vld [vmem:[%s4282_s5 + $0xf8] sm:$0xff] }
 0x173   : > { %2472 = vmatprep.subr.mxu1 %v913_v28  ;;  %v1690_v28 = vld [vmem:[%s4282_s5 + $0x78] sm:$0xff]  ;;  %2576 = vmatprep.subr.mxu0 %v1706_v27  ;;  %v1723_v27 = vld [vmem:[%s4282_s5 + $0x180] sm:$0xff] }
 0x174   : > { %2473 = vmatpush3.msra.mxu1 %v897_v30  ;;  %v1689_v30 = vld [vmem:[%s4282_s5 + $0x70] sm:$0xff]  ;;  %2577 = vmatpush3.msra.mxu0 %v1690_v28  ;;  %v1707_v28 = vld [vmem:[%s4282_s5 + $0x100] sm:$0xff] }
 0x175   : > { %2474 = vmatprep.subr.mxu1 %v912_v31  ;;  %v1738_v31 = vld [vmem:[%s4282_s5 + $0x1f8] sm:$0xff]  ;;  %2578 = vmatprep.subr.mxu0 %v1705_v29 }
 0x176   : > { %2475 = vmatpush3.msra.mxu1 %v896_v32  ;;  %v1704_v32 = vld [vmem:[%s4282_s5 + $0xe8] sm:$0xff]  ;;  %2579 = vmatpush3.msra.mxu0 %v1689_v30  ;;  %v1802_v29 = vld [vmem:[%s4282_s5 + $0x3f8] sm:$0xff] }
 0x177   : > { %2476 = vmatprep.subr.mxu1 %v911_v34  ;;  %2580 = vmatprep.subr.mxu0 %v1704_v32  ;;  %v1688_v34 = vld [vmem:[%s4282_s5 + $0x68] sm:$0xff] }
 0x178   : > { %2477 = vmatpush3.msra.mxu1 %v895_v35  ;;  %v1722_v35 = vld [vmem:[%s4282_s5 + $0x178] sm:$0xff]  ;;  %2581 = vmatpush3.msra.mxu0 %v1688_v34 }
 0x179   : > { %2478 = vmatprep.subr.mxu1 %v910_v36  ;;  %v1703_v36 = vld [vmem:[%s4282_s5 + $0xe0] sm:$0xff] }
 0x17a   : > { %2479 = vmatpush3.msra.mxu1 %v894_v37  ;;  %v1737_v37 = vld [vmem:[%s4282_s5 + $0x1f0] sm:$0xff]  ;;  %2582 = vmatprep.subr.mxu0 %v1703_v36 }
 0x17b   : > { %2480 = vmatprep.subr.mxu1 %v909_v38  ;;  %v1687_v38 = vld [vmem:[%s4282_s5 + $0x60] sm:$0xff] }
 0x17c   : > { %2481 = vmatpush3.msra.mxu1 %v893_v39  ;;  %v1721_v39 = vld [vmem:[%s4282_s5 + $0x170] sm:$0xff]  ;;  %2583 = vmatpush3.msra.mxu0 %v1687_v38 }
 0x17d   : > { %2482 = vmatprep.subr.mxu1 %v908_v40  ;;  %v1702_v40 = vld [vmem:[%s4282_s5 + $0xd8] sm:$0xff] }
 0x17e   : > { %2483 = vmatpush3.msra.mxu1 %v892_v41  ;;  %v1736_v41 = vld [vmem:[%s4282_s5 + $0x1e8] sm:$0xff]  ;;  %2584 = vmatprep.subr.mxu0 %v1702_v40 }
 0x17f   : > { %2484 = vmatprep.subr.mxu1 %v907_v42  ;;  %v1686_v42 = vld [vmem:[%s4282_s5 + $0x58] sm:$0xff] }
 0x180   : > { %2485 = vmatpush3.msra.mxu1 %v891_v43  ;;  %v1720_v43 = vld [vmem:[%s4282_s5 + $0x168] sm:$0xff]  ;;  %2585 = vmatpush3.msra.mxu0 %v1686_v42 }
 0x181   : > { %2486 = vmatprep.subr.mxu1 %v906_v44  ;;  %v1701_v44 = vld [vmem:[%s4282_s5 + $0xd0] sm:$0xff] }
 0x182   : > { %2487 = vmatpush3.msra.mxu1 %v890_v45  ;;  %v1735_v45 = vld [vmem:[%s4282_s5 + $0x1e0] sm:$0xff]  ;;  %2586 = vmatprep.subr.mxu0 %v1701_v44 }
 0x183   : > { %2488 = vmatprep.subr.mxu1 %v905_v46  ;;  %v1685_v46 = vld [vmem:[%s4282_s5 + $0x50] sm:$0xff] }
 0x184   : > { %2489 = vmatpush3.msra.mxu1 %v889_v47  ;;  %v1719_v47 = vld [vmem:[%s4282_s5 + $0x160] sm:$0xff]  ;;  %2587 = vmatpush3.msra.mxu0 %v1685_v46 }
 0x185   : > { %2490 = vmatprep.subr.mxu1 %v904_v48  ;;  %v1700_v48 = vld [vmem:[%s4282_s5 + $0xc8] sm:$0xff] }
 0x186   : > { %2491 = vmatpush3.msra.mxu1 %v888_v49  ;;  %v1734_v49 = vld [vmem:[%s4282_s5 + $0x1d8] sm:$0xff]  ;;  %2588 = vmatprep.subr.mxu0 %v1700_v48 }
 0x187   : > { %2492 = vmatprep.subr.mxu1 %v903_v50  ;;  %v1684_v50 = vld [vmem:[%s4282_s5 + $0x48] sm:$0xff] }
 0x188   : > { %2493 = vmatpush3.msra.mxu1 %v887_v51  ;;  %v1718_v51 = vld [vmem:[%s4282_s5 + $0x158] sm:$0xff]  ;;  %2589 = vmatpush3.msra.mxu0 %v1684_v50 }
 0x189   : > { %1430 = vmatmul.mubr.f32.vlgmr.msra.gmra.mxu1 %v705_v54  ;;  %2538 = vmatprep.subr.mxu1 %v982_v52  ;;  %v1699_v52 = vld [vmem:[%s4282_s5 + $0xc0] sm:$0xff] }
 0x18a   : > { %1434 = vmatprep.mubr.f32.mxu1 %v722_v56  ;;  %2539 = vmatpush3.msra.mxu1 %v966_v53  ;;  %v1733_v53 = vld [vmem:[%s4282_s5 + $0x1d0] sm:$0xff]  ;;  %v1683_v54 = vld [vmem:[%s4282_s5 + $0x40] sm:$0xff]  ;;  %v1698_v56 = vld [vmem:[%s4282_s5 + $0xb8] sm:$0xff] }
 0x18b   : > { %2540 = vmatprep.subr.mxu1 %v981_v55  ;;  %2590 = vmatprep.subr.mxu0 %v1699_v52  ;;  %v1717_v55 = vld [vmem:[%s4282_s5 + $0x150] sm:$0xff] }
 0x18c   : > { %2541 = vmatpush3.msra.mxu1 %v965_v57  ;;  %2591 = vmatpush3.msra.mxu0 %v1683_v54  ;;  %v1732_v57 = vld [vmem:[%s4282_s5 + $0x1c8] sm:$0xff] }
 0x18d   : > { %1435 = vmatmul.mubr.f32.gmra.mxu1 %v721_v60  ;;  %2542 = vmatprep.subr.mxu1 %v980_v58  ;;  %v1682_v58 = vld [vmem:[%s4282_s5 + $0x38] sm:$0xff]  ;;  %v1697_v60 = vld [vmem:[%s4282_s5 + $0xb0] sm:$0xff] }
 0x18e   : > { %2543 = vmatpush3.msra.mxu1 %v964_v59  ;;  %1579 = vmatprep.mubr.f32.mxu1 %v710_v62  ;;  %v1716_v59 = vld [vmem:[%s4282_s5 + $0x148] sm:$0xff]  ;;  %v1681_v62 = vld [vmem:[%s4282_s5 + $0x30] sm:$0xff] }
 0x18f   : > { %2544 = vmatprep.subr.mxu1 %v979_v61  ;;  %2592 = vmatprep.subr.mxu0 %v1698_v56  ;;  %v1731_v61 = vld [vmem:[%s4282_s5 + $0x1c0] sm:$0xff] }
 0x190   : > { %2545 = vmatpush3.msra.mxu1 %v963_v63  ;;  %2593 = vmatpush3.msra.mxu0 %v1682_v58  ;;  %v1715_v63 = vld [vmem:[%s4282_s5 + $0x140] sm:$0xff] }
 0x191   : > { %2546 = vmatprep.subr.mxu1 %v978_v0  ;;  %2594 = vmatprep.subr.mxu0 %v1697_v60  ;;  %v1696_v0 = vld [vmem:[%s4282_s5 + $0xa8] sm:$0xff] }
 0x192   : > { %2547 = vmatpush3.msra.mxu1 %v962_v2  ;;  %2595 = vmatpush3.msra.mxu0 %v1681_v62  ;;  %v1730_v2 = vld [vmem:[%s4282_s5 + $0x1b8] sm:$0xff] }
 0x193   : > { %2548 = vmatprep.subr.mxu1 %v977_v3  ;;  %2596 = vmatprep.subr.mxu0 %v1696_v0  ;;  %v1680_v3 = vld [vmem:[%s4282_s5 + $0x28] sm:$0xff] }
 0x194   : > { %2549 = vmatpush3.msra.mxu1 %v961_v4  ;;  %v1714_v4 = vld [vmem:[%s4282_s5 + $0x138] sm:$0xff]  ;;  %2597 = vmatpush3.msra.mxu0 %v1680_v3 }
 0x195   : > { %2550 = vmatprep.subr.mxu1 %v976_v5  ;;  %v1695_v5 = vld [vmem:[%s4282_s5 + $0xa0] sm:$0xff] }
 0x196   : > { %2551 = vmatpush3.msra.mxu1 %v960_v6  ;;  %v1729_v6 = vld [vmem:[%s4282_s5 + $0x1b0] sm:$0xff]  ;;  %2598 = vmatprep.subr.mxu0 %v1695_v5 }
 0x197   : > { %2552 = vmatprep.subr.mxu1 %v975_v7  ;;  %v1679_v7 = vld [vmem:[%s4282_s5 + $0x20] sm:$0xff] }
 0x198   : > { %2553 = vmatpush3.msra.mxu1 %v959_v8  ;;  %v1713_v8 = vld [vmem:[%s4282_s5 + $0x130] sm:$0xff]  ;;  %2599 = vmatpush3.msra.mxu0 %v1679_v7 }
 0x199   : > { %2554 = vmatprep.subr.mxu1 %v974_v33  ;;  %v1694_v33 = vld [vmem:[%s4282_s5 + $0x98] sm:$0xff] }
 0x19a   : > { %2555 = vmatpush3.msra.mxu1 %v958_v9  ;;  %v1728_v9 = vld [vmem:[%s4282_s5 + $0x1a8] sm:$0xff]  ;;  %2600 = vmatprep.subr.mxu0 %v1694_v33 }
 0x19b   : > { %2556 = vmatprep.subr.mxu1 %v973_v10  ;;  %v1678_v10 = vld [vmem:[%s4282_s5 + $0x18] sm:$0xff] }
 0x19c   : > { %2557 = vmatpush3.msra.mxu1 %v957_v11  ;;  %v1712_v11 = vld [vmem:[%s4282_s5 + $0x128] sm:$0xff]  ;;  %2601 = vmatpush3.msra.mxu0 %v1678_v10 }
 0x19d   : > { %2558 = vmatprep.subr.mxu1 %v972_v12  ;;  %v1693_v12 = vld [vmem:[%s4282_s5 + $0x90] sm:$0xff] }
 0x19e   : > { %2559 = vmatpush3.msra.mxu1 %v956_v13  ;;  %v1727_v13 = vld [vmem:[%s4282_s5 + $0x1a0] sm:$0xff]  ;;  %2602 = vmatprep.subr.mxu0 %v1693_v12 }
 0x19f   : > { %2560 = vmatprep.subr.mxu1 %v971_v14  ;;  %v1677_v14 = vld [vmem:[%s4282_s5 + $0x10] sm:$0xff] }
 0x1a0   : > { %2561 = vmatpush3.msra.mxu1 %v955_v15  ;;  %v1711_v15 = vld [vmem:[%s4282_s5 + $0x120] sm:$0xff]  ;;  %2603 = vmatpush3.msra.mxu0 %v1677_v14 }
 0x1a1   : > { %2562 = vmatprep.subr.mxu1 %v970_v16  ;;  %v1692_v16 = vld [vmem:[%s4282_s5 + $0x88] sm:$0xff] }
 0x1a2   : > { %2563 = vmatpush3.msra.mxu1 %v954_v17  ;;  %v1726_v17 = vld [vmem:[%s4282_s5 + $0x198] sm:$0xff]  ;;  %2604 = vmatprep.subr.mxu0 %v1692_v16 }
 0x1a3   : > { %2564 = vmatprep.subr.mxu1 %v969_v18  ;;  %v1676_v18 = vld [vmem:[%s4282_s5 + $0x8] sm:$0xff] }
 0x1a4   : > { %2565 = vmatpush3.msra.mxu1 %v953_v19  ;;  %v1710_v19 = vld [vmem:[%s4282_s5 + $0x118] sm:$0xff]  ;;  %2605 = vmatpush3.msra.mxu0 %v1676_v18 }
 0x1a5   : > { %2566 = vmatprep.subr.mxu1 %v968_v20  ;;  %v1691_v20 = vld [vmem:[%s4282_s5 + $0x80] sm:$0xff] }
 0x1a6   : > { %2567 = vmatpush3.msra.mxu1 %v952_v21  ;;  %v1725_v21 = vld [vmem:[%s4282_s5 + $0x190] sm:$0xff]  ;;  %2606 = vmatprep.subr.mxu0 %v1691_v20 }
 0x1a7   : > { %2568 = vmatprep.subr.mxu1 %v967_v22  ;;  %v1675_v22 = vld [vmem:[%s4282_s5] sm:$0xff] }
 0x1a8   : > { %2569 = vmatpush3.msra.mxu1 %v951_v23  ;;  %v1709_v23 = vld [vmem:[%s4282_s5 + $0x110] sm:$0xff]  ;;  %2607 = vmatpush3.msra.mxu0 %v1675_v22 }
 0x1a9   : > { %1580 = vmatmul.mubr.f32.vlgmr.msra.gmra.mxu1 %v709_v24  ;;  %2611 = vmatprep.subr.mxu1 %v1738_v31  ;;  %v1724_v24 = vld [vmem:[%s4282_s5 + $0x188] sm:$0xff] }
 0x1aa   : > { %1584 = vmatprep.mubr.f32.mxu1 %v726_v25  ;;  %2612 = vmatpush3.msra.mxu1 %v1722_v35  ;;  %v1770_v25 = vld [vmem:[%s4282_s5 + $0x2f8] sm:$0xff] }
 0x1ab   : > { %2613 = vmatprep.subr.mxu1 %v1737_v37  ;;  %2646 = vmatprep.subr.mxu0 %v1770_v25 }
 0x1ac   : > { %2614 = vmatpush3.msra.mxu1 %v1721_v39 }
 0x1ad   : > { %1585 = vmatmul.mubr.f32.gmra.mxu1 %v725_v26  ;;  %2615 = vmatprep.subr.mxu1 %v1736_v41  ;;  %v1708_v26 = vld [vmem:[%s4282_s5 + $0x108] sm:$0xff] }
 0x1ae   : > { %2616 = vmatpush3.msra.mxu1 %v1720_v43 }
 0x1af   : > { %2617 = vmatprep.subr.mxu1 %v1735_v45 }
 0x1b0   : > { %2618 = vmatpush3.msra.mxu1 %v1719_v47 }
 0x1b1   : > { %2619 = vmatprep.subr.mxu1 %v1734_v49  ;;  %v2239_v49 = vld [vmem:[%s4281_s4] ss:$0 sm:$0xff] }
 0x1b2   : > { %2620 = vmatpush3.msra.mxu1 %v1718_v51 }
 0x1b3   : > { %2621 = vmatprep.subr.mxu1 %v1733_v53 }
 0x1b4   : > { %2622 = vmatpush3.msra.mxu1 %v1717_v55 }
 0x1b5   : > { %2623 = vmatprep.subr.mxu1 %v1732_v57 }
 0x1b6   : > { %2624 = vmatpush3.msra.mxu1 %v1716_v59 }
 0x1b7   : > { %2625 = vmatprep.subr.mxu1 %v1731_v61 }
 0x1b8   : > { %2626 = vmatpush3.msra.mxu1 %v1715_v63 }
 0x1b9   : > { %2627 = vmatprep.subr.mxu1 %v1730_v2 }
 0x1ba   : > { %2628 = vmatpush3.msra.mxu1 %v1714_v4 }
 0x1bb   : > { %2629 = vmatprep.subr.mxu1 %v1729_v6 }
 0x1bc   : > { %2630 = vmatpush3.msra.mxu1 %v1713_v8 }
 0x1bd   : > { %2631 = vmatprep.subr.mxu1 %v1728_v9 }
 0x1be   : > { %2632 = vmatpush3.msra.mxu1 %v1712_v11 }
 0x1bf   : > { %2633 = vmatprep.subr.mxu1 %v1727_v13 }
 0x1c0   : > { %2634 = vmatpush3.msra.mxu1 %v1711_v15 }
 0x1c1   : > { %2635 = vmatprep.subr.mxu1 %v1726_v17 }
 0x1c2   : > { %2636 = vmatpush3.msra.mxu1 %v1710_v19 }
 0x1c3   : > { %2637 = vmatprep.subr.mxu1 %v1725_v21 }
 0x1c4   : > { %2638 = vmatpush3.msra.mxu1 %v1709_v23 }
 0x1c5   : > { %2639 = vmatprep.subr.mxu1 %v1724_v24 }
 0x1c6   : > { %2640 = vmatpush3.msra.mxu1 %v1708_v26 }
 0x1c7   : > { %2641 = vmatprep.subr.mxu1 %v1723_v27 }
 0x1c8   : > { %2642 = vmatpush3.msra.mxu1 %v1707_v28 }
 0x1c9   : > { %2681 = vmatprep.subr.mxu1 %v1802_v29 }
 0x1d7   : > { %v2304_v30 = vpop.f32.mrf.mxu1 }
 0x1d9   : > { %v2305_v31 = vpop.f32.mrf.mxu1 }
 0x1da   : > { %v2306_v48 = vadd.f32 %v2305_v31, %v2304_v30 }
 0x1dc   : > { %v2380_v37 = vpop.f32.mrf.mxu0  ;;  %v1057_v54 = vadd.f32 %v2306_v48, %v2239_v49 }
 0x1de   : > { %v2381_v39 = vpop.f32.mrf.mxu0 }
 0x1df   : > { %v2382_v60 = vadd.f32 %v2381_v39, %v2380_v37 }
 0x1f5   : > { %v2307_v32 = vpop.f32.mrf.mxu1 }
 0x1f7   : > { %v2308_v34 = vpop.f32.mrf.mxu1 }
 0x1f8   : > { %v2309_v55 = vadd.f32 %v2308_v34, %v2307_v32 }
 0x1fa   : > { %v1062_v61 = vadd.f32 %v2309_v55, %v2239_v49 }
 0x1fc   : > { %v2383_v41 = vpop.f32.mrf.mxu0 }
 0x1fe   : > { %v2384_v43 = vpop.f32.mrf.mxu0 }
 0x1ff   : > { %v2385_v4 = vadd.f32 %v2384_v43, %v2383_v41 }
 0x203   : > { %v2342_v35 = vpop.f32.mrf.mxu1 }
 0x205   : > { %v2343_v36 = vpop.f32.mrf.mxu1 }
 0x206   : > { %v2344_v51 = vadd.f32 %v2343_v36, %v2342_v35 }
 0x208   : > { %v2345_v38 = vpop.f32.mrf.mxu1  ;;  %v1132_v56 = vadd.f32 %v2344_v51, %v1057_v54 }
 0x209   : > { %v2456_v45 = vpop.f32.mrf.mxu0 }
 0x20a   : > { %v2346_v40 = vpop.f32.mrf.mxu1  ;;  %v1207_v2 = vadd.f32 %v2382_v60, %v1132_v56 }
 0x20b   : > { %v2457_v47 = vpop.f32.mrf.mxu0  ;;  %v2347_v57 = vadd.f32 %v2346_v40, %v2345_v38 }
 0x20c   : > { %v2458_v8 = vadd.f32 %v2457_v47, %v2456_v45 }
 0x20d   : > { %v1137_v0 = vadd.f32 %v2347_v57, %v1062_v61 }
 0x20f   : > { %v2459_v52 = vpop.f32.mrf.mxu0  ;;  %v1212_v33 = vadd.f32 %v2385_v4, %v1137_v0  ;;  %v1754_v0 = vld [vmem:[%s4282_s5 + $0x278] sm:$0xff]  ;;  %v1768_v4 = vld [vmem:[%s4282_s5 + $0x2e8] sm:$0xff] }
 0x211   : > { %v2460_v58 = vpop.f32.mrf.mxu0 }
 0x212   : > { %v2461_v14 = vadd.f32 %v2460_v58, %v2459_v52 }
 0x227   : > { %v2418_v42 = vpop.f32.mrf.mxu1 }
 0x229   : > { %v2419_v44 = vpop.f32.mrf.mxu1 }
 0x22a   : > { %v2420_v62 = vadd.f32 %v2419_v44, %v2418_v42 }
 0x22c   : > { %v2421_v46 = vpop.f32.mrf.mxu1  ;;  %v1282_v5 = vadd.f32 %v2420_v62, %v1207_v2  ;;  %v1769_v2 = vld [vmem:[%s4282_s5 + $0x2f0] sm:$0xff] }
 0x22d   : > { %v2532_v63 = vpop.f32.mrf.mxu0 }
 0x22e   : > { %v2422_v50 = vpop.f32.mrf.mxu1  ;;  %v1357_v12 = vadd.f32 %v2458_v8, %v1282_v5  ;;  %v1786_v8 = vld [vmem:[%s4282_s5 + $0x378] sm:$0xff] }
 0x22f   : > { %v2423_v6 = vadd.f32 %v2422_v50, %v2421_v46  ;;  %v2533_v7 = vpop.f32.mrf.mxu0 }
 0x230   : > { %v2534_v18 = vadd.f32 %v2533_v7, %v2532_v63  ;;  %v1752_v7 = vld [vmem:[%s4282_s5 + $0x268] sm:$0xff] }
 0x231   : > { %v1287_v11 = vadd.f32 %v2423_v6, %v1212_v33  ;;  %v2535_v13 = vpop.f32.mrf.mxu0  ;;  %v1767_v33 = vld [vmem:[%s4282_s5 + $0x2e0] sm:$0xff] }
 0x233   : > { %v1362_v19 = vadd.f32 %v2461_v14, %v1287_v11  ;;  %v2536_v20 = vpop.f32.mrf.mxu0  ;;  %v1751_v11 = vld [vmem:[%s4282_s5 + $0x260] sm:$0xff]  ;;  %v1766_v14 = vld [vmem:[%s4282_s5 + $0x2d8] sm:$0xff] }
 0x234   : > { %v2537_v26 = vadd.f32 %v2536_v20, %v2535_v13  ;;  %v1749_v20 = vld [vmem:[%s4282_s5 + $0x250] sm:$0xff] }
 0x249   : > { %v2494_v53 = vpop.f32.mrf.mxu1 }
 0x24b   : > { %v2495_v59 = vpop.f32.mrf.mxu1 }
 0x24c   : > { %v2496_v9 = vadd.f32 %v2495_v59, %v2494_v53 }
 0x24d   : > { %v2497_v3 = vpop.f32.mrf.mxu1 }
 0x24e   : > { %v1432_v15 = vadd.f32 %v2496_v9, %v1357_v12  ;;  %v1785_v12 = vld [vmem:[%s4282_s5 + $0x370] sm:$0xff] }
 0x24f   : > { %v2498_v10 = vpop.f32.mrf.mxu1 }
 0x250   : > { %v2499_v16 = vadd.f32 %v2498_v10, %v2497_v3  ;;  %v1507_v23 = vadd.f32 %v2534_v18, %v1432_v15  ;;  %v1753_v3 = vld [vmem:[%s4282_s5 + $0x270] sm:$0xff]  ;;  %v1800_v15 = vld [vmem:[%s4282_s5 + $0x3e8] sm:$0xff] }
 0x251   : > { %v1801_v10 = vld [vmem:[%s4282_s5 + $0x3f0] sm:$0xff] }
 0x252   : > { %v1437_v22 = vadd.f32 %v2499_v16, %v1362_v19  ;;  %v1750_v16 = vld [vmem:[%s4282_s5 + $0x258] sm:$0xff]  ;;  %v1765_v18 = vld [vmem:[%s4282_s5 + $0x2d0] sm:$0xff]  ;;  %v1799_v19 = vld [vmem:[%s4282_s5 + $0x3e0] sm:$0xff] }
 0x254   : > { %v1512_v30 = vadd.f32 %v2537_v26, %v1437_v22  ;;  %v1764_v22 = vld [vmem:[%s4282_s5 + $0x2c8] sm:$0xff]  ;;  %v1763_v26 = vld [vmem:[%s4282_s5 + $0x2c0] sm:$0xff] }
 0x269   : > { %v2570_v17 = vpop.f32.mrf.mxu1 }
 0x26b   : > { %v2571_v21 = vpop.f32.mrf.mxu1 }
 0x26c   : > { %v2572_v24 = vadd.f32 %v2571_v21, %v2570_v17  ;;  %v1784_v17 = vld [vmem:[%s4282_s5 + $0x368] sm:$0xff]  ;;  %v1783_v21 = vld [vmem:[%s4282_s5 + $0x360] sm:$0xff] }
 0x26d   : > { %v2573_v25 = vpop.f32.mrf.mxu1 }
 0x26e   : > { %v1582_v27 = vadd.f32 %v2572_v24, %v1507_v23  ;;  %v1798_v23 = vld [vmem:[%s4282_s5 + $0x3d8] sm:$0xff]  ;;  %v1748_v24 = vld [vmem:[%s4282_s5 + $0x248] sm:$0xff] }
 0x26f   : > { %v2574_v28 = vpop.f32.mrf.mxu1 }
 0x270   : > { %v1590_v29 = vmax.f32 %v1582_v27, 0.0  ;;  %v2575_v31 = vadd.f32 %v2574_v28, %v2573_v25  ;;  %v1782_v25 = vld [vmem:[%s4282_s5 + $0x358] sm:$0xff]  ;;  %v1797_v27 = vld [vmem:[%s4282_s5 + $0x3d0] sm:$0xff]  ;;  %v1747_v28 = vld [vmem:[%s4282_s5 + $0x240] sm:$0xff] }
 0x272   : > { %1592 = vst [vmem:[#allocation4] sm:$0xff] %v1590_v29  ;;  %v1587_v32 = vadd.f32 %v2575_v31, %v1512_v30  ;;  %v1781_v29 = vld [vmem:[%s4282_s5 + $0x350] sm:$0xff]  ;;  %v1762_v30 = vld [vmem:[%s4282_s5 + $0x2b8] sm:$0xff]  ;;  %v1796_v31 = vld [vmem:[%s4282_s5 + $0x3c8] sm:$0xff] }
 0x274   : > { %v1591_v34 = vmax.f32 %v1587_v32, 0.0  ;;  %v1746_v32 = vld [vmem:[%s4282_s5 + $0x238] sm:$0xff] }
 0x276   : > { %1593 = vst [vmem:[#allocation4 + $0x8] sm:$0xff] %v1591_v34  ;;  %v1780_v34 = vld [vmem:[%s4282_s5 + $0x348] sm:$0xff] }
 0x279   : > { %v1594_v35 = vld [vmem:[#allocation4] sm:$0x3]  ;;  %v1598_v36 = vld [vmem:[#allocation4 + $0x2] sm:$0x3]  ;;  %v1602_v37 = vld [vmem:[#allocation4 + $0x5] sm:$0x3] }
 0x27a   : > { %1595 = vst [vmem:[#allocation5] sm:$0x3] %v1594_v35  ;;  %1599 = vst [vmem:[#allocation5 + $0x28] sm:$0x3] %v1598_v36  ;;  %v1612_v38 = vld [vmem:[#allocation4 + $0x4] sm:$0x3] }
 0x27b   : > { %v1622_v39 = vld [vmem:[#allocation4 + $0x6] sm:$0x3]  ;;  %1603 = vst [vmem:[#allocation5 + $0x30] sm:$0x3] %v1602_v37  ;;  %v1596_v40 = vld [vmem:[#allocation4 + $0x1] sm:$0x3] }
 0x27c   : > { %v1614_v41 = vrot.slane %v1612_v38, 6  ;;  %v1624_v42 = vrot.slane %v1622_v39, 6  ;;  %1597 = vst [vmem:[#allocation5 + $0x8] sm:$0x3] %v1596_v40  ;;  %v1617_v43 = vld [vmem:[#allocation4 + $0x5] sm:$0x3] }
 0x27d   : > { %v1600_v44 = vld [vmem:[#allocation4 + $0x4] sm:$0x3]  ;;  %v1619_v45 = vrot.slane %v1617_v43, 6  ;;  %v1604_v46 = vld [vmem:[#allocation4 + $0x6] sm:$0x3]  ;;  %v1761_v35 = vld [vmem:[%s4282_s5 + $0x2b0] sm:$0xff] }
 0x27e   : > { %1601 = vst [vmem:[#allocation5 + $0x38] sm:$0x3] %v1600_v44  ;;  %1616 = vst [vmem:[#allocation5] sm:$0xc] %v1614_v41  ;;  %v1606_v47 = vld [vmem:[#allocation4 + $0x8] sm:$0x3] }
 0x27f   : > { %1626 = vst [vmem:[#allocation5 + $0x28] sm:$0xc] %v1624_v42  ;;  %v1610_v48 = vld [vmem:[#allocation4 + $0xa] sm:$0x3]  ;;  %1605 = vst [vmem:[#allocation5 + $0x20] sm:$0x3] %v1604_v46 }
 0x280   : > { %v1632_v49 = vld [vmem:[#allocation4 + $0x9] sm:$0x3]  ;;  %v1642_v51 = vld [vmem:[#allocation4 + $0xc] sm:$0x3]  ;;  %v1652_v52 = vld [vmem:[#allocation4 + $0xe] sm:$0x3] }
 0x281   : > { %v1634_v50 = vrot.slane %v1632_v49, 6  ;;  %1607 = vst [vmem:[#allocation5 + $0x10] sm:$0x3] %v1606_v47  ;;  %1611 = vst [vmem:[#allocation5 + $0x40] sm:$0x3] %v1610_v48  ;;  %v1644_v53 = vrot.slane %v1642_v51, 6 }
 0x282   : > { %1621 = vst [vmem:[#allocation5 + $0x8] sm:$0xc] %v1619_v45  ;;  %v1654_v54 = vrot.slane %v1652_v52, 6  ;;  %v1627_v55 = vld [vmem:[#allocation4 + $0x8] sm:$0x3]  ;;  %v1795_v36 = vld [vmem:[%s4282_s5 + $0x3c0] sm:$0xff] }
 0x283   : > { %v1637_v56 = vld [vmem:[#allocation4 + $0xa] sm:$0x3]  ;;  %1636 = vst [vmem:[#allocation5 + $0x30] sm:$0xc] %v1634_v50  ;;  %v1629_v57 = vrot.slane %v1627_v55, 6  ;;  %v1779_v38 = vld [vmem:[%s4282_s5 + $0x340] sm:$0xff] }
 0x284   : > { %v1639_v58 = vrot.slane %v1637_v56, 6  ;;  %v1608_v59 = vld [vmem:[#allocation4 + $0x9] sm:$0x3]  ;;  %v1647_v60 = vld [vmem:[#allocation4 + $0xd] sm:$0x3]  ;;  %v1760_v39 = vld [vmem:[%s4282_s5 + $0x2a8] sm:$0xff] }
 0x285   : > { %1646 = vst [vmem:[#allocation5 + $0x10] sm:$0xc] %v1644_v53  ;;  %1656 = vst [vmem:[#allocation5 + $0x40] sm:$0xc] %v1654_v54  ;;  %v1649_v61 = vrot.slane %v1647_v60, 6  ;;  %v1666_v62 = vld [vmem:[#allocation5] sm:$0xff] }
 0x286   : > { %1609 = vst [vmem:[#allocation5 + $0x18] sm:$0x3] %v1608_v59  ;;  %1631 = vst [vmem:[#allocation5 + $0x38] sm:$0xc] %v1629_v57  ;;  %v1668_v9 = vld [vmem:[#allocation5 + $0x28] sm:$0xff]  ;;  %v1745_v37 = vld [vmem:[%s4282_s5 + $0x230] sm:$0xff] }
 0x287   : > { %1641 = vst [vmem:[#allocation5 + $0x20] sm:$0xc] %v1639_v58  ;;  %1651 = vst [vmem:[#allocation5 + $0x18] sm:$0xc] %v1649_v61  ;;  %v1794_v40 = vld [vmem:[%s4282_s5 + $0x3b8] sm:$0xff]  ;;  %v1744_v41 = vld [vmem:[%s4282_s5 + $0x228] sm:$0xff] }
 0x288   : > { %v1778_v42 = vld [vmem:[%s4282_s5 + $0x338] sm:$0xff]  ;;  %v1759_v43 = vld [vmem:[%s4282_s5 + $0x2a0] sm:$0xff]  ;;  %v1793_v44 = vld [vmem:[%s4282_s5 + $0x3b0] sm:$0xff] }
 0x289   : > { %v1667_v63 = vld [vmem:[#allocation5 + $0x8] sm:$0xff]  ;;  %v1777_v46 = vld [vmem:[%s4282_s5 + $0x330] sm:$0xff]  ;;  %v1758_v47 = vld [vmem:[%s4282_s5 + $0x298] sm:$0xff] }
 0x28a   : > { %1890 = vmatprep.mubr.f32.mxu0 %v1667_v63  ;;  %v1743_v45 = vld [vmem:[%s4282_s5 + $0x220] sm:$0xff]  ;;  %v1792_v48 = vld [vmem:[%s4282_s5 + $0x3a8] sm:$0xff]  ;;  %v1742_v49 = vld [vmem:[%s4282_s5 + $0x218] sm:$0xff] }
 0x28b   : > { %1891 = vmatmul.mubr.f32.vlgmr.msra.gmra.mxu0 %v1666_v62  ;;  %v1776_v50 = vld [vmem:[%s4282_s5 + $0x328] sm:$0xff]  ;;  %v1757_v51 = vld [vmem:[%s4282_s5 + $0x290] sm:$0xff]  ;;  %v1791_v52 = vld [vmem:[%s4282_s5 + $0x3a0] sm:$0xff] }
 0x28c   : > { %2647 = vmatpush3.msra.mxu0 %v1754_v0  ;;  %v1741_v53 = vld [vmem:[%s4282_s5 + $0x210] sm:$0xff]  ;;  %v1775_v54 = vld [vmem:[%s4282_s5 + $0x320] sm:$0xff]  ;;  %v1756_v55 = vld [vmem:[%s4282_s5 + $0x288] sm:$0xff] }
 0x28d   : > { %2648 = vmatprep.subr.mxu0 %v1769_v2  ;;  %v1669_v5 = vld [vmem:[#allocation5 + $0x38] sm:$0xff]  ;;  %v1790_v56 = vld [vmem:[%s4282_s5 + $0x398] sm:$0xff]  ;;  %v1740_v57 = vld [vmem:[%s4282_s5 + $0x208] sm:$0xff] }
 0x28e   : > { %v1671_v6 = vld [vmem:[#allocation5 + $0x20] sm:$0xff]  ;;  %2649 = vmatpush3.msra.mxu0 %v1753_v3  ;;  %1960 = vmatprep.mubr.f32.mxu1 %v1669_v5  ;;  %v1673_v13 = vld [vmem:[#allocation5 + $0x18] sm:$0xff]  ;;  %v1755_v59 = vld [vmem:[%s4282_s5 + $0x280] sm:$0xff] }
 0x28f   : > { %2650 = vmatprep.subr.mxu0 %v1768_v4  ;;  %2030 = vmatprep.mubr.f32.mxu0 %v1671_v6  ;;  %v1774_v58 = vld [vmem:[%s4282_s5 + $0x318] sm:$0xff]  ;;  %v1789_v60 = vld [vmem:[%s4282_s5 + $0x390] sm:$0xff]  ;;  %v1739_v61 = vld [vmem:[%s4282_s5 + $0x200] sm:$0xff] }
 0x290   : > { %1961 = vmatmul.mubr.f32.vlgmr.msra.gmra.mxu1 %v1668_v9  ;;  %2651 = vmatpush3.msra.mxu0 %v1752_v7  ;;  %v1773_v62 = vld [vmem:[%s4282_s5 + $0x310] sm:$0xff]  ;;  %v1788_v63 = vld [vmem:[%s4282_s5 + $0x388] sm:$0xff]  ;;  %v1818_v3 = vld [vmem:[%s4282_s5 + $0x478] sm:$0xff] }
 0x291   : > { %2682 = vmatpush3.msra.mxu1 %v1786_v8  ;;  %2652 = vmatprep.subr.mxu0 %v1767_v33  ;;  %v1772_v0 = vld [vmem:[%s4282_s5 + $0x308] sm:$0xff]  ;;  %v1787_v4 = vld [vmem:[%s4282_s5 + $0x380] sm:$0xff]  ;;  %v1817_v6 = vld [vmem:[%s4282_s5 + $0x470] sm:$0xff] }
 0x292   : > { %2683 = vmatprep.subr.mxu1 %v1801_v10  ;;  %2100 = vmatprep.mubr.f32.mxu1 %v1673_v13  ;;  %v1670_v2 = vld [vmem:[#allocation5 + $0x30] sm:$0xff]  ;;  %v1771_v5 = vld [vmem:[%s4282_s5 + $0x300] sm:$0xff]  ;;  %v1814_v9 = vld [vmem:[%s4282_s5 + $0x458] sm:$0xff] }
 0x293   : > { %2653 = vmatpush3.msra.mxu0 %v1751_v11  ;;  %2684 = vmatpush3.msra.mxu1 %v1785_v12  ;;  %v1672_v7 = vld [vmem:[#allocation5 + $0x10] sm:$0xff]  ;;  %v1815_v33 = vld [vmem:[%s4282_s5 + $0x460] sm:$0xff]  ;;  %v1813_v10 = vld [vmem:[%s4282_s5 + $0x450] sm:$0xff] }
 0x294   : > { %2654 = vmatprep.subr.mxu0 %v1766_v14  ;;  %2685 = vmatprep.subr.mxu1 %v1800_v15  ;;  %v1816_v8 = vld [vmem:[%s4282_s5 + $0x468] sm:$0xff]  ;;  %v1811_v12 = vld [vmem:[%s4282_s5 + $0x440] sm:$0xff]  ;;  %v1810_v13 = vld [vmem:[%s4282_s5 + $0x438] sm:$0xff] }
 0x295   : > { %2655 = vmatpush3.msra.mxu0 %v1750_v16  ;;  %2686 = vmatpush3.msra.mxu1 %v1784_v17  ;;  %v1812_v11 = vld [vmem:[%s4282_s5 + $0x448] sm:$0xff]  ;;  %v1809_v14 = vld [vmem:[%s4282_s5 + $0x430] sm:$0xff]  ;;  %v1807_v16 = vld [vmem:[%s4282_s5 + $0x420] sm:$0xff] }
 0x296   : > { %2656 = vmatprep.subr.mxu0 %v1765_v18  ;;  %2687 = vmatprep.subr.mxu1 %v1799_v19  ;;  %v1808_v15 = vld [vmem:[%s4282_s5 + $0x428] sm:$0xff]  ;;  %v1806_v17 = vld [vmem:[%s4282_s5 + $0x418] sm:$0xff]  ;;  %v1805_v18 = vld [vmem:[%s4282_s5 + $0x410] sm:$0xff] }
 0x297   : > { %2657 = vmatpush3.msra.mxu0 %v1749_v20  ;;  %2688 = vmatpush3.msra.mxu1 %v1783_v21  ;;  %v1804_v19 = vld [vmem:[%s4282_s5 + $0x408] sm:$0xff]  ;;  %v1803_v20 = vld [vmem:[%s4282_s5 + $0x400] sm:$0xff]  ;;  %v1674_v21 = vld [vmem:[#allocation5 + $0x40] sm:$0xff] }
 0x298   : > { %2658 = vmatprep.subr.mxu0 %v1764_v22  ;;  %2689 = vmatprep.subr.mxu1 %v1798_v23 }
 0x299   : > { %2659 = vmatpush3.msra.mxu0 %v1748_v24  ;;  %2690 = vmatpush3.msra.mxu1 %v1782_v25 }
 0x29a   : > { %2660 = vmatprep.subr.mxu0 %v1763_v26  ;;  %2691 = vmatprep.subr.mxu1 %v1797_v27 }
 0x29b   : > { %2661 = vmatpush3.msra.mxu0 %v1747_v28  ;;  %2692 = vmatpush3.msra.mxu1 %v1781_v29  ;;  %v2240_v29 = vld [vmem:[%s4283_s6] ss:$0 sm:$0xff] }
 0x29c   : > { %2662 = vmatprep.subr.mxu0 %v1762_v30  ;;  %2693 = vmatprep.subr.mxu1 %v1796_v31 }
 0x29d   : > { %2663 = vmatpush3.msra.mxu0 %v1746_v32  ;;  %2694 = vmatpush3.msra.mxu1 %v1780_v34 }
 0x29e   : > { %2664 = vmatprep.subr.mxu0 %v1761_v35  ;;  %2695 = vmatprep.subr.mxu1 %v1795_v36 }
 0x29f   : > { %2665 = vmatpush3.msra.mxu0 %v1745_v37  ;;  %2696 = vmatpush3.msra.mxu1 %v1779_v38 }
 0x2a0   : > { %2666 = vmatprep.subr.mxu0 %v1760_v39  ;;  %2697 = vmatprep.subr.mxu1 %v1794_v40 }
 0x2a1   : > { %2667 = vmatpush3.msra.mxu0 %v1744_v41  ;;  %2698 = vmatpush3.msra.mxu1 %v1778_v42 }
 0x2a2   : > { %2668 = vmatprep.subr.mxu0 %v1759_v43  ;;  %2699 = vmatprep.subr.mxu1 %v1793_v44 }
 0x2a3   : > { %2669 = vmatpush3.msra.mxu0 %v1743_v45  ;;  %2700 = vmatpush3.msra.mxu1 %v1777_v46 }
 0x2a4   : > { %2670 = vmatprep.subr.mxu0 %v1758_v47  ;;  %2701 = vmatprep.subr.mxu1 %v1792_v48 }
 0x2a5   : > { %2671 = vmatpush3.msra.mxu0 %v1742_v49  ;;  %2702 = vmatpush3.msra.mxu1 %v1776_v50 }
 0x2a6   : > { %2672 = vmatprep.subr.mxu0 %v1757_v51  ;;  %2703 = vmatprep.subr.mxu1 %v1791_v52 }
 0x2a7   : > { %2673 = vmatpush3.msra.mxu0 %v1741_v53  ;;  %2704 = vmatpush3.msra.mxu1 %v1775_v54 }
 0x2a8   : > { %2674 = vmatprep.subr.mxu0 %v1756_v55  ;;  %2705 = vmatprep.subr.mxu1 %v1790_v56 }
 0x2a9   : > { %2675 = vmatpush3.msra.mxu0 %v1740_v57  ;;  %2706 = vmatpush3.msra.mxu1 %v1774_v58 }
 0x2aa   : > { %2676 = vmatprep.subr.mxu0 %v1755_v59  ;;  %2707 = vmatprep.subr.mxu1 %v1789_v60 }
 0x2ab   : > { %2677 = vmatpush3.msra.mxu0 %v1739_v61  ;;  %2708 = vmatpush3.msra.mxu1 %v1773_v62 }
 0x2ac   : > { %2031 = vmatmul.mubr.f32.vlgmr.msra.gmra.mxu0 %v1670_v2  ;;  %2709 = vmatprep.subr.mxu1 %v1788_v63 }
 0x2ad   : > { %2804 = vmatprep.subr.mxu0 %v2857_v1  ;;  %2710 = vmatpush3.msra.mxu1 %v1772_v0 }
 0x2ae   : > { %2805 = vmatpush3.msra.mxu0 %v1818_v3  ;;  %2711 = vmatprep.subr.mxu1 %v1787_v4 }
 0x2af   : > { %2806 = vmatprep.subr.mxu0 %v2857_v1  ;;  %2712 = vmatpush3.msra.mxu1 %v1771_v5 }
 0x2b0   : > { %2807 = vmatpush3.msra.mxu0 %v1817_v6  ;;  %2101 = vmatmul.mubr.f32.vlgmr.msra.gmra.mxu1 %v1672_v7 }
 0x2b1   : > { %2808 = vmatprep.subr.mxu0 %v2857_v1  ;;  %2836 = vmatprep.mubr.msk.f32.mxu0 %vm2858_vm0, %v2857_v1 }
 0x2b2   : > { %2809 = vmatpush3.msra.mxu0 %v1816_v8 }
 0x2b3   : > { %2810 = vmatprep.subr.mxu0 %v2857_v1 }
 0x2b4   : > { %2811 = vmatpush3.msra.mxu0 %v1815_v33 }
 0x2b5   : > { %2812 = vmatprep.subr.mxu0 %v2857_v1 }
 0x2b6   : > { %2813 = vmatpush3.msra.mxu0 %v1814_v9 }
 0x2b7   : > { %2814 = vmatprep.subr.mxu0 %v2857_v1 }
 0x2b8   : > { %2815 = vmatpush3.msra.mxu0 %v1813_v10 }
 0x2b9   : > { %2816 = vmatprep.subr.mxu0 %v2857_v1 }
 0x2ba   : > { %2817 = vmatpush3.msra.mxu0 %v1812_v11 }
 0x2bb   : > { %2818 = vmatprep.subr.mxu0 %v2857_v1 }
 0x2bc   : > { %2819 = vmatpush3.msra.mxu0 %v1811_v12 }
 0x2bd   : > { %2820 = vmatprep.subr.mxu0 %v2857_v1 }
 0x2be   : > { %2821 = vmatpush3.msra.mxu0 %v1810_v13 }
 0x2bf   : > { %2822 = vmatprep.subr.mxu0 %v2857_v1 }
 0x2c0   : > { %2823 = vmatpush3.msra.mxu0 %v1809_v14 }
 0x2c1   : > { %2824 = vmatprep.subr.mxu0 %v2857_v1 }
 0x2c2   : > { %2825 = vmatpush3.msra.mxu0 %v1808_v15 }
 0x2c3   : > { %2826 = vmatprep.subr.mxu0 %v2857_v1 }
 0x2c4   : > { %2827 = vmatpush3.msra.mxu0 %v1807_v16 }
 0x2c5   : > { %2828 = vmatprep.subr.mxu0 %v2857_v1 }
 0x2c6   : > { %2829 = vmatpush3.msra.mxu0 %v1806_v17 }
 0x2c7   : > { %2830 = vmatprep.subr.mxu0 %v2857_v1 }
 0x2c8   : > { %2831 = vmatpush3.msra.mxu0 %v1805_v18 }
 0x2c9   : > { %2832 = vmatprep.subr.mxu0 %v2857_v1 }
 0x2ca   : > { %2833 = vmatpush3.msra.mxu0 %v1804_v19 }
 0x2cb   : > { %2834 = vmatprep.subr.mxu0 %v2857_v1 }
 0x2cc   : > { %2835 = vmatpush3.msra.mxu0 %v1803_v20 }
 0x2cd   : > { %2837 = vmatmul.mubr.f32.vlgmr.msra.gmra.mxu0 %v1674_v21 }
 0x34b   : > { %v2608_v22 = vpop.f32.mrf.mxu0 }
 0x34d   : > { %v2609_v24 = vpop.f32.mrf.mxu0 }
 0x34e   : > { %v2610_v28 = vadd.f32 %v2609_v24, %v2608_v22 }
 0x350   : > { %v2643_v23 = vpop.f32.mrf.mxu1  ;;  %v1893_v1 = vadd.f32 %v2610_v28, %v2240_v29 }
 0x352   : > { %v2644_v25 = vpop.f32.mrf.mxu1 }
 0x353   : > { %v2645_v31 = vadd.f32 %v2644_v25, %v2643_v23 }
 0x355   : > { %v1963_v35 = vadd.f32 %v2645_v31, %v1893_v1 }
 0x36c   : > { %v2678_v26 = vpop.f32.mrf.mxu0 }
 0x36e   : > { %v2679_v30 = vpop.f32.mrf.mxu0 }
 0x36f   : > { %v2680_v34 = vadd.f32 %v2679_v30, %v2678_v26 }
 0x370   : > { %v2713_v27 = vpop.f32.mrf.mxu1 }
 0x371   : > { %v2033_v37 = vadd.f32 %v2680_v34, %v1963_v35 }
 0x372   : > { %v2714_v32 = vpop.f32.mrf.mxu1 }
 0x373   : > { %v2715_v36 = vadd.f32 %v2714_v32, %v2713_v27 }
 0x375   : > { %v2103_v38 = vadd.f32 %v2715_v36, %v2033_v37 }
 0x38d   : > { %v2172_v39 = vpop.f32.mrf.mxu0 }
 0x38e   : > { %v2173_v40 = vadd.f32 %v2172_v39, %v2103_v38 }
 0x38f   : > { %v2838_v41 = vpop.f32.mrf.mxu0 }
 0x390   : > { %v2176_v42 = vmax.f32 %v2173_v40, 0.0 }
 0x392   : > { %2177 = vst [vmem:[%s278_s9] sm:$0xff] %v2176_v42 }
 0x393 PF: > { %s17_s24 = sadd.s32 1, %s2855_s24  }
 0x394   : > { %p14_p5 = scmp.ge.s32.totalorder %s17_s24, 4  }
 0x396   :  { %16 = sbr.rel (!%p14_p5) target bundleno = 1 (0x1), region = 78 }

</bundles_post_ra>
